<compile_context>
chip_gen: v6e
topology: v6e:2x2x1
jax: 0.10.0
libtpu: 0.0.40
codegen_flags: <defaults>
</compile_context>

<pallas_src>
import functools
import math

import numpy as np

import jax
import jax.numpy as jnp
from jax.experimental import pallas as pl
from jax.experimental.pallas import tpu as pltpu


# ---------------------------------------------------------------------------
# small helpers
# ---------------------------------------------------------------------------
def _round_up(v, m):
    return ((v + m - 1) // m) * m


def _feature_tile(dim_pad, pref):
    """Largest multiple of 128 <= pref that divides dim_pad (a 128-multiple)."""
    best = 128
    t = 128
    while t <= min(pref, dim_pad):
        if dim_pad % t == 0:
            best = t
        t += 128
    return best


def _chip_defaults():
    """Tile-size preferences / scoped-VMEM limit per TPU generation."""
    try:
        kind = jax.devices()[0].device_kind.lower()
    except Exception:  # pragma: no cover
        kind = ""
    if "v5" in kind:
        return {"tm": 512, "tk": 512, "tn": 256, "vmem": 96 * 1024 * 1024}
    if "v6" in kind:
        return {"tm": 512, "tk": 512, "tn": 256, "vmem": 96 * 1024 * 1024}
    # v7x / unknown: 64 MiB physical VMEM per TensorCore -> conservative limit.
    return {"tm": 512, "tk": 512, "tn": 256, "vmem": 48 * 1024 * 1024}


# ---------------------------------------------------------------------------
# kernel 1: tiled dense matmul  H = X @ W
# ---------------------------------------------------------------------------
def _matmul_kernel_acc(x_ref, w_ref, o_ref, acc_ref):
    @pl.when(pl.program_id(2) == 0)
    def _():
        acc_ref[...] = jnp.zeros_like(acc_ref)

    acc_ref[...] += jnp.dot(x_ref[...], w_ref[...],
                            preferred_element_type=jnp.float32)

    @pl.when(pl.program_id(2) == pl.num_programs(2) - 1)
    def _():
        o_ref[...] = acc_ref[...].astype(o_ref.dtype)


def _matmul_kernel_single(x_ref, w_ref, o_ref):
    # K fits one tile: no accumulator scratch / epilogue copy needed.
    o_ref[...] = jnp.dot(x_ref[...], w_ref[...],
                         preferred_element_type=jnp.float32).astype(o_ref.dtype)


def _tiled_matmul(x, w, *, tm, tn, tk, out_dtype, vmem_limit):
    m, kdim = x.shape
    _, n = w.shape
    nk = kdim // tk
    cost = pl.CostEstimate(
        flops=2 * m * n * kdim,
        transcendentals=0,
        bytes_accessed=int(x.size * x.dtype.itemsize
                           + w.size * w.dtype.itemsize
                           + m * n * jnp.dtype(out_dtype).itemsize),
    )
    if nk == 1:
        return pl.pallas_call(
            _matmul_kernel_single,
            out_shape=jax.ShapeDtypeStruct((m, n), out_dtype),
            grid_spec=pltpu.PrefetchScalarGridSpec(
                num_scalar_prefetch=0,
                grid=(m // tm, n // tn),
                in_specs=[
                    pl.BlockSpec((tm, kdim), lambda i, j: (i, 0)),
                    pl.BlockSpec((kdim, tn), lambda i, j: (0, j)),
                ],
                out_specs=pl.BlockSpec((tm, tn), lambda i, j: (i, j)),
            ),
            compiler_params=pltpu.CompilerParams(
                dimension_semantics=("parallel", "parallel"),
                vmem_limit_bytes=vmem_limit),
            cost_estimate=cost,
        )(x, w)
    return pl.pallas_call(
        _matmul_kernel_acc,
        out_shape=jax.ShapeDtypeStruct((m, n), out_dtype),
        grid_spec=pltpu.PrefetchScalarGridSpec(
            num_scalar_prefetch=0,
            grid=(m // tm, n // tn, nk),
            in_specs=[
                pl.BlockSpec((tm, tk), lambda i, j, k: (i, k)),
                pl.BlockSpec((tk, tn), lambda i, j, k: (k, j)),
            ],
            out_specs=pl.BlockSpec((tm, tn), lambda i, j, k: (i, j)),
            scratch_shapes=[pltpu.VMEM((tm, tn), jnp.float32)],
        ),
        compiler_params=pltpu.CompilerParams(
            dimension_semantics=("parallel", "parallel", "arbitrary"),
            vmem_limit_bytes=vmem_limit),
        cost_estimate=cost,
    )(x, w)


# ---------------------------------------------------------------------------
# kernel 2: block-sparse SpMM  Y = A_hat @ H + b  (+ ReLU) (+ fused @ W2)
#   Grid k-axis runs over nonzero blocks only.
#   scalar-prefetch args (1-D int32, SMEM-cheap):
#     col_ids[i*max_nnz + kk] : column-block index of the kk-th nonzero block of
#                               row block i (tail repeats the last value -> DMA elided)
#     nnz[i]                  : number of nonzero blocks in row block i (compute gate)
# ---------------------------------------------------------------------------
def _make_spmm_kernel(*, apply_relu, fuse_w2, h_resident, tk, max_nnz):
    def kernel(colids_ref, nnz_ref, a_ref, h_ref, b_ref, *rest):
        if fuse_w2:
            w2_ref, o_ref, acc_ref = rest
        else:
            o_ref, acc_ref = rest
        i = pl.program_id(0)
        kk = pl.program_id(2)

        @pl.when(kk == 0)
        def _():
            acc_ref[...] = jnp.zeros_like(acc_ref)

        @pl.when(kk < nnz_ref[i])
        def _():
            if h_resident:
                col = colids_ref[i * max_nnz + kk]
                start = pl.multiple_of(col * tk, tk)
                h_blk = h_ref[pl.ds(start, tk), :]
            else:
                h_blk = h_ref[...]
            acc_ref[...] += jnp.dot(a_ref[...], h_blk,
                                    preferred_element_type=jnp.float32)

        @pl.when(kk == pl.num_programs(2) - 1)
        def _():
            res = acc_ref[...] + b_ref[...]
            if apply_relu:
                res = jnp.maximum(res, 0.0)
            if fuse_w2:
                res = jnp.dot(res.astype(w2_ref.dtype), w2_ref[...],
                              preferred_element_type=jnp.float32)
            o_ref[...] = res.astype(o_ref.dtype)

    return kernel


def _block_spmm(col_ids, nnz, a, h, b, w2, *, tm, tk, tn, max_nnz, nnz_blocks,
                apply_relu, fuse_w2, out_dtype, vmem_limit, h_resident):
    m, kdim = a.shape
    n_h = h.shape[1]
    ni = m // tm
    nj = n_h // tn
    if fuse_w2:
        assert nj == 1, "fused W2 epilogue requires tn == padded hidden width"
        out_cols = w2.shape[1]
    else:
        out_cols = n_h

    # Advisory cost, scaled by actual block density (not dense N*N).
    flops = 2 * nnz_blocks * tm * tk * n_h
    if fuse_w2:
        flops += 2 * m * n_h * out_cols
    a_bytes = nnz_blocks * tm * tk * a.dtype.itemsize * nj
    h_bytes = h.size * h.dtype.itemsize * (1 if h_resident else max(ni, 1))
    cost = pl.CostEstimate(
        flops=int(flops), transcendentals=0,
        bytes_accessed=int(a_bytes + h_bytes + b.size * b.dtype.itemsize
                           + m * out_cols * jnp.dtype(out_dtype).itemsize))

    a_spec = pl.BlockSpec(
        (tm, tk), lambda i, j, kk, cid, nz: (i, cid[i * max_nnz + kk]))
    if h_resident:
        # Whole column slab of H resident in VMEM; sliced in-kernel with pl.ds.
        h_spec = pl.BlockSpec((kdim, tn), lambda i, j, kk, cid, nz: (0, j))
    else:
        h_spec = pl.BlockSpec(
            (tk, tn), lambda i, j, kk, cid, nz: (cid[i * max_nnz + kk], j))
    b_spec = pl.BlockSpec((1, tn), lambda i, j, kk, cid, nz: (0, j))

    in_specs = [a_spec, h_spec, b_spec]
    operands = [a, h, b]
    if fuse_w2:
        in_specs.append(pl.BlockSpec(w2.shape, lambda i, j, kk, cid, nz: (0, 0)))
        operands.append(w2)
        out_spec = pl.BlockSpec((tm, out_cols), lambda i, j, kk, cid, nz: (i, 0))
    else:
        out_spec = pl.BlockSpec((tm, tn), lambda i, j, kk, cid, nz: (i, j))

    kernel = _make_spmm_kernel(apply_relu=apply_relu, fuse_w2=fuse_w2,
                               h_resident=h_resident, tk=tk, max_nnz=max_nnz)
    return pl.pallas_call(
        kernel,
        out_shape=jax.ShapeDtypeStruct((m, out_cols), out_dtype),
        grid_spec=pltpu.PrefetchScalarGridSpec(
            num_scalar_prefetch=2,
            grid=(ni, nj, max_nnz),
            in_specs=in_specs,
            out_specs=out_spec,
            scratch_shapes=[pltpu.VMEM((tm, tn), jnp.float32)],
        ),
        compiler_params=pltpu.CompilerParams(
            dimension_semantics=("parallel", "parallel", "arbitrary"),
            vmem_limit_bytes=vmem_limit),
        cost_estimate=cost,
    )(col_ids, nnz, *operands)


# ---------------------------------------------------------------------------
# plain-JAX / host-side glue
# ---------------------------------------------------------------------------
def build_norm_adj(edge_index, num_nodes):
    """Dense D^{-1/2}(A + I_remaining)D^{-1/2} from a (2, E) edge_index."""
    src, dst = edge_index[0], edge_index[1]
    a = jnp.zeros((num_nodes, num_nodes), jnp.float32)
    a = a.at[dst, src].add(1.0)                 # message: src -> dst (rows = dst)
    idx = jnp.arange(num_nodes)
    a = a.at[idx, idx].add(jnp.where(jnp.diagonal(a) > 0, 0.0, 1.0))
    deg = a.sum(axis=1)
    d_inv_sqrt = jnp.where(deg > 0, jax.lax.rsqrt(deg), 0.0)
    return d_inv_sqrt[:, None] * a * d_inv_sqrt[None, :]


def preprocess_graph(edge_index, num_nodes, *, cfg):
    """Eager (host) preprocessing: padded bf16 A_hat + CSR-like block tables."""
    tm, tk = cfg["tm"], cfg["tk"]
    blk = (tm * tk) // math.gcd(tm, tk)               # lcm -> tiles never collapse
    n_pad = _round_up(num_nodes, blk)

    a_hat = build_norm_adj(edge_index, num_nodes)
    a_pad = jnp.pad(a_hat, ((0, n_pad - num_nodes), (0, n_pad - num_nodes)))

    ni, nk = n_pad // tm, n_pad // tk
    nz = np.asarray((a_pad.reshape(ni, tm, nk, tk) != 0.0).any(axis=(1, 3)))
    nnz = nz.sum(axis=1).astype(np.int32)
    max_nnz = max(int(nnz.max()), 1)
    col_ids = np.zeros((ni, max_nnz), np.int32)
    for i in range(ni):
        cols = np.nonzero(nz[i])[0].astype(np.int32)
        if cols.size:
            col_ids[i, :cols.size] = cols
            col_ids[i, cols.size:] = cols[-1]          # repeat -> tail DMA elided

    adj = {
        "a": a_pad.astype(jnp.bfloat16),
        "col_ids": jnp.asarray(col_ids.reshape(-1)),   # flat 1-D int32 (SMEM-cheap)
        "nnz": jnp.asarray(nnz),
    }
    meta = {"n": int(num_nodes), "n_pad": int(n_pad),
            "max_nnz": int(max_nnz), "nnz_blocks": int(nz.sum())}
    return adj, meta


def _gcn_two_layer(x, a_bf16, col_ids, nnz, params, *, cfg):
    n, n_pad = cfg["n"], cfg["n_pad"]
    tm, tk = cfg["tm"], cfg["tk"]
    max_nnz, nnz_blocks = cfg["max_nnz"], cfg["nnz_blocks"]
    vmem = cfg["vmem"]

    w1, b1 = params["w1"], params["b1"]
    w2, b2 = params["w2"], params["b2"]
    f_in, f_hid = w1.shape
    f_out = w2.shape[1]
    f_in_pad = _round_up(f_in, 128)
    f_hid_pad = _round_up(f_hid, 128)
    f_out_pad = _round_up(f_out, 128)       # lane-dense output (64 -> 128)

    x_p = jnp.pad(x.astype(jnp.bfloat16),
                  ((0, n_pad - n), (0, f_in_pad - f_in)))
    w1_p = jnp.pad(w1.astype(jnp.bfloat16),
                   ((0, f_in_pad - f_in), (0, f_hid_pad - f_hid)))
    b1_p = jnp.pad(b1.reshape(1, -1).astype(jnp.float32),
                   ((0, 0), (0, f_hid_pad - f_hid)))
    w2_p = jnp.pad(w2.astype(jnp.bfloat16),
                   ((0, f_hid_pad - f_hid), (0, f_out_pad - f_out)))
    b2_p = jnp.pad(b2.reshape(1, -1).astype(jnp.float32),
                   ((0, 0), (0, f_out_pad - f_out)))

    def resident_ok(cols):
        return 2 * n_pad * cols * 2 <= vmem // 3     # bf16 panel, double-buffered

    # (1) H1 = X @ W1 (bf16 out, feeds SpMM MXU pass)
    h1 = _tiled_matmul(x_p, w1_p, tm=tm,
                       tn=_feature_tile(f_hid_pad, cfg["tn"]),
                       tk=_feature_tile(f_in_pad, cfg["tk"]),
                       out_dtype=jnp.bfloat16, vmem_limit=vmem)

    fuse_w2 = f_hid_pad <= 512
    if fuse_w2:
        # (2) H2 = relu(A_hat @ H1 + b1) @ W2   (layer-2 linear fused in epilogue)
        h2 = _block_spmm(col_ids, nnz, a_bf16, h1, b1_p, w2_p,
                         tm=tm, tk=tk, tn=f_hid_pad, max_nnz=max_nnz,
                         nnz_blocks=nnz_blocks, apply_relu=True, fuse_w2=True,
                         out_dtype=jnp.bfloat16, vmem_limit=vmem,
                         h_resident=resident_ok(f_hid_pad))
    else:
        z1 = _block_spmm(col_ids, nnz, a_bf16, h1, b1_p, None,
                         tm=tm, tk=tk, tn=_feature_tile(f_hid_pad, cfg["tn"]),
                         max_nnz=max_nnz, nnz_blocks=nnz_blocks, apply_relu=True,
                         fuse_w2=False, out_dtype=jnp.bfloat16, vmem_limit=vmem,
                         h_resident=resident_ok(_feature_tile(f_hid_pad, cfg["tn"])))
        h2 = _tiled_matmul(z1, w2_p, tm=tm,
                           tn=_feature_tile(f_out_pad, cfg["tn"]),
                           tk=_feature_tile(f_hid_pad, cfg["tk"]),
                           out_dtype=jnp.bfloat16, vmem_limit=vmem)

    # (3) OUT = A_hat @ H2 + b2
    tn2 = _feature_tile(f_out_pad, cfg["tn"])
    out = _block_spmm(col_ids, nnz, a_bf16, h2, b2_p, None,
                      tm=tm, tk=tk, tn=tn2, max_nnz=max_nnz,
                      nnz_blocks=nnz_blocks, apply_relu=False, fuse_w2=False,
                      out_dtype=jnp.float32, vmem_limit=vmem,
                      h_resident=resident_ok(tn2))
    return out[:n, :f_out]


def gcn_forward(x, adj, params, *, cfg):
    """Matches GCN.forward: relu(conv1(x, ei)); conv2(x, ei)."""
    return _gcn_two_layer(x, adj["a"], adj["col_ids"], adj["nnz"], params, cfg=cfg)


def init_params(key, in_channels, hidden_channels, out_channels):
    k1, k2 = jax.random.split(key)
    s1 = jnp.sqrt(6.0 / (in_channels + hidden_channels))
    s2 = jnp.sqrt(6.0 / (hidden_channels + out_channels))
    return {
        "w1": jax.random.uniform(k1, (in_channels, hidden_channels),
                                 jnp.float32, -s1, s1),
        "b1": jnp.zeros((1, hidden_channels), jnp.float32),
        "w2": jax.random.uniform(k2, (hidden_channels, out_channels),
                                 jnp.float32, -s2, s2),
        "b2": jnp.zeros((1, out_channels), jnp.float32),
    }


def _reference(x, edge_index, params):
    a_hat = build_norm_adj(edge_index, x.shape[0])
    h = jnp.maximum(a_hat @ (x @ params["w1"]) + params["b1"], 0.0)
    return a_hat @ (h @ params["w2"]) + params["b2"]


if __name__ == "__main__":
    num_nodes = 640          # pads to 1024 -> 2x2 block structure, real tiled grid
    in_channels = 128
    hidden_channels = 128
    out_channels = 64        # padded to 128 lanes inside the wrapper

    key = jax.random.PRNGKey(0)
    kx, ke, kp = jax.random.split(key, 3)

    x = jax.random.normal(kx, (num_nodes, in_channels), jnp.float32)
    # Dense edges among the first 256 nodes plus a few cross edges into the upper
    # node range -> row blocks get different nnz, so the compressed nonzero-block
    # grid, tail skipping and DMA elision are genuinely exercised.
    ke1, ke2, ke3 = jax.random.split(ke, 3)
    ei_main = jax.random.randint(ke1, (2, 2048), 0, 256, dtype=jnp.int32)
    ei_cross = jnp.stack([
        jax.random.randint(ke2, (64,), 0, 256, dtype=jnp.int32),            # src
        jax.random.randint(ke3, (64,), 512, num_nodes, dtype=jnp.int32),    # dst
    ])
    edge_index = jnp.concatenate([ei_main, ei_cross], axis=1)

    params = init_params(kp, in_channels, hidden_channels, out_channels)

    cfg = _chip_defaults()
    adj, meta = preprocess_graph(edge_index, num_nodes, cfg=cfg)   # eager / host
    cfg = {**cfg, **meta}

    fwd = jax.jit(functools.partial(gcn_forward, cfg=cfg))
    out = fwd(x, adj, params)
    jax.block_until_ready(out)

    ref = _reference(x, edge_index, params)
    err = float(jnp.max(jnp.abs(out - ref)))
    scale = float(jnp.max(jnp.abs(ref)))
    assert out.shape == (num_nodes, out_channels)
    assert bool(jnp.all(jnp.isfinite(out)))
    assert err <= 0.1 * scale + 0.1, (err, scale)   # bf16-MXU tolerance
    print("KERNEL_OK")
</pallas_src>

<mosaic_0001>
module attributes {stable_mosaic.version = 11 : i64} {
  func.func @kernel(%arg0: i32, %arg1: i32, %arg2: i32, %arg3: memref<4xi32, #tpu.memory_space<smem>>, %arg4: memref<2xi32, #tpu.memory_space<smem>>, %arg5: memref<512x512xbf16, #tpu.memory_space<vmem>>, %arg6: memref<1024x128xbf16, #tpu.memory_space<vmem>>, %arg7: memref<1x128xf32, #tpu.memory_space<vmem>>, %arg8: memref<128x128xbf16, #tpu.memory_space<vmem>>, %arg9: memref<512x128xbf16, #tpu.memory_space<vmem>>, %arg10: memref<512x128xf32, #tpu.memory_space<vmem>>) attributes {dimension_semantics = [#tpu.dimension_semantics<parallel>, #tpu.dimension_semantics<parallel>, #tpu.dimension_semantics<arbitrary>], iteration_bounds = array<i64: 2, 1, 2>, scalar_prefetch = 2 : i64, scratch_operands = 1 : i64, tpu.core_type = #tpu.core_type<tc>, window_params = [{transform_indices = @transform_0, window_bounds = array<i64: 512, 512>}, {transform_indices = @transform_1, window_bounds = array<i64: 1024, 128>}, {transform_indices = @transform_2, window_bounds = array<i64: 1, 128>}, {pipeline_mode = #tpu.pipeline_mode<synchronous>, transform_indices = @transform_3, window_bounds = array<i64: 128, 128>}, {transform_indices = @transform_4, window_bounds = array<i64: 512, 128>}]} {
    %c0_i32 = arith.constant 0 : i32
    %0 = arith.cmpi eq, %arg2, %c0_i32 : i32
    %1 = arith.extui %0 : i1 to i32
    %c0_i32_0 = arith.constant 0 : i32
    %2 = arith.cmpi ne, %1, %c0_i32_0 : i32
    scf.if %2 {
      %cst = arith.constant 0.000000e+00 : f32
      %11 = vector.broadcast %cst : f32 to vector<512x128xf32>
      %c0 = arith.constant 0 : index
      %c0_3 = arith.constant 0 : index
      %12 = vector.load %arg10[%c0, %c0_3] : memref<512x128xf32, #tpu.memory_space<vmem>>, vector<512x128xf32>
      tpu.vector_store %arg10[%c0, %c0_3], %11 {strides = array<i32>} : memref<512x128xf32, #tpu.memory_space<vmem>>, vector<512x128xf32>,
    } else {
    }
    %3 = arith.index_cast %arg0 : i32 to index
    %4 = memref.load %arg4[%3] : memref<2xi32, #tpu.memory_space<smem>>
    %5 = arith.cmpi slt, %arg2, %4 : i32
    %6 = arith.extui %5 : i1 to i32
    %c0_i32_1 = arith.constant 0 : i32
    %7 = arith.cmpi ne, %6, %c0_i32_1 : i32
    scf.if %7 {
      %c2_i32 = arith.constant 2 : i32
      %11 = arith.muli %arg0, %c2_i32 : i32
      %12 = arith.addi %11, %arg2 : i32
      %13 = arith.index_cast %12 : i32 to index
      %14 = memref.load %arg3[%13] : memref<4xi32, #tpu.memory_space<smem>>
      %c512_i32 = arith.constant 512 : i32
      %15 = arith.muli %14, %c512_i32 : i32
      %16 = tpu.assume_multiple %15, 512 : i32
      %17 = arith.index_cast %16 : i32 to index
      %c0 = arith.constant 0 : index
      %18 = vector.load %arg6[%17, %c0] : memref<1024x128xbf16, #tpu.memory_space<vmem>>, vector<512x128xbf16>
      %c0_3 = arith.constant 0 : index
      %c0_4 = arith.constant 0 : index
      %19 = vector.load %arg10[%c0_3, %c0_4] : memref<512x128xf32, #tpu.memory_space<vmem>>, vector<512x128xf32>
      %c0_5 = arith.constant 0 : index
      %c0_6 = arith.constant 0 : index
      %20 = vector.load %arg5[%c0_5, %c0_6] : memref<512x512xbf16, #tpu.memory_space<vmem>>, vector<512x512xbf16>
      %cst = arith.constant dense<0.000000e+00> : vector<512x128xf32>
      %21 = tpu.matmul %20, %18, %cst {dimension_numbers = #tpu.dot_dimension_numbers<[1], [0], [0], [1], [0, 0, 1, 1], [], []>} : vector<512x512xbf16>, vector<512x128xbf16>, vector<512x128xf32> -> vector<512x128xf32>
      %22 = arith.addf %19, %21 : vector<512x128xf32>
      %c0_7 = arith.constant 0 : index
      %c0_8 = arith.constant 0 : index
      %23 = vector.load %arg10[%c0_7, %c0_8] : memref<512x128xf32, #tpu.memory_space<vmem>>, vector<512x128xf32>
      tpu.vector_store %arg10[%c0_7, %c0_8], %22 {strides = array<i32>} : memref<512x128xf32, #tpu.memory_space<vmem>>, vector<512x128xf32>,
    } else {
    }
    %c1_i32 = arith.constant 1 : i32
    %8 = arith.cmpi eq, %arg2, %c1_i32 : i32
    %9 = arith.extui %8 : i1 to i32
    %c0_i32_2 = arith.constant 0 : i32
    %10 = arith.cmpi ne, %9, %c0_i32_2 : i32
    scf.if %10 {
      %c0 = arith.constant 0 : index
      %c0_3 = arith.constant 0 : index
      %11 = vector.load %arg10[%c0, %c0_3] : memref<512x128xf32, #tpu.memory_space<vmem>>, vector<512x128xf32>
      %c0_4 = arith.constant 0 : index
      %c0_5 = arith.constant 0 : index
      %12 = vector.load %arg7[%c0_4, %c0_5] : memref<1x128xf32, #tpu.memory_space<vmem>>, vector<1x128xf32>
      %13 = vector.broadcast %12 : vector<1x128xf32> to vector<512x128xf32>
      %14 = arith.addf %11, %13 : vector<512x128xf32>
      %cst = arith.constant 0.000000e+00 : f32
      %15 = vector.broadcast %cst : f32 to vector<512x128xf32>
      %16 = arith.maximumf %14, %15 : vector<512x128xf32>
      %17 = arith.truncf %16 : vector<512x128xf32> to vector<512x128xbf16>
      %c0_6 = arith.constant 0 : index
      %c0_7 = arith.constant 0 : index
      %18 = vector.load %arg8[%c0_6, %c0_7] : memref<128x128xbf16, #tpu.memory_space<vmem>>, vector<128x128xbf16>
      %cst_8 = arith.constant dense<0.000000e+00> : vector<512x128xf32>
      %19 = tpu.matmul %17, %18, %cst_8 {dimension_numbers = #tpu.dot_dimension_numbers<[1], [0], [0], [1], [0, 0, 1, 1], [], []>} : vector<512x128xbf16>, vector<128x128xbf16>, vector<512x128xf32> -> vector<512x128xf32>
      %20 = arith.truncf %19 : vector<512x128xf32> to vector<512x128xbf16>
      %c0_9 = arith.constant 0 : index
      %c0_10 = arith.constant 0 : index
      %21 = vector.load %arg9[%c0_9, %c0_10] : memref<512x128xbf16, #tpu.memory_space<vmem>>, vector<512x128xbf16>
      tpu.vector_store %arg9[%c0_9, %c0_10], %20 {strides = array<i32>} : memref<512x128xbf16, #tpu.memory_space<vmem>>, vector<512x128xbf16>,
    } else {
    }
    return
  }
  func.func @transform_0(%arg0: i32, %arg1: i32, %arg2: i32, %arg3: memref<4xi32, #tpu.memory_space<smem>>, %arg4: memref<2xi32, #tpu.memory_space<smem>>) -> (i32, i32) {
    %c2_i32 = arith.constant 2 : i32
    %0 = arith.muli %arg0, %c2_i32 : i32
    %1 = arith.addi %0, %arg2 : i32
    %2 = arith.index_cast %1 : i32 to index
    %3 = memref.load %arg3[%2] : memref<4xi32, #tpu.memory_space<smem>>
    %c0_i32 = arith.constant 0 : i32
    return %arg0, %3 : i32, i32
  }
  func.func @transform_1(%arg0: i32, %arg1: i32, %arg2: i32, %arg3: memref<4xi32, #tpu.memory_space<smem>>, %arg4: memref<2xi32, #tpu.memory_space<smem>>) -> (i32, i32) {
    %c0_i32 = arith.constant 0 : i32
    %c0_i32_0 = arith.constant 0 : i32
    return %c0_i32, %arg1 : i32, i32
  }
  func.func @transform_2(%arg0: i32, %arg1: i32, %arg2: i32, %arg3: memref<4xi32, #tpu.memory_space<smem>>, %arg4: memref<2xi32, #tpu.memory_space<smem>>) -> (i32, i32) {
    %c0_i32 = arith.constant 0 : i32
    %c0_i32_0 = arith.constant 0 : i32
    return %c0_i32, %arg1 : i32, i32
  }
  func.func @transform_3(%arg0: i32, %arg1: i32, %arg2: i32, %arg3: memref<4xi32, #tpu.memory_space<smem>>, %arg4: memref<2xi32, #tpu.memory_space<smem>>) -> (i32, i32) {
    %c0_i32 = arith.constant 0 : i32
    %c0_i32_0 = arith.constant 0 : i32
    %c0_i32_1 = arith.constant 0 : i32
    return %c0_i32, %c0_i32_0 : i32, i32
  }
  func.func @transform_4(%arg0: i32, %arg1: i32, %arg2: i32, %arg3: memref<4xi32, #tpu.memory_space<smem>>, %arg4: memref<2xi32, #tpu.memory_space<smem>>) -> (i32, i32) {
    %c0_i32 = arith.constant 0 : i32
    %c0_i32_0 = arith.constant 0 : i32
    return %arg0, %c0_i32 : i32, i32
  }
}

module attributes {stable_mosaic.version = 11 : i64} {
  func.func @kernel(%arg0: i32, %arg1: i32, %arg2: i32, %arg3: memref<4xi32, #tpu.memory_space<smem>>, %arg4: memref<2xi32, #tpu.memory_space<smem>>, %arg5: memref<512x512xbf16, #tpu.memory_space<vmem>>, %arg6: memref<1024x128xbf16, #tpu.memory_space<vmem>>, %arg7: memref<1x128xf32, #tpu.memory_space<vmem>>, %arg8: memref<512x128xf32, #tpu.memory_space<vmem>>, %arg9: memref<512x128xf32, #tpu.memory_space<vmem>>) attributes {dimension_semantics = [#tpu.dimension_semantics<parallel>, #tpu.dimension_semantics<parallel>, #tpu.dimension_semantics<arbitrary>], iteration_bounds = array<i64: 2, 1, 2>, scalar_prefetch = 2 : i64, scratch_operands = 1 : i64, tpu.core_type = #tpu.core_type<tc>, window_params = [{transform_indices = @transform_0, window_bounds = array<i64: 512, 512>}, {transform_indices = @transform_1, window_bounds = array<i64: 1024, 128>}, {transform_indices = @transform_2, window_bounds = array<i64: 1, 128>}, {transform_indices = @transform_3, window_bounds = array<i64: 512, 128>}]} {
    %c0_i32 = arith.constant 0 : i32
    %0 = arith.cmpi eq, %arg2, %c0_i32 : i32
    %1 = arith.extui %0 : i1 to i32
    %c0_i32_0 = arith.constant 0 : i32
    %2 = arith.cmpi ne, %1, %c0_i32_0 : i32
    scf.if %2 {
      %cst = arith.constant 0.000000e+00 : f32
      %11 = vector.broadcast %cst : f32 to vector<512x128xf32>
      %c0 = arith.constant 0 : index
      %c0_3 = arith.constant 0 : index
      %12 = vector.load %arg9[%c0, %c0_3] : memref<512x128xf32, #tpu.memory_space<vmem>>, vector<512x128xf32>
      tpu.vector_store %arg9[%c0, %c0_3], %11 {strides = array<i32>} : memref<512x128xf32, #tpu.memory_space<vmem>>, vector<512x128xf32>,
    } else {
    }
    %3 = arith.index_cast %arg0 : i32 to index
    %4 = memref.load %arg4[%3] : memref<2xi32, #tpu.memory_space<smem>>
    %5 = arith.cmpi slt, %arg2, %4 : i32
    %6 = arith.extui %5 : i1 to i32
    %c0_i32_1 = arith.constant 0 : i32
    %7 = arith.cmpi ne, %6, %c0_i32_1 : i32
    scf.if %7 {
      %c2_i32 = arith.constant 2 : i32
      %11 = arith.muli %arg0, %c2_i32 : i32
      %12 = arith.addi %11, %arg2 : i32
      %13 = arith.index_cast %12 : i32 to index
      %14 = memref.load %arg3[%13] : memref<4xi32, #tpu.memory_space<smem>>
      %c512_i32 = arith.constant 512 : i32
      %15 = arith.muli %14, %c512_i32 : i32
      %16 = tpu.assume_multiple %15, 512 : i32
      %17 = arith.index_cast %16 : i32 to index
      %c0 = arith.constant 0 : index
      %18 = vector.load %arg6[%17, %c0] : memref<1024x128xbf16, #tpu.memory_space<vmem>>, vector<512x128xbf16>
      %c0_3 = arith.constant 0 : index
      %c0_4 = arith.constant 0 : index
      %19 = vector.load %arg9[%c0_3, %c0_4] : memref<512x128xf32, #tpu.memory_space<vmem>>, vector<512x128xf32>
      %c0_5 = arith.constant 0 : index
      %c0_6 = arith.constant 0 : index
      %20 = vector.load %arg5[%c0_5, %c0_6] : memref<512x512xbf16, #tpu.memory_space<vmem>>, vector<512x512xbf16>
      %cst = arith.constant dense<0.000000e+00> : vector<512x128xf32>
      %21 = tpu.matmul %20, %18, %cst {dimension_numbers = #tpu.dot_dimension_numbers<[1], [0], [0], [1], [0, 0, 1, 1], [], []>} : vector<512x512xbf16>, vector<512x128xbf16>, vector<512x128xf32> -> vector<512x128xf32>
      %22 = arith.addf %19, %21 : vector<512x128xf32>
      %c0_7 = arith.constant 0 : index
      %c0_8 = arith.constant 0 : index
      %23 = vector.load %arg9[%c0_7, %c0_8] : memref<512x128xf32, #tpu.memory_space<vmem>>, vector<512x128xf32>
      tpu.vector_store %arg9[%c0_7, %c0_8], %22 {strides = array<i32>} : memref<512x128xf32, #tpu.memory_space<vmem>>, vector<512x128xf32>,
    } else {
    }
    %c1_i32 = arith.constant 1 : i32
    %8 = arith.cmpi eq, %arg2, %c1_i32 : i32
    %9 = arith.extui %8 : i1 to i32
    %c0_i32_2 = arith.constant 0 : i32
    %10 = arith.cmpi ne, %9, %c0_i32_2 : i32
    scf.if %10 {
      %c0 = arith.constant 0 : index
      %c0_3 = arith.constant 0 : index
      %11 = vector.load %arg9[%c0, %c0_3] : memref<512x128xf32, #tpu.memory_space<vmem>>, vector<512x128xf32>
      %c0_4 = arith.constant 0 : index
      %c0_5 = arith.constant 0 : index
      %12 = vector.load %arg7[%c0_4, %c0_5] : memref<1x128xf32, #tpu.memory_space<vmem>>, vector<1x128xf32>
      %13 = vector.broadcast %12 : vector<1x128xf32> to vector<512x128xf32>
      %14 = arith.addf %11, %13 : vector<512x128xf32>
      %c0_6 = arith.constant 0 : index
      %c0_7 = arith.constant 0 : index
      %15 = vector.load %arg8[%c0_6, %c0_7] : memref<512x128xf32, #tpu.memory_space<vmem>>, vector<512x128xf32>
      tpu.vector_store %arg8[%c0_6, %c0_7], %14 {strides = array<i32>} : memref<512x128xf32, #tpu.memory_space<vmem>>, vector<512x128xf32>,
    } else {
    }
    return
  }
  func.func @transform_0(%arg0: i32, %arg1: i32, %arg2: i32, %arg3: memref<4xi32, #tpu.memory_space<smem>>, %arg4: memref<2xi32, #tpu.memory_space<smem>>) -> (i32, i32) {
    %c2_i32 = arith.constant 2 : i32
    %0 = arith.muli %arg0, %c2_i32 : i32
    %1 = arith.addi %0, %arg2 : i32
    %2 = arith.index_cast %1 : i32 to index
    %3 = memref.load %arg3[%2] : memref<4xi32, #tpu.memory_space<smem>>
    %c0_i32 = arith.constant 0 : i32
    return %arg0, %3 : i32, i32
  }
  func.func @transform_1(%arg0: i32, %arg1: i32, %arg2: i32, %arg3: memref<4xi32, #tpu.memory_space<smem>>, %arg4: memref<2xi32, #tpu.memory_space<smem>>) -> (i32, i32) {
    %c0_i32 = arith.constant 0 : i32
    %c0_i32_0 = arith.constant 0 : i32
    return %c0_i32, %arg1 : i32, i32
  }
  func.func @transform_2(%arg0: i32, %arg1: i32, %arg2: i32, %arg3: memref<4xi32, #tpu.memory_space<smem>>, %arg4: memref<2xi32, #tpu.memory_space<smem>>) -> (i32, i32) {
    %c0_i32 = arith.constant 0 : i32
    %c0_i32_0 = arith.constant 0 : i32
    return %c0_i32, %arg1 : i32, i32
  }
  func.func @transform_3(%arg0: i32, %arg1: i32, %arg2: i32, %arg3: memref<4xi32, #tpu.memory_space<smem>>, %arg4: memref<2xi32, #tpu.memory_space<smem>>) -> (i32, i32) {
    %c0_i32 = arith.constant 0 : i32
    return %arg0, %arg1 : i32, i32
  }
}

module attributes {stable_mosaic.version = 11 : i64} {
  func.func @_matmul_kernel_single(%arg0: i32, %arg1: i32, %arg2: memref<512x128xbf16, #tpu.memory_space<vmem>>, %arg3: memref<128x128xbf16, #tpu.memory_space<vmem>>, %arg4: memref<512x128xbf16, #tpu.memory_space<vmem>>) attributes {dimension_semantics = [#tpu.dimension_semantics<parallel>, #tpu.dimension_semantics<parallel>], iteration_bounds = array<i64: 2, 1>, scalar_prefetch = 0 : i64, scratch_operands = 0 : i64, tpu.core_type = #tpu.core_type<tc>, window_params = [{transform_indices = @transform_0, window_bounds = array<i64: 512, 128>}, {transform_indices = @transform_1, window_bounds = array<i64: 128, 128>}, {transform_indices = @transform_2, window_bounds = array<i64: 512, 128>}]} {
    %c0 = arith.constant 0 : index
    %c0_0 = arith.constant 0 : index
    %0 = vector.load %arg2[%c0, %c0_0] : memref<512x128xbf16, #tpu.memory_space<vmem>>, vector<512x128xbf16>
    %c0_1 = arith.constant 0 : index
    %c0_2 = arith.constant 0 : index
    %1 = vector.load %arg3[%c0_1, %c0_2] : memref<128x128xbf16, #tpu.memory_space<vmem>>, vector<128x128xbf16>
    %cst = arith.constant dense<0.000000e+00> : vector<512x128xf32>
    %2 = tpu.matmul %0, %1, %cst {dimension_numbers = #tpu.dot_dimension_numbers<[1], [0], [0], [1], [0, 0, 1, 1], [], []>} : vector<512x128xbf16>, vector<128x128xbf16>, vector<512x128xf32> -> vector<512x128xf32>
    %3 = arith.truncf %2 : vector<512x128xf32> to vector<512x128xbf16>
    %c0_3 = arith.constant 0 : index
    %c0_4 = arith.constant 0 : index
    %4 = vector.load %arg4[%c0_3, %c0_4] : memref<512x128xbf16, #tpu.memory_space<vmem>>, vector<512x128xbf16>
    tpu.vector_store %arg4[%c0_3, %c0_4], %3 {strides = array<i32>} : memref<512x128xbf16, #tpu.memory_space<vmem>>, vector<512x128xbf16>,
    return
  }
  func.func @transform_0(%arg0: i32, %arg1: i32) -> (i32, i32) {
    %c0_i32 = arith.constant 0 : i32
    %c0_i32_0 = arith.constant 0 : i32
    return %arg0, %c0_i32 : i32, i32
  }
  func.func @transform_1(%arg0: i32, %arg1: i32) -> (i32, i32) {
    %c0_i32 = arith.constant 0 : i32
    %c0_i32_0 = arith.constant 0 : i32
    return %c0_i32, %arg1 : i32, i32
  }
  func.func @transform_2(%arg0: i32, %arg1: i32) -> (i32, i32) {
    %c0_i32 = arith.constant 0 : i32
    return %arg0, %arg1 : i32, i32
  }
}

</mosaic_0001>

<bundles_post_ra>
// kernel: gcn_forward.3
= control target key start
LH: loop header
LB: loop body
LE: loop exit
PB: predicated region body
PF: predicated region fallthrough
CT: control target
= control target key end

     0   :  { %s1814_s9 = smov 0   ;;  %s1816_s10 = smov 0   ;;  %s1946_s0 = inlined_call_operand.vmem [shape: bf16[1024,128], index: 0, kind: input, shape index: {}]   ;;  %s1947_s1 = inlined_call_operand.vmem [shape: bf16[128,128], index: 1, kind: input, shape index: {}]   ;;  %s1948_s2 = inlined_call_operand.vmem [shape: bf16[1024,128], index: 2, kind: output, shape index: {}]  }
   0x1   :  { %s1818_s11 = smov 0  }
   0x2 LB: > { %s24_s12 = sadd.s32 1, %s1793_s10  ;;  %p1209_p0 = scmp.ge.s32.totalorder %s1797_s11, 1  ;;  %s1797_s11 = sphi %s1818_s11, %s12_s11   ;;  %s1793_s10 = sphi %s1816_s10, %s1950_s10   ;;  %s1789_s9 = sphi %s1814_s9, %s1949_s9  }
   0x3   : > { %p26_p1 = scmp.ge.s32.totalorder %s24_s12, 2  ;;  %p136_p2 = scmp.lt.s32.totalorder %s1797_s11, 3 }
   0x5   : > { %s1952_s12 = smov (%p26_p1, %s24_s12), 0  ;;  %p137_p3 = pnand %p1209_p0, %p136_p2 }
   0x6   : > { %s1210_s15 = sshll.u32 (!%p137_p3), %s1789_s9, 6 }
   0x7   : > { %140 = sbr.rel (%p137_p3) target bundleno = 303 (0x12f), region = 28  ;;  %p166_p4 = scmp.lt.s32.totalorder (!%p137_p3), %s1210_s15, 127 }
   0xc   : > { %v1735_v0 = vld [vmem:[%s1947_s1 + $0x38] sm:$0xff]   ;;  %v1736_v1 = vld [vmem:[%s1947_s1 + $0x30] sm:$0xff]   ;;  %s1954_s15 = smov (!%p166_p4, %s1210_s15), 127  ;;  %v1737_v2 = vld [vmem:[%s1947_s1 + $0x28] sm:$0xff]  }
   0xd   : > { %1615 = vmatprep.subr.bf16.mxu0 %v1735_v0  ;;  %1695 = vmatprep.subr.bf16.mxu1 %v1735_v0  ;;  %s1211_s20 = sshll.u32 %s1954_s15, 2  ;;  %v1738_v3 = vld [vmem:[%s1947_s1 + $0x20] sm:$0xff]   ;;  %v1739_v6 = vld [vmem:[%s1947_s1 + $0x18] sm:$0xff]   ;;  %v1740_v7 = vld [vmem:[%s1947_s1 + $0x10] sm:$0xff]  }
   0xe   : > { %1616 = vmatpush3.bf16.msra.mxu0 %v1735_v0  ;;  %1703 = vmatpush3.bf16.msra.mxu1 %v1735_v0  ;;  %s1849_s23 = scalar_lea.vmem %s1946_s0, %s1211_s20  ;;  %v1741_v8 = vld [vmem:[%s1947_s1 + $0x8] sm:$0xff]   ;;  %v1742_v9 = vld [vmem:[%s1947_s1] sm:$0xff]   ;;  %s1903_s8 = scalar_lea.vmem %s1948_s2, %s1211_s20 }
   0xf   : > { %1617 = vmatprep.subr.bf16.mxu0 %v1736_v1  ;;  %1696 = vmatprep.subr.bf16.mxu1 %v1736_v1  ;;  %v1743_v4 = vld [vmem:[%s1849_s23] sm:$0xff]   ;;  %v1745_v10 = vld [vmem:[%s1849_s23 + $0x8] sm:$0xff]   ;;  %v1747_v12 = vld [vmem:[%s1849_s23 + $0x10] sm:$0xff]  }
  0x10   : > { %v1744_v5 = vld [vmem:[%s1849_s23 + $0x80] sm:$0xff]   ;;  %1631 = vmatprep.mubr.bf16.mxu0 %v1743_v4  ;;  %v1746_v11 = vld [vmem:[%s1849_s23 + $0x88] sm:$0xff]   ;;  %v1748_v13 = vld [vmem:[%s1849_s23 + $0x90] sm:$0xff]  }
  0x11   : > { %1663 = vmatprep.mubr.bf16.mxu1 %v1744_v5  ;;  %v1749_v14 = vld [vmem:[%s1849_s23 + $0x18] sm:$0xff]   ;;  %v1751_v16 = vld [vmem:[%s1849_s23 + $0x20] sm:$0xff]   ;;  %v1753_v18 = vld [vmem:[%s1849_s23 + $0x28] sm:$0xff]  }
  0x12   : > { %1618 = vmatpush3.bf16.msra.mxu0 %v1736_v1  ;;  %1704 = vmatpush3.bf16.msra.mxu1 %v1736_v1  ;;  %v1750_v15 = vld [vmem:[%s1849_s23 + $0x98] sm:$0xff]   ;;  %v1752_v17 = vld [vmem:[%s1849_s23 + $0xa0] sm:$0xff]   ;;  %v1754_v19 = vld [vmem:[%s1849_s23 + $0xa8] sm:$0xff]  }
  0x13   : > { %1619 = vmatprep.subr.bf16.mxu0 %v1737_v2  ;;  %1697 = vmatprep.subr.bf16.mxu1 %v1737_v2  ;;  %v1755_v20 = vld [vmem:[%s1849_s23 + $0x30] sm:$0xff]   ;;  %v1757_v22 = vld [vmem:[%s1849_s23 + $0x38] sm:$0xff]   ;;  %v1759_v24 = vld [vmem:[%s1849_s23 + $0x40] sm:$0xff]  }
  0x14   : > { %v1756_v21 = vld [vmem:[%s1849_s23 + $0xb0] sm:$0xff]   ;;  %v1758_v23 = vld [vmem:[%s1849_s23 + $0xb8] sm:$0xff]   ;;  %v1760_v25 = vld [vmem:[%s1849_s23 + $0xc0] sm:$0xff]  }
  0x15   : > { %v1761_v26 = vld [vmem:[%s1849_s23 + $0x48] sm:$0xff]   ;;  %v1763_v28 = vld [vmem:[%s1849_s23 + $0x50] sm:$0xff]   ;;  %v1765_v30 = vld [vmem:[%s1849_s23 + $0x58] sm:$0xff]  }
  0x16   : > { %1620 = vmatpush3.bf16.msra.mxu0 %v1737_v2  ;;  %1705 = vmatpush3.bf16.msra.mxu1 %v1737_v2  ;;  %v1762_v27 = vld [vmem:[%s1849_s23 + $0xc8] sm:$0xff]   ;;  %v1764_v29 = vld [vmem:[%s1849_s23 + $0xd0] sm:$0xff]   ;;  %v1766_v31 = vld [vmem:[%s1849_s23 + $0xd8] sm:$0xff]  }
  0x17   : > { %1621 = vmatprep.subr.bf16.mxu0 %v1738_v3  ;;  %1698 = vmatprep.subr.bf16.mxu1 %v1738_v3  ;;  %v1767_v32 = vld [vmem:[%s1849_s23 + $0x60] sm:$0xff]   ;;  %v1769_v34 = vld [vmem:[%s1849_s23 + $0x68] sm:$0xff]   ;;  %v1771_v36 = vld [vmem:[%s1849_s23 + $0x70] sm:$0xff]  }
  0x18   : > { %v1768_v33 = vld [vmem:[%s1849_s23 + $0xe0] sm:$0xff]   ;;  %v1770_v35 = vld [vmem:[%s1849_s23 + $0xe8] sm:$0xff]   ;;  %v1772_v37 = vld [vmem:[%s1849_s23 + $0xf0] sm:$0xff]  }
  0x19   : > { %v1773_v38 = vld [vmem:[%s1849_s23 + $0x78] sm:$0xff]  }
  0x1a   : > { %1622 = vmatpush3.bf16.msra.mxu0 %v1738_v3  ;;  %1706 = vmatpush3.bf16.msra.mxu1 %v1738_v3  ;;  %v1774_v39 = vld [vmem:[%s1849_s23 + $0xf8] sm:$0xff]  }
  0x1b   : > { %1623 = vmatprep.subr.bf16.mxu0 %v1739_v6  ;;  %1699 = vmatprep.subr.bf16.mxu1 %v1739_v6 }
  0x1e   : > { %1624 = vmatpush3.bf16.msra.mxu0 %v1739_v6  ;;  %1707 = vmatpush3.bf16.msra.mxu1 %v1739_v6 }
  0x1f   : > { %1625 = vmatprep.subr.bf16.mxu0 %v1740_v7  ;;  %1700 = vmatprep.subr.bf16.mxu1 %v1740_v7 }
  0x22   : > { %1626 = vmatpush3.bf16.msra.mxu0 %v1740_v7  ;;  %1708 = vmatpush3.bf16.msra.mxu1 %v1740_v7 }
  0x23   : > { %1627 = vmatprep.subr.bf16.mxu0 %v1741_v8  ;;  %1701 = vmatprep.subr.bf16.mxu1 %v1741_v8 }
  0x26   : > { %1628 = vmatpush3.bf16.msra.mxu0 %v1741_v8  ;;  %1709 = vmatpush3.bf16.msra.mxu1 %v1741_v8 }
  0x27   : > { %1629 = vmatprep.subr.bf16.mxu0 %v1742_v9  ;;  %1702 = vmatprep.subr.bf16.mxu1 %v1742_v9 }
  0x2a   : > { %1630 = vmatpush3.bf16.msra.mxu0 %v1742_v9  ;;  %1710 = vmatpush3.bf16.msra.mxu1 %v1742_v9 }
  0x2d   : > { %1632 = vmatmul.mubr.bf16.vlgmr.msra.gmra.mxu0 %v1745_v10  ;;  %1664 = vmatmul.mubr.bf16.vlgmr.msra.gmra.mxu1 %v1746_v11 }
  0x2e   : > { %1635 = vmatprep.mubr.bf16.mxu0 %v1747_v12  ;;  %1667 = vmatprep.mubr.bf16.mxu1 %v1748_v13 }
  0x35   : > { %1636 = vmatmul.mubr.bf16.gmra.mxu0 %v1749_v14  ;;  %1668 = vmatmul.mubr.bf16.gmra.mxu1 %v1750_v15 }
  0x36   : > { %1639 = vmatprep.mubr.bf16.mxu0 %v1751_v16  ;;  %1671 = vmatprep.mubr.bf16.mxu1 %v1752_v17 }
  0x3d   : > { %1640 = vmatmul.mubr.bf16.gmra.mxu0 %v1753_v18  ;;  %1672 = vmatmul.mubr.bf16.gmra.mxu1 %v1754_v19 }
  0x3e   : > { %1643 = vmatprep.mubr.bf16.mxu0 %v1755_v20  ;;  %1675 = vmatprep.mubr.bf16.mxu1 %v1756_v21 }
  0x45   : > { %1644 = vmatmul.mubr.bf16.gmra.mxu0 %v1757_v22  ;;  %1676 = vmatmul.mubr.bf16.gmra.mxu1 %v1758_v23 }
  0x46   : > { %1647 = vmatprep.mubr.bf16.mxu0 %v1759_v24  ;;  %1679 = vmatprep.mubr.bf16.mxu1 %v1760_v25 }
  0x4d   : > { %1648 = vmatmul.mubr.bf16.gmra.mxu0 %v1761_v26  ;;  %1680 = vmatmul.mubr.bf16.gmra.mxu1 %v1762_v27 }
  0x4e   : > { %1651 = vmatprep.mubr.bf16.mxu0 %v1763_v28  ;;  %1683 = vmatprep.mubr.bf16.mxu1 %v1764_v29 }
  0x55   : > { %1652 = vmatmul.mubr.bf16.gmra.mxu0 %v1765_v30  ;;  %1684 = vmatmul.mubr.bf16.gmra.mxu1 %v1766_v31 }
  0x56   : > { %1655 = vmatprep.mubr.bf16.mxu0 %v1767_v32  ;;  %1687 = vmatprep.mubr.bf16.mxu1 %v1768_v33 }
  0x5d   : > { %1656 = vmatmul.mubr.bf16.gmra.mxu0 %v1769_v34  ;;  %1688 = vmatmul.mubr.bf16.gmra.mxu1 %v1770_v35 }
  0x5e   : > { %1659 = vmatprep.mubr.bf16.mxu0 %v1771_v36  ;;  %1691 = vmatprep.mubr.bf16.mxu1 %v1772_v37 }
  0x65   : > { %1660 = vmatmul.mubr.bf16.gmra.mxu0 %v1773_v38  ;;  %1692 = vmatmul.mubr.bf16.gmra.mxu1 %v1774_v39 }
  0xed   : > { %v1633_v40 = vpop.f32.mrf.mxu0  ;;  %v1665_v41 = vpop.f32.mrf.mxu1 }
  0xef   : > { %v539_v42 = vpop.f32.mrf.mxu0  ;;  %v667_v43 = vpop.f32.mrf.mxu1 }
  0xf1   : > { %v1634_v44 = vpop.f32.mrf.mxu0  ;;  %v1666_v45 = vpop.f32.mrf.mxu1 }
  0xf2   : > { %v1392_v46 = vpack.c.bf16 %v1634_v44, %v1633_v40  ;;  %v1472_v47 = vpack.c.bf16 %v1666_v45, %v1665_v41 }
  0xf3   : > { %v542_v48 = vpop.f32.mrf.mxu0  ;;  %v670_v49 = vpop.f32.mrf.mxu1 }
  0xf4   : > { %1544 = vst [vmem:[%s1903_s8 + $0x8] sm:$0xff] %v1392_v46   ;;  %1560 = vst [vmem:[%s1903_s8 + $0x88] sm:$0xff] %v1472_v47   ;;  %v1387_v50 = vpack.c.bf16 %v542_v48, %v539_v42  ;;  %v1467_v51 = vpack.c.bf16 %v670_v49, %v667_v43 }
  0xf5   : > { %v1637_v52 = vpop.f32.mrf.mxu0  ;;  %v1669_v53 = vpop.f32.mrf.mxu1 }
  0xf6   : > { %1388 = vst [vmem:[%s1903_s8] sm:$0xff] %v1387_v50   ;;  %1559 = vst [vmem:[%s1903_s8 + $0x80] sm:$0xff] %v1467_v51  }
  0xf7   : > { %v555_v54 = vpop.f32.mrf.mxu0  ;;  %v683_v55 = vpop.f32.mrf.mxu1 }
  0xf9   : > { %v1638_v56 = vpop.f32.mrf.mxu0  ;;  %v1670_v57 = vpop.f32.mrf.mxu1 }
  0xfa   : > { %v1402_v58 = vpack.c.bf16 %v1638_v56, %v1637_v52  ;;  %v1482_v59 = vpack.c.bf16 %v1670_v57, %v1669_v53 }
  0xfb   : > { %v558_v60 = vpop.f32.mrf.mxu0  ;;  %v686_v61 = vpop.f32.mrf.mxu1 }
  0xfc   : > { %1546 = vst [vmem:[%s1903_s8 + $0x18] sm:$0xff] %v1402_v58   ;;  %1562 = vst [vmem:[%s1903_s8 + $0x98] sm:$0xff] %v1482_v59   ;;  %v1397_v62 = vpack.c.bf16 %v558_v60, %v555_v54  ;;  %v1477_v63 = vpack.c.bf16 %v686_v61, %v683_v55 }
  0xfd   : > { %v1641_v0 = vpop.f32.mrf.mxu0  ;;  %v1673_v1 = vpop.f32.mrf.mxu1 }
  0xfe   : > { %1545 = vst [vmem:[%s1903_s8 + $0x10] sm:$0xff] %v1397_v62   ;;  %1561 = vst [vmem:[%s1903_s8 + $0x90] sm:$0xff] %v1477_v63  }
  0xff   : > { %v571_v2 = vpop.f32.mrf.mxu0  ;;  %v699_v3 = vpop.f32.mrf.mxu1 }
 0x101   : > { %v1642_v4 = vpop.f32.mrf.mxu0  ;;  %v1674_v5 = vpop.f32.mrf.mxu1 }
 0x102   : > { %v1412_v6 = vpack.c.bf16 %v1642_v4, %v1641_v0  ;;  %v1492_v7 = vpack.c.bf16 %v1674_v5, %v1673_v1 }
 0x103   : > { %v574_v8 = vpop.f32.mrf.mxu0  ;;  %v702_v9 = vpop.f32.mrf.mxu1 }
 0x104   : > { %1548 = vst [vmem:[%s1903_s8 + $0x28] sm:$0xff] %v1412_v6   ;;  %1564 = vst [vmem:[%s1903_s8 + $0xa8] sm:$0xff] %v1492_v7   ;;  %v1407_v10 = vpack.c.bf16 %v574_v8, %v571_v2  ;;  %v1487_v11 = vpack.c.bf16 %v702_v9, %v699_v3 }
 0x105   : > { %v1645_v12 = vpop.f32.mrf.mxu0  ;;  %v1677_v13 = vpop.f32.mrf.mxu1 }
 0x106   : > { %1547 = vst [vmem:[%s1903_s8 + $0x20] sm:$0xff] %v1407_v10   ;;  %1563 = vst [vmem:[%s1903_s8 + $0xa0] sm:$0xff] %v1487_v11  }
 0x107   : > { %v587_v14 = vpop.f32.mrf.mxu0  ;;  %v715_v15 = vpop.f32.mrf.mxu1 }
 0x109   : > { %v1646_v16 = vpop.f32.mrf.mxu0  ;;  %v1678_v17 = vpop.f32.mrf.mxu1 }
 0x10a   : > { %v1422_v18 = vpack.c.bf16 %v1646_v16, %v1645_v12  ;;  %v1502_v19 = vpack.c.bf16 %v1678_v17, %v1677_v13 }
 0x10b   : > { %v590_v20 = vpop.f32.mrf.mxu0  ;;  %v718_v21 = vpop.f32.mrf.mxu1 }
 0x10c   : > { %1550 = vst [vmem:[%s1903_s8 + $0x38] sm:$0xff] %v1422_v18   ;;  %1566 = vst [vmem:[%s1903_s8 + $0xb8] sm:$0xff] %v1502_v19   ;;  %v1417_v22 = vpack.c.bf16 %v590_v20, %v587_v14  ;;  %v1497_v23 = vpack.c.bf16 %v718_v21, %v715_v15 }
 0x10d   : > { %v1649_v24 = vpop.f32.mrf.mxu0  ;;  %v1681_v25 = vpop.f32.mrf.mxu1 }
 0x10e   : > { %1549 = vst [vmem:[%s1903_s8 + $0x30] sm:$0xff] %v1417_v22   ;;  %1565 = vst [vmem:[%s1903_s8 + $0xb0] sm:$0xff] %v1497_v23  }
 0x10f   : > { %v603_v26 = vpop.f32.mrf.mxu0  ;;  %v731_v27 = vpop.f32.mrf.mxu1 }
 0x111   : > { %v1650_v28 = vpop.f32.mrf.mxu0  ;;  %v1682_v29 = vpop.f32.mrf.mxu1 }
 0x112   : > { %v1432_v30 = vpack.c.bf16 %v1650_v28, %v1649_v24  ;;  %v1512_v31 = vpack.c.bf16 %v1682_v29, %v1681_v25 }
 0x113   : > { %v606_v32 = vpop.f32.mrf.mxu0  ;;  %v734_v33 = vpop.f32.mrf.mxu1 }
 0x114   : > { %1552 = vst [vmem:[%s1903_s8 + $0x48] sm:$0xff] %v1432_v30   ;;  %1568 = vst [vmem:[%s1903_s8 + $0xc8] sm:$0xff] %v1512_v31   ;;  %v1427_v34 = vpack.c.bf16 %v606_v32, %v603_v26  ;;  %v1507_v35 = vpack.c.bf16 %v734_v33, %v731_v27 }
 0x115   : > { %v1653_v36 = vpop.f32.mrf.mxu0  ;;  %v1685_v37 = vpop.f32.mrf.mxu1 }
 0x116   : > { %1551 = vst [vmem:[%s1903_s8 + $0x40] sm:$0xff] %v1427_v34   ;;  %1567 = vst [vmem:[%s1903_s8 + $0xc0] sm:$0xff] %v1507_v35  }
 0x117   : > { %v619_v38 = vpop.f32.mrf.mxu0  ;;  %v747_v39 = vpop.f32.mrf.mxu1 }
 0x119   : > { %v1654_v40 = vpop.f32.mrf.mxu0  ;;  %v1686_v41 = vpop.f32.mrf.mxu1 }
 0x11a   : > { %v1442_v42 = vpack.c.bf16 %v1654_v40, %v1653_v36  ;;  %v1522_v43 = vpack.c.bf16 %v1686_v41, %v1685_v37 }
 0x11b   : > { %v622_v44 = vpop.f32.mrf.mxu0  ;;  %v750_v45 = vpop.f32.mrf.mxu1 }
 0x11c   : > { %1554 = vst [vmem:[%s1903_s8 + $0x58] sm:$0xff] %v1442_v42   ;;  %1570 = vst [vmem:[%s1903_s8 + $0xd8] sm:$0xff] %v1522_v43   ;;  %v1437_v46 = vpack.c.bf16 %v622_v44, %v619_v38  ;;  %v1517_v47 = vpack.c.bf16 %v750_v45, %v747_v39 }
 0x11d   : > { %v1657_v48 = vpop.f32.mrf.mxu0  ;;  %v1689_v49 = vpop.f32.mrf.mxu1 }
 0x11e   : > { %1553 = vst [vmem:[%s1903_s8 + $0x50] sm:$0xff] %v1437_v46   ;;  %1569 = vst [vmem:[%s1903_s8 + $0xd0] sm:$0xff] %v1517_v47  }
 0x11f   : > { %v635_v50 = vpop.f32.mrf.mxu0  ;;  %v763_v51 = vpop.f32.mrf.mxu1 }
 0x121   : > { %v1658_v52 = vpop.f32.mrf.mxu0  ;;  %v1690_v53 = vpop.f32.mrf.mxu1 }
 0x122   : > { %v1452_v54 = vpack.c.bf16 %v1658_v52, %v1657_v48  ;;  %v1532_v55 = vpack.c.bf16 %v1690_v53, %v1689_v49 }
 0x123   : > { %v638_v56 = vpop.f32.mrf.mxu0  ;;  %v766_v57 = vpop.f32.mrf.mxu1 }
 0x124   : > { %1556 = vst [vmem:[%s1903_s8 + $0x68] sm:$0xff] %v1452_v54   ;;  %1572 = vst [vmem:[%s1903_s8 + $0xe8] sm:$0xff] %v1532_v55   ;;  %v1447_v58 = vpack.c.bf16 %v638_v56, %v635_v50  ;;  %v1527_v59 = vpack.c.bf16 %v766_v57, %v763_v51 }
 0x125   : > { %v1661_v60 = vpop.f32.mrf.mxu0  ;;  %v1693_v61 = vpop.f32.mrf.mxu1 }
 0x126   : > { %1555 = vst [vmem:[%s1903_s8 + $0x60] sm:$0xff] %v1447_v58   ;;  %1571 = vst [vmem:[%s1903_s8 + $0xe0] sm:$0xff] %v1527_v59  }
 0x127   : > { %v651_v62 = vpop.f32.mrf.mxu0  ;;  %v779_v63 = vpop.f32.mrf.mxu1 }
 0x129   : > { %v1662_v0 = vpop.f32.mrf.mxu0  ;;  %v1694_v1 = vpop.f32.mrf.mxu1 }
 0x12a   : > { %v1462_v2 = vpack.c.bf16 %v1662_v0, %v1661_v60  ;;  %v1542_v3 = vpack.c.bf16 %v1694_v1, %v1693_v61 }
 0x12b   : > { %v654_v4 = vpop.f32.mrf.mxu0  ;;  %v782_v5 = vpop.f32.mrf.mxu1 }
 0x12c   : > { %1558 = vst [vmem:[%s1903_s8 + $0x78] sm:$0xff] %v1462_v2   ;;  %1574 = vst [vmem:[%s1903_s8 + $0xf8] sm:$0xff] %v1542_v3   ;;  %v1457_v6 = vpack.c.bf16 %v654_v4, %v651_v62  ;;  %v1537_v7 = vpack.c.bf16 %v782_v5, %v779_v63 }
 0x12e   : > { %1557 = vst [vmem:[%s1903_s8 + $0x70] sm:$0xff] %v1457_v6   ;;  %1573 = vst [vmem:[%s1903_s8 + $0xf0] sm:$0xff] %v1537_v7  }
 0x12f PF: > { %s12_s11 = sadd.s32 1, %s1797_s11   ;;  %s1949_s9 = smov %s1793_s10 }
 0x130   : > { %p9_p5 = scmp.ge.s32.totalorder %s12_s11, 4   ;;  %s1950_s10 = smov %s1952_s12 }
 0x132   :  { %11 = sbr.rel (!%p9_p5) target bundleno = 2 (0x2), region = 61 }

// kernel: gcn_forward.5
= control target key start
LH: loop header
LB: loop body
LE: loop exit
PB: predicated region body
PF: predicated region fallthrough
CT: control target
= control target key end

     0   :  { %s4080_s0 = inlined_call_operand.vmem [shape: s32[4], index: 0, kind: input, shape index: {}]   ;;  %s4081_s2 = inlined_call_operand.vmem [shape: bf16[1024,1024], index: 2, kind: input, shape index: {}]   ;;  %s4082_s3 = inlined_call_operand.vmem [shape: bf16[1024,128], index: 3, kind: input, shape index: {}]   ;;  %s4083_s4 = inlined_call_operand.vmem [shape: f32[1,128], index: 4, kind: input, shape index: {}]   ;;  %s4084_s5 = inlined_call_operand.vmem [shape: f32[1024,128], index: 5, kind: output, shape index: {}]   ;;  %s4085_s1 = inlined_call_operand.vmem [shape: s32[2], index: 1, kind: input, shape index: {}]  }
   0x1   :  { %s10_s20 = sshll.u32 %s4080_s0, 4  ;;  %s14_s23 = sshll.u32 %s4085_s1, 4  ;;  %s11_s20 = int_to_ptr.vmem [resolvable:$true] %s10_s20  ;;  %s15_s23 = int_to_ptr.vmem [resolvable:$true] %s14_s23 }
   0x2   :  { %s3205_s24 = scalar_lea.vmem %s11_s20, 16  ;;  %p3210_p1 = scmp.lt.s32.totalorder %s11_s20, %s11_s20 }
   0x3   :  { %p3206_p0 = scmp.ne.s32.totalorder %s11_s20, %s3205_s24  ;;  %p3211_p2 = scmp.lt.s32.totalorder %s3205_s24, %s3205_s24 }
   0x5   :  { %p3212_p3 = por %p3211_p2, %p3210_p1 }
   0x7   :  { %p3213_p4 = pnand %p3212_p3, %p3206_p0 }
   0x9   :  { %3216 = shalt.err (!%p3213_p4)  }
   0xa   :  { %s3287_s25 = smov [#allocation4]   ;;  %s3217_s26 = scalar_lea.vmem %s15_s23, 16 }
   0xb   :  { %13 = dma.vmem_to_smem %s11_s20, 16, %s3287_s25, [#allocation3] }
   0xc   :  { %p3218_p5 = scmp.ne.s32.totalorder %s15_s23, %s3217_s26  ;;  %p3222_p6 = scmp.lt.s32.totalorder %s15_s23, %s15_s23 }
   0xd   :  { %p3223_p7 = scmp.lt.s32.totalorder %s3217_s26, %s3217_s26 }
   0xf   :  { %p3224_p8 = por %p3223_p7, %p3222_p6 }
  0x11   :  { %p3225_p9 = pnand %p3224_p8, %p3218_p5 }
  0x13   :  { %3228 = shalt.err (!%p3225_p9)  }
  0x14   :  { %s3288_s0 = smov [#allocation5]  }
  0x15   :  { %17 = dma.vmem_to_smem %s15_s23, 16, %s3288_s0, [#allocation3] }
  0x16   :  { %3257 = dma.done.wait [#allocation3], 32 }
  0x17   :  { %3258 = vsyncadd [#allocation3], 4294967264 }
  0x18   :  { %19 = sfence }
  0x19   :  { %s3327_s1 = smov 0   ;;  %s3329_s27 = smov 0  }
  0x1a   :  { %s3331_s28 = smov 0   ;;  %s3333_s29 = smov 0  }
  0x1b   :  { %s3335_s30 = smov 0   ;;  %s3337_s6 = smov 0  }
  0x1c   :  { %s3339_s7 = smov 0  }
  0x1d LB: > { %s37_s8 = sadd.s32 1, %s3277_s30  ;;  %s44_s9 = sadd.s32 1, %s3281_s6  ;;  %s3285_s7 = sphi %s3339_s7, %s25_s7   ;;  %s3281_s6 = sphi %s3337_s6, %s4091_s6   ;;  %s3277_s30 = sphi %s3335_s30, %s4090_s30   ;;  %s3273_s29 = sphi %s3333_s29, %s4089_s29   ;;  %s3269_s28 = sphi %s3331_s28, %s4088_s28   ;;  %s3265_s27 = sphi %s3329_s27, %s4087_s27   ;;  %s3261_s1 = sphi %s3327_s1, %s4086_s1  }
  0x1e   : > { %p38_p10 = scmp.ge.s32.totalorder %s37_s8, 2  ;;  %s2735_s10 = sshll.u32 %s3281_s6, 1 }
  0x1f   : > { %s49_s11 = sadd.s32 %s3277_s30, %s2735_s10  ;;  %p66_p11 = scmp.ne.s32.totalorder %s3265_s27, %s3261_s1 }
  0x20   : > { %s4093_s9 = smov (!%p38_p10, %s44_s9), %s3281_s6  ;;  %p67_p13 = scmp.eq.s32.totalorder %s3285_s7, 0 }
  0x21   : > { %p46_p12 = scmp.ge.s32.totalorder %s4093_s9, 2  ;;  %s4095_s8 = smov (%p38_p10, %s37_s8), 0 }
  0x22   : > { %p68_p0 = por %p67_p13, %p66_p11  ;;  %s50_s12 = sld [smem:[#allocation4 + %s49_s11]] }
  0x23   : > { %s4097_s9 = smov (%p46_p12, %s4093_s9), 0  ;;  %s59_s19 = sadd.s32 1, %s3265_s27 }
  0x24   : > { %s2736_s13 = sshll.u32 %s4097_s9, 1  ;;  %s54_s16 = ssub.s32 %s3281_s6, %s4097_s9 }
  0x25   : > { %s52_s14 = sadd.s32 %s2736_s13, %s4095_s8  ;;  %p2740_p2 = scmp.ge.s32.totalorder %s3285_s7, 4 }
  0x26   : > { %s53_s15 = sld [smem:[#allocation4 + %s52_s14]] }
  0x2c   : > { %s55_s17 = ssub.s32 %s50_s12, %s53_s15  ;;  %185 = sbr.rel (%p2740_p2) target bundleno = 124 (0x7c), region = 24 }
  0x2d   : > { %s56_s18 = sor.u32 %s55_s17, %s54_s16 }
  0x2e   : > { %p57_p1 = scmp.eq.s32.totalorder %s56_s18, 0 }
  0x30   : > { %s3380_s20 = scalar_select %p57_p1, %s3265_s27, %s59_s19  }
  0x31   : > { %188 = sbr.rel (!%p68_p0) target bundleno = 124 (0x7c), region = 28  ;;  %s195_s21 = sld [smem:[#allocation4 + %s49_s11]] (%p68_p0) }
  0x32   : > { %s190_s22 = sand.u32 (%p68_p0), 1, %s3265_s27   ;;  %s2920_s23 = sshll.u32 (%p68_p0), %s3281_s6, 9 }
  0x33   : > { %s2741_s24 = sshll.u32 (%p68_p0), %s190_s22, 10 }
  0x34   : > { %s3393_s11 = scalar_lea.vmem (%p68_p0), [#allocation6], %s2741_s24 }
  0x37   : > { %s2744_s25 = sshll.u32 %s195_s21, 2 }
  0x38   : > { %s199_s26 = sadd.s32 %s2920_s23, %s2744_s25 }
  0x39   : > { %s2746_s0 = sshll.u32 %s199_s26, 2 }
  0x3a   : > { %s3388_s13 = scalar_lea.vmem %s4081_s2, %s2746_s0 }
  0x3b   : > { %v214_v0 = vld [vmem:[%s3388_s13] sm:$0xff]  ;;  %v216_v1 = vld [vmem:[%s3388_s13 + $0x8] sm:$0xff] }
  0x3c   : > { %v218_v2 = vld [vmem:[%s3388_s13 + $0x20] sm:$0xff]  ;;  %215 = vst [vmem:[%s3393_s11] sm:$0xff] %v214_v0  ;;  %217 = vst [vmem:[%s3393_s11 + $0x8] sm:$0xff] %v216_v1  ;;  %v220_v3 = vld [vmem:[%s3388_s13 + $0x28] sm:$0xff] }
  0x3d   : > { %219 = vst [vmem:[%s3393_s11 + $0x10] sm:$0xff] %v218_v2  ;;  %v222_v4 = vld [vmem:[%s3388_s13 + $0x40] sm:$0xff]  ;;  %v224_v5 = vld [vmem:[%s3388_s13 + $0x48] sm:$0xff]  ;;  %221 = vst [vmem:[%s3393_s11 + $0x18] sm:$0xff] %v220_v3 }
  0x3e   : > { %223 = vst [vmem:[%s3393_s11 + $0x20] sm:$0xff] %v222_v4  ;;  %225 = vst [vmem:[%s3393_s11 + $0x28] sm:$0xff] %v224_v5  ;;  %v226_v6 = vld [vmem:[%s3388_s13 + $0x60] sm:$0xff]  ;;  %v228_v7 = vld [vmem:[%s3388_s13 + $0x68] sm:$0xff] }
  0x3f   : > { %v230_v8 = vld [vmem:[%s3388_s13 + $0x80] sm:$0xff]  ;;  %227 = vst [vmem:[%s3393_s11 + $0x30] sm:$0xff] %v226_v6  ;;  %229 = vst [vmem:[%s3393_s11 + $0x38] sm:$0xff] %v228_v7  ;;  %v232_v9 = vld [vmem:[%s3388_s13 + $0x88] sm:$0xff] }
  0x40   : > { %231 = vst [vmem:[%s3393_s11 + $0x40] sm:$0xff] %v230_v8  ;;  %v234_v10 = vld [vmem:[%s3388_s13 + $0xa0] sm:$0xff]  ;;  %v236_v11 = vld [vmem:[%s3388_s13 + $0xa8] sm:$0xff]  ;;  %233 = vst [vmem:[%s3393_s11 + $0x48] sm:$0xff] %v232_v9 }
  0x41   : > { %235 = vst [vmem:[%s3393_s11 + $0x50] sm:$0xff] %v234_v10  ;;  %237 = vst [vmem:[%s3393_s11 + $0x58] sm:$0xff] %v236_v11  ;;  %v238_v12 = vld [vmem:[%s3388_s13 + $0xc0] sm:$0xff]  ;;  %v240_v13 = vld [vmem:[%s3388_s13 + $0xc8] sm:$0xff] }
  0x42   : > { %v242_v14 = vld [vmem:[%s3388_s13 + $0xe0] sm:$0xff]  ;;  %239 = vst [vmem:[%s3393_s11 + $0x60] sm:$0xff] %v238_v12  ;;  %241 = vst [vmem:[%s3393_s11 + $0x68] sm:$0xff] %v240_v13  ;;  %v244_v15 = vld [vmem:[%s3388_s13 + $0xe8] sm:$0xff] }
  0x43   : > { %243 = vst [vmem:[%s3393_s11 + $0x70] sm:$0xff] %v242_v14  ;;  %v246_v16 = vld [vmem:[%s3388_s13 + $0x100] sm:$0xff]  ;;  %v248_v17 = vld [vmem:[%s3388_s13 + $0x108] sm:$0xff]  ;;  %245 = vst [vmem:[%s3393_s11 + $0x78] sm:$0xff] %v244_v15 }
  0x44   : > { %247 = vst [vmem:[%s3393_s11 + $0x80] sm:$0xff] %v246_v16  ;;  %249 = vst [vmem:[%s3393_s11 + $0x88] sm:$0xff] %v248_v17  ;;  %v250_v18 = vld [vmem:[%s3388_s13 + $0x120] sm:$0xff]  ;;  %v252_v19 = vld [vmem:[%s3388_s13 + $0x128] sm:$0xff] }
  0x45   : > { %v254_v20 = vld [vmem:[%s3388_s13 + $0x140] sm:$0xff]  ;;  %251 = vst [vmem:[%s3393_s11 + $0x90] sm:$0xff] %v250_v18  ;;  %253 = vst [vmem:[%s3393_s11 + $0x98] sm:$0xff] %v252_v19  ;;  %v256_v21 = vld [vmem:[%s3388_s13 + $0x148] sm:$0xff] }
  0x46   : > { %255 = vst [vmem:[%s3393_s11 + $0xa0] sm:$0xff] %v254_v20  ;;  %v258_v22 = vld [vmem:[%s3388_s13 + $0x160] sm:$0xff]  ;;  %v260_v23 = vld [vmem:[%s3388_s13 + $0x168] sm:$0xff]  ;;  %257 = vst [vmem:[%s3393_s11 + $0xa8] sm:$0xff] %v256_v21 }
  0x47   : > { %259 = vst [vmem:[%s3393_s11 + $0xb0] sm:$0xff] %v258_v22  ;;  %261 = vst [vmem:[%s3393_s11 + $0xb8] sm:$0xff] %v260_v23  ;;  %v262_v24 = vld [vmem:[%s3388_s13 + $0x180] sm:$0xff]  ;;  %v264_v25 = vld [vmem:[%s3388_s13 + $0x188] sm:$0xff] }
  0x48   : > { %v266_v26 = vld [vmem:[%s3388_s13 + $0x1a0] sm:$0xff]  ;;  %263 = vst [vmem:[%s3393_s11 + $0xc0] sm:$0xff] %v262_v24  ;;  %265 = vst [vmem:[%s3393_s11 + $0xc8] sm:$0xff] %v264_v25  ;;  %v268_v27 = vld [vmem:[%s3388_s13 + $0x1a8] sm:$0xff] }
  0x49   : > { %267 = vst [vmem:[%s3393_s11 + $0xd0] sm:$0xff] %v266_v26  ;;  %v270_v28 = vld [vmem:[%s3388_s13 + $0x1c0] sm:$0xff]  ;;  %v272_v29 = vld [vmem:[%s3388_s13 + $0x1c8] sm:$0xff]  ;;  %269 = vst [vmem:[%s3393_s11 + $0xd8] sm:$0xff] %v268_v27 }
  0x4a   : > { %271 = vst [vmem:[%s3393_s11 + $0xe0] sm:$0xff] %v270_v28  ;;  %273 = vst [vmem:[%s3393_s11 + $0xe8] sm:$0xff] %v272_v29  ;;  %v274_v30 = vld [vmem:[%s3388_s13 + $0x1e0] sm:$0xff]  ;;  %v276_v31 = vld [vmem:[%s3388_s13 + $0x1e8] sm:$0xff] }
  0x4b   : > { %v278_v32 = vld [vmem:[%s3388_s13 + $0x200] sm:$0xff]  ;;  %275 = vst [vmem:[%s3393_s11 + $0xf0] sm:$0xff] %v274_v30  ;;  %277 = vst [vmem:[%s3393_s11 + $0xf8] sm:$0xff] %v276_v31  ;;  %v280_v33 = vld [vmem:[%s3388_s13 + $0x208] sm:$0xff] }
  0x4c   : > { %279 = vst [vmem:[%s3393_s11 + $0x100] sm:$0xff] %v278_v32  ;;  %v282_v34 = vld [vmem:[%s3388_s13 + $0x220] sm:$0xff]  ;;  %v284_v35 = vld [vmem:[%s3388_s13 + $0x228] sm:$0xff]  ;;  %281 = vst [vmem:[%s3393_s11 + $0x108] sm:$0xff] %v280_v33 }
  0x4d   : > { %283 = vst [vmem:[%s3393_s11 + $0x110] sm:$0xff] %v282_v34  ;;  %285 = vst [vmem:[%s3393_s11 + $0x118] sm:$0xff] %v284_v35  ;;  %v286_v36 = vld [vmem:[%s3388_s13 + $0x240] sm:$0xff]  ;;  %v288_v37 = vld [vmem:[%s3388_s13 + $0x248] sm:$0xff] }
  0x4e   : > { %v290_v38 = vld [vmem:[%s3388_s13 + $0x260] sm:$0xff]  ;;  %287 = vst [vmem:[%s3393_s11 + $0x120] sm:$0xff] %v286_v36  ;;  %289 = vst [vmem:[%s3393_s11 + $0x128] sm:$0xff] %v288_v37  ;;  %v292_v39 = vld [vmem:[%s3388_s13 + $0x268] sm:$0xff] }
  0x4f   : > { %291 = vst [vmem:[%s3393_s11 + $0x130] sm:$0xff] %v290_v38  ;;  %v294_v40 = vld [vmem:[%s3388_s13 + $0x280] sm:$0xff]  ;;  %v296_v41 = vld [vmem:[%s3388_s13 + $0x288] sm:$0xff]  ;;  %293 = vst [vmem:[%s3393_s11 + $0x138] sm:$0xff] %v292_v39 }
  0x50   : > { %295 = vst [vmem:[%s3393_s11 + $0x140] sm:$0xff] %v294_v40  ;;  %297 = vst [vmem:[%s3393_s11 + $0x148] sm:$0xff] %v296_v41  ;;  %v298_v42 = vld [vmem:[%s3388_s13 + $0x2a0] sm:$0xff]  ;;  %v300_v43 = vld [vmem:[%s3388_s13 + $0x2a8] sm:$0xff] }
  0x51   : > { %v302_v44 = vld [vmem:[%s3388_s13 + $0x2c0] sm:$0xff]  ;;  %299 = vst [vmem:[%s3393_s11 + $0x150] sm:$0xff] %v298_v42  ;;  %301 = vst [vmem:[%s3393_s11 + $0x158] sm:$0xff] %v300_v43  ;;  %v304_v45 = vld [vmem:[%s3388_s13 + $0x2c8] sm:$0xff] }
  0x52   : > { %303 = vst [vmem:[%s3393_s11 + $0x160] sm:$0xff] %v302_v44  ;;  %v306_v46 = vld [vmem:[%s3388_s13 + $0x2e0] sm:$0xff]  ;;  %v308_v47 = vld [vmem:[%s3388_s13 + $0x2e8] sm:$0xff]  ;;  %305 = vst [vmem:[%s3393_s11 + $0x168] sm:$0xff] %v304_v45 }
  0x53   : > { %307 = vst [vmem:[%s3393_s11 + $0x170] sm:$0xff] %v306_v46  ;;  %309 = vst [vmem:[%s3393_s11 + $0x178] sm:$0xff] %v308_v47  ;;  %v310_v48 = vld [vmem:[%s3388_s13 + $0x300] sm:$0xff]  ;;  %v312_v49 = vld [vmem:[%s3388_s13 + $0x308] sm:$0xff] }
  0x54   : > { %v314_v50 = vld [vmem:[%s3388_s13 + $0x320] sm:$0xff]  ;;  %311 = vst [vmem:[%s3393_s11 + $0x180] sm:$0xff] %v310_v48  ;;  %313 = vst [vmem:[%s3393_s11 + $0x188] sm:$0xff] %v312_v49  ;;  %v316_v51 = vld [vmem:[%s3388_s13 + $0x328] sm:$0xff] }
  0x55   : > { %315 = vst [vmem:[%s3393_s11 + $0x190] sm:$0xff] %v314_v50  ;;  %v318_v52 = vld [vmem:[%s3388_s13 + $0x340] sm:$0xff]  ;;  %v320_v53 = vld [vmem:[%s3388_s13 + $0x348] sm:$0xff]  ;;  %317 = vst [vmem:[%s3393_s11 + $0x198] sm:$0xff] %v316_v51 }
  0x56   : > { %319 = vst [vmem:[%s3393_s11 + $0x1a0] sm:$0xff] %v318_v52  ;;  %321 = vst [vmem:[%s3393_s11 + $0x1a8] sm:$0xff] %v320_v53  ;;  %v322_v54 = vld [vmem:[%s3388_s13 + $0x360] sm:$0xff]  ;;  %v324_v55 = vld [vmem:[%s3388_s13 + $0x368] sm:$0xff] }
  0x57   : > { %v326_v56 = vld [vmem:[%s3388_s13 + $0x380] sm:$0xff]  ;;  %323 = vst [vmem:[%s3393_s11 + $0x1b0] sm:$0xff] %v322_v54  ;;  %325 = vst [vmem:[%s3393_s11 + $0x1b8] sm:$0xff] %v324_v55  ;;  %v328_v57 = vld [vmem:[%s3388_s13 + $0x388] sm:$0xff] }
  0x58   : > { %327 = vst [vmem:[%s3393_s11 + $0x1c0] sm:$0xff] %v326_v56  ;;  %v330_v58 = vld [vmem:[%s3388_s13 + $0x3a0] sm:$0xff]  ;;  %v332_v59 = vld [vmem:[%s3388_s13 + $0x3a8] sm:$0xff]  ;;  %329 = vst [vmem:[%s3393_s11 + $0x1c8] sm:$0xff] %v328_v57 }
  0x59   : > { %331 = vst [vmem:[%s3393_s11 + $0x1d0] sm:$0xff] %v330_v58  ;;  %333 = vst [vmem:[%s3393_s11 + $0x1d8] sm:$0xff] %v332_v59  ;;  %v334_v60 = vld [vmem:[%s3388_s13 + $0x3c0] sm:$0xff]  ;;  %v336_v61 = vld [vmem:[%s3388_s13 + $0x3c8] sm:$0xff] }
  0x5a   : > { %v338_v62 = vld [vmem:[%s3388_s13 + $0x3e0] sm:$0xff]  ;;  %335 = vst [vmem:[%s3393_s11 + $0x1e0] sm:$0xff] %v334_v60  ;;  %337 = vst [vmem:[%s3393_s11 + $0x1e8] sm:$0xff] %v336_v61  ;;  %v340_v63 = vld [vmem:[%s3388_s13 + $0x3e8] sm:$0xff] }
  0x5b   : > { %339 = vst [vmem:[%s3393_s11 + $0x1f0] sm:$0xff] %v338_v62  ;;  %v342_v0 = vld [vmem:[%s3388_s13 + $0x400] sm:$0xff]  ;;  %v344_v1 = vld [vmem:[%s3388_s13 + $0x408] sm:$0xff]  ;;  %341 = vst [vmem:[%s3393_s11 + $0x1f8] sm:$0xff] %v340_v63 }
  0x5c   : > { %343 = vst [vmem:[%s3393_s11 + $0x200] sm:$0xff] %v342_v0  ;;  %345 = vst [vmem:[%s3393_s11 + $0x208] sm:$0xff] %v344_v1  ;;  %v346_v2 = vld [vmem:[%s3388_s13 + $0x420] sm:$0xff]  ;;  %v348_v3 = vld [vmem:[%s3388_s13 + $0x428] sm:$0xff] }
  0x5d   : > { %v350_v4 = vld [vmem:[%s3388_s13 + $0x440] sm:$0xff]  ;;  %347 = vst [vmem:[%s3393_s11 + $0x210] sm:$0xff] %v346_v2  ;;  %349 = vst [vmem:[%s3393_s11 + $0x218] sm:$0xff] %v348_v3  ;;  %v352_v5 = vld [vmem:[%s3388_s13 + $0x448] sm:$0xff] }
  0x5e   : > { %351 = vst [vmem:[%s3393_s11 + $0x220] sm:$0xff] %v350_v4  ;;  %v354_v6 = vld [vmem:[%s3388_s13 + $0x460] sm:$0xff]  ;;  %v356_v7 = vld [vmem:[%s3388_s13 + $0x468] sm:$0xff]  ;;  %353 = vst [vmem:[%s3393_s11 + $0x228] sm:$0xff] %v352_v5 }
  0x5f   : > { %355 = vst [vmem:[%s3393_s11 + $0x230] sm:$0xff] %v354_v6  ;;  %357 = vst [vmem:[%s3393_s11 + $0x238] sm:$0xff] %v356_v7  ;;  %v358_v8 = vld [vmem:[%s3388_s13 + $0x480] sm:$0xff]  ;;  %v360_v9 = vld [vmem:[%s3388_s13 + $0x488] sm:$0xff] }
  0x60   : > { %v362_v10 = vld [vmem:[%s3388_s13 + $0x4a0] sm:$0xff]  ;;  %359 = vst [vmem:[%s3393_s11 + $0x240] sm:$0xff] %v358_v8  ;;  %361 = vst [vmem:[%s3393_s11 + $0x248] sm:$0xff] %v360_v9  ;;  %v364_v11 = vld [vmem:[%s3388_s13 + $0x4a8] sm:$0xff] }
  0x61   : > { %363 = vst [vmem:[%s3393_s11 + $0x250] sm:$0xff] %v362_v10  ;;  %v366_v12 = vld [vmem:[%s3388_s13 + $0x4c0] sm:$0xff]  ;;  %v368_v13 = vld [vmem:[%s3388_s13 + $0x4c8] sm:$0xff]  ;;  %365 = vst [vmem:[%s3393_s11 + $0x258] sm:$0xff] %v364_v11 }
  0x62   : > { %367 = vst [vmem:[%s3393_s11 + $0x260] sm:$0xff] %v366_v12  ;;  %369 = vst [vmem:[%s3393_s11 + $0x268] sm:$0xff] %v368_v13  ;;  %v370_v14 = vld [vmem:[%s3388_s13 + $0x4e0] sm:$0xff]  ;;  %v372_v15 = vld [vmem:[%s3388_s13 + $0x4e8] sm:$0xff] }
  0x63   : > { %v374_v16 = vld [vmem:[%s3388_s13 + $0x500] sm:$0xff]  ;;  %371 = vst [vmem:[%s3393_s11 + $0x270] sm:$0xff] %v370_v14  ;;  %373 = vst [vmem:[%s3393_s11 + $0x278] sm:$0xff] %v372_v15  ;;  %v376_v17 = vld [vmem:[%s3388_s13 + $0x508] sm:$0xff] }
  0x64   : > { %375 = vst [vmem:[%s3393_s11 + $0x280] sm:$0xff] %v374_v16  ;;  %v378_v18 = vld [vmem:[%s3388_s13 + $0x520] sm:$0xff]  ;;  %v380_v19 = vld [vmem:[%s3388_s13 + $0x528] sm:$0xff]  ;;  %377 = vst [vmem:[%s3393_s11 + $0x288] sm:$0xff] %v376_v17 }
  0x65   : > { %379 = vst [vmem:[%s3393_s11 + $0x290] sm:$0xff] %v378_v18  ;;  %381 = vst [vmem:[%s3393_s11 + $0x298] sm:$0xff] %v380_v19  ;;  %v382_v20 = vld [vmem:[%s3388_s13 + $0x540] sm:$0xff]  ;;  %v384_v21 = vld [vmem:[%s3388_s13 + $0x548] sm:$0xff] }
  0x66   : > { %v386_v22 = vld [vmem:[%s3388_s13 + $0x560] sm:$0xff]  ;;  %383 = vst [vmem:[%s3393_s11 + $0x2a0] sm:$0xff] %v382_v20  ;;  %385 = vst [vmem:[%s3393_s11 + $0x2a8] sm:$0xff] %v384_v21  ;;  %v388_v23 = vld [vmem:[%s3388_s13 + $0x568] sm:$0xff] }
  0x67   : > { %387 = vst [vmem:[%s3393_s11 + $0x2b0] sm:$0xff] %v386_v22  ;;  %v390_v24 = vld [vmem:[%s3388_s13 + $0x580] sm:$0xff]  ;;  %v392_v25 = vld [vmem:[%s3388_s13 + $0x588] sm:$0xff]  ;;  %389 = vst [vmem:[%s3393_s11 + $0x2b8] sm:$0xff] %v388_v23 }
  0x68   : > { %391 = vst [vmem:[%s3393_s11 + $0x2c0] sm:$0xff] %v390_v24  ;;  %393 = vst [vmem:[%s3393_s11 + $0x2c8] sm:$0xff] %v392_v25  ;;  %v394_v26 = vld [vmem:[%s3388_s13 + $0x5a0] sm:$0xff]  ;;  %v396_v27 = vld [vmem:[%s3388_s13 + $0x5a8] sm:$0xff] }
  0x69   : > { %v398_v28 = vld [vmem:[%s3388_s13 + $0x5c0] sm:$0xff]  ;;  %395 = vst [vmem:[%s3393_s11 + $0x2d0] sm:$0xff] %v394_v26  ;;  %397 = vst [vmem:[%s3393_s11 + $0x2d8] sm:$0xff] %v396_v27  ;;  %v400_v29 = vld [vmem:[%s3388_s13 + $0x5c8] sm:$0xff] }
  0x6a   : > { %399 = vst [vmem:[%s3393_s11 + $0x2e0] sm:$0xff] %v398_v28  ;;  %v402_v30 = vld [vmem:[%s3388_s13 + $0x5e0] sm:$0xff]  ;;  %v404_v31 = vld [vmem:[%s3388_s13 + $0x5e8] sm:$0xff]  ;;  %401 = vst [vmem:[%s3393_s11 + $0x2e8] sm:$0xff] %v400_v29 }
  0x6b   : > { %403 = vst [vmem:[%s3393_s11 + $0x2f0] sm:$0xff] %v402_v30  ;;  %405 = vst [vmem:[%s3393_s11 + $0x2f8] sm:$0xff] %v404_v31  ;;  %v406_v32 = vld [vmem:[%s3388_s13 + $0x600] sm:$0xff]  ;;  %v408_v33 = vld [vmem:[%s3388_s13 + $0x608] sm:$0xff] }
  0x6c   : > { %v410_v34 = vld [vmem:[%s3388_s13 + $0x620] sm:$0xff]  ;;  %407 = vst [vmem:[%s3393_s11 + $0x300] sm:$0xff] %v406_v32  ;;  %409 = vst [vmem:[%s3393_s11 + $0x308] sm:$0xff] %v408_v33  ;;  %v412_v35 = vld [vmem:[%s3388_s13 + $0x628] sm:$0xff] }
  0x6d   : > { %411 = vst [vmem:[%s3393_s11 + $0x310] sm:$0xff] %v410_v34  ;;  %v414_v36 = vld [vmem:[%s3388_s13 + $0x640] sm:$0xff]  ;;  %v416_v37 = vld [vmem:[%s3388_s13 + $0x648] sm:$0xff]  ;;  %413 = vst [vmem:[%s3393_s11 + $0x318] sm:$0xff] %v412_v35 }
  0x6e   : > { %415 = vst [vmem:[%s3393_s11 + $0x320] sm:$0xff] %v414_v36  ;;  %417 = vst [vmem:[%s3393_s11 + $0x328] sm:$0xff] %v416_v37  ;;  %v418_v38 = vld [vmem:[%s3388_s13 + $0x660] sm:$0xff]  ;;  %v420_v39 = vld [vmem:[%s3388_s13 + $0x668] sm:$0xff] }
  0x6f   : > { %v422_v40 = vld [vmem:[%s3388_s13 + $0x680] sm:$0xff]  ;;  %419 = vst [vmem:[%s3393_s11 + $0x330] sm:$0xff] %v418_v38  ;;  %421 = vst [vmem:[%s3393_s11 + $0x338] sm:$0xff] %v420_v39  ;;  %v424_v41 = vld [vmem:[%s3388_s13 + $0x688] sm:$0xff] }
  0x70   : > { %423 = vst [vmem:[%s3393_s11 + $0x340] sm:$0xff] %v422_v40  ;;  %v426_v42 = vld [vmem:[%s3388_s13 + $0x6a0] sm:$0xff]  ;;  %v428_v43 = vld [vmem:[%s3388_s13 + $0x6a8] sm:$0xff]  ;;  %425 = vst [vmem:[%s3393_s11 + $0x348] sm:$0xff] %v424_v41 }
  0x71   : > { %427 = vst [vmem:[%s3393_s11 + $0x350] sm:$0xff] %v426_v42  ;;  %429 = vst [vmem:[%s3393_s11 + $0x358] sm:$0xff] %v428_v43  ;;  %v430_v44 = vld [vmem:[%s3388_s13 + $0x6c0] sm:$0xff]  ;;  %v432_v45 = vld [vmem:[%s3388_s13 + $0x6c8] sm:$0xff] }
  0x72   : > { %v434_v46 = vld [vmem:[%s3388_s13 + $0x6e0] sm:$0xff]  ;;  %431 = vst [vmem:[%s3393_s11 + $0x360] sm:$0xff] %v430_v44  ;;  %433 = vst [vmem:[%s3393_s11 + $0x368] sm:$0xff] %v432_v45  ;;  %v436_v47 = vld [vmem:[%s3388_s13 + $0x6e8] sm:$0xff] }
  0x73   : > { %435 = vst [vmem:[%s3393_s11 + $0x370] sm:$0xff] %v434_v46  ;;  %v438_v48 = vld [vmem:[%s3388_s13 + $0x700] sm:$0xff]  ;;  %v440_v49 = vld [vmem:[%s3388_s13 + $0x708] sm:$0xff]  ;;  %437 = vst [vmem:[%s3393_s11 + $0x378] sm:$0xff] %v436_v47 }
  0x74   : > { %439 = vst [vmem:[%s3393_s11 + $0x380] sm:$0xff] %v438_v48  ;;  %441 = vst [vmem:[%s3393_s11 + $0x388] sm:$0xff] %v440_v49  ;;  %v442_v50 = vld [vmem:[%s3388_s13 + $0x720] sm:$0xff]  ;;  %v444_v51 = vld [vmem:[%s3388_s13 + $0x728] sm:$0xff] }
  0x75   : > { %v446_v52 = vld [vmem:[%s3388_s13 + $0x740] sm:$0xff]  ;;  %443 = vst [vmem:[%s3393_s11 + $0x390] sm:$0xff] %v442_v50  ;;  %445 = vst [vmem:[%s3393_s11 + $0x398] sm:$0xff] %v444_v51  ;;  %v448_v53 = vld [vmem:[%s3388_s13 + $0x748] sm:$0xff] }
  0x76   : > { %447 = vst [vmem:[%s3393_s11 + $0x3a0] sm:$0xff] %v446_v52  ;;  %v450_v54 = vld [vmem:[%s3388_s13 + $0x760] sm:$0xff]  ;;  %v452_v55 = vld [vmem:[%s3388_s13 + $0x768] sm:$0xff]  ;;  %449 = vst [vmem:[%s3393_s11 + $0x3a8] sm:$0xff] %v448_v53 }
  0x77   : > { %451 = vst [vmem:[%s3393_s11 + $0x3b0] sm:$0xff] %v450_v54  ;;  %453 = vst [vmem:[%s3393_s11 + $0x3b8] sm:$0xff] %v452_v55  ;;  %v454_v56 = vld [vmem:[%s3388_s13 + $0x780] sm:$0xff]  ;;  %v456_v57 = vld [vmem:[%s3388_s13 + $0x788] sm:$0xff] }
  0x78   : > { %v458_v58 = vld [vmem:[%s3388_s13 + $0x7a0] sm:$0xff]  ;;  %455 = vst [vmem:[%s3393_s11 + $0x3c0] sm:$0xff] %v454_v56  ;;  %457 = vst [vmem:[%s3393_s11 + $0x3c8] sm:$0xff] %v456_v57  ;;  %v460_v59 = vld [vmem:[%s3388_s13 + $0x7a8] sm:$0xff] }
  0x79   : > { %459 = vst [vmem:[%s3393_s11 + $0x3d0] sm:$0xff] %v458_v58  ;;  %v462_v60 = vld [vmem:[%s3388_s13 + $0x7c0] sm:$0xff]  ;;  %v464_v61 = vld [vmem:[%s3388_s13 + $0x7c8] sm:$0xff]  ;;  %461 = vst [vmem:[%s3393_s11 + $0x3d8] sm:$0xff] %v460_v59 }
  0x7a   : > { %463 = vst [vmem:[%s3393_s11 + $0x3e0] sm:$0xff] %v462_v60  ;;  %465 = vst [vmem:[%s3393_s11 + $0x3e8] sm:$0xff] %v464_v61  ;;  %v466_v62 = vld [vmem:[%s3388_s13 + $0x7e0] sm:$0xff]  ;;  %v468_v63 = vld [vmem:[%s3388_s13 + $0x7e8] sm:$0xff] }
  0x7b   : > { %467 = vst [vmem:[%s3393_s11 + $0x3f0] sm:$0xff] %v466_v62  ;;  %469 = vst [vmem:[%s3393_s11 + $0x3f8] sm:$0xff] %v468_v63 }
  0x7c PF: > { %p2747_p3 = scmp.ge.s32.totalorder %s3285_s7, 1  ;;  %p474_p4 = scmp.lt.s32.totalorder %s3285_s7, 5 }
  0x7e   : > { %p475_p5 = pnand %p2747_p3, %p474_p4 }
  0x7f   : > { %s481_s14 = sand.u32 (!%p475_p5), 1, %s3261_s1   ;;  %s2749_s15 = sshll.u32 (!%p475_p5), %s3273_s29, 6 }
  0x80   : > { %478 = sbr.rel (%p475_p5) target bundleno = 747 (0x2eb), region = 51  ;;  %s2748_s16 = sshll.u32 (!%p475_p5), %s481_s14, 10 }
  0x81   : > { %p527_p6 = scmp.lt.s32.totalorder (!%p475_p5), %s2749_s15, 127  ;;  %s3657_s22 = scalar_lea.vmem (!%p475_p5), [#allocation6], %s2748_s16 }
  0x82   : > { %p2751_p7 = scmp.ne.s32.totalorder (!%p475_p5), %s3269_s28, 0 }
  0x85   : > { %s4099_s15 = smov (!%p527_p6, %s2749_s15), 127  ;;  %539 = sbr.rel (%p2751_p7) target bundleno = 171 (0xab), region = 59 }
  0x86   : > { %s2750_s17 = sshll.u32 %s4099_s15, 3 }
  0x87   : > { %s3655_s21 = scalar_lea.vmem %s4084_s5, %s2750_s17 }
  0x8a   : > { %v3289_v0 = vmov 0.0  }
  0x8b   : > { %540 = vst [vmem:[#allocation2 + $0xb0] sm:$0xff] %v3289_v0  ;;  %541 = vst [vmem:[#allocation2 + $0x1b0] sm:$0xff] %v3289_v0 }
  0x8c   : > { %542 = vst [vmem:[#allocation2 + $0xd8] sm:$0xff] %v3289_v0  ;;  %543 = vst [vmem:[#allocation2 + $0x18] sm:$0xff] %v3289_v0 }
  0x8d   : > { %544 = vst [vmem:[#allocation2 + $0x50] sm:$0xff] %v3289_v0  ;;  %545 = vst [vmem:[#allocation2 + $0x168] sm:$0xff] %v3289_v0 }
  0x8e   : > { %546 = vst [vmem:[#allocation2 + $0x130] sm:$0xff] %v3289_v0  ;;  %547 = vst [vmem:[#allocation2 + $0x48] sm:$0xff] %v3289_v0 }
  0x8f   : > { %548 = vst [vmem:[#allocation2 + $0x180] sm:$0xff] %v3289_v0  ;;  %549 = vst [vmem:[#allocation2 + $0x110] sm:$0xff] %v3289_v0 }
  0x90   : > { %550 = vst [vmem:[#allocation2 + $0x118] sm:$0xff] %v3289_v0  ;;  %551 = vst [vmem:[#allocation2 + $0x98] sm:$0xff] %v3289_v0 }
  0x91   : > { %552 = vst [vmem:[#allocation2 + $0x120] sm:$0xff] %v3289_v0  ;;  %553 = vst [vmem:[#allocation2 + $0x150] sm:$0xff] %v3289_v0 }
  0x92   : > { %554 = vst [vmem:[#allocation2 + $0x108] sm:$0xff] %v3289_v0  ;;  %555 = vst [vmem:[#allocation2 + $0x60] sm:$0xff] %v3289_v0 }
  0x93   : > { %556 = vst [vmem:[#allocation2 + $0xe0] sm:$0xff] %v3289_v0  ;;  %557 = vst [vmem:[#allocation2 + $0x188] sm:$0xff] %v3289_v0 }
  0x94   : > { %558 = vst [vmem:[#allocation2 + $0x138] sm:$0xff] %v3289_v0  ;;  %559 = vst [vmem:[#allocation2 + $0x140] sm:$0xff] %v3289_v0 }
  0x95   : > { %560 = vst [vmem:[#allocation2 + $0x80] sm:$0xff] %v3289_v0  ;;  %561 = vst [vmem:[#allocation2 + $0x1a8] sm:$0xff] %v3289_v0 }
  0x96   : > { %562 = vst [vmem:[#allocation2 + $0x1b8] sm:$0xff] %v3289_v0  ;;  %563 = vst [vmem:[#allocation2 + $0x28] sm:$0xff] %v3289_v0 }
  0x97   : > { %564 = vst [vmem:[#allocation2 + $0x1e8] sm:$0xff] %v3289_v0  ;;  %565 = vst [vmem:[#allocation2 + $0xf8] sm:$0xff] %v3289_v0 }
  0x98   : > { %566 = vst [vmem:[#allocation2 + $0x160] sm:$0xff] %v3289_v0  ;;  %567 = vst [vmem:[#allocation2 + $0x30] sm:$0xff] %v3289_v0 }
  0x99   : > { %568 = vst [vmem:[#allocation2 + $0x1e0] sm:$0xff] %v3289_v0  ;;  %569 = vst [vmem:[#allocation2] sm:$0xff] %v3289_v0 }
  0x9a   : > { %570 = vst [vmem:[#allocation2 + $0xf0] sm:$0xff] %v3289_v0  ;;  %571 = vst [vmem:[#allocation2 + $0x8] sm:$0xff] %v3289_v0 }
  0x9b   : > { %572 = vst [vmem:[#allocation2 + $0x148] sm:$0xff] %v3289_v0  ;;  %573 = vst [vmem:[#allocation2 + $0x1d0] sm:$0xff] %v3289_v0 }
  0x9c   : > { %574 = vst [vmem:[#allocation2 + $0x100] sm:$0xff] %v3289_v0  ;;  %575 = vst [vmem:[#allocation2 + $0xc8] sm:$0xff] %v3289_v0 }
  0x9d   : > { %576 = vst [vmem:[#allocation2 + $0x40] sm:$0xff] %v3289_v0  ;;  %577 = vst [vmem:[#allocation2 + $0x1f8] sm:$0xff] %v3289_v0 }
  0x9e   : > { %578 = vst [vmem:[#allocation2 + $0x20] sm:$0xff] %v3289_v0  ;;  %579 = vst [vmem:[#allocation2 + $0x128] sm:$0xff] %v3289_v0 }
  0x9f   : > { %580 = vst [vmem:[#allocation2 + $0x1a0] sm:$0xff] %v3289_v0  ;;  %581 = vst [vmem:[#allocation2 + $0x1f0] sm:$0xff] %v3289_v0 }
  0xa0   : > { %582 = vst [vmem:[#allocation2 + $0xe8] sm:$0xff] %v3289_v0  ;;  %583 = vst [vmem:[#allocation2 + $0x78] sm:$0xff] %v3289_v0 }
  0xa1   : > { %584 = vst [vmem:[#allocation2 + $0x70] sm:$0xff] %v3289_v0  ;;  %585 = vst [vmem:[#allocation2 + $0x90] sm:$0xff] %v3289_v0 }
  0xa2   : > { %586 = vst [vmem:[#allocation2 + $0x1d8] sm:$0xff] %v3289_v0  ;;  %587 = vst [vmem:[#allocation2 + $0xd0] sm:$0xff] %v3289_v0 }
  0xa3   : > { %588 = vst [vmem:[#allocation2 + $0xb8] sm:$0xff] %v3289_v0  ;;  %589 = vst [vmem:[#allocation2 + $0x88] sm:$0xff] %v3289_v0 }
  0xa4   : > { %590 = vst [vmem:[#allocation2 + $0xa8] sm:$0xff] %v3289_v0  ;;  %591 = vst [vmem:[#allocation2 + $0x1c8] sm:$0xff] %v3289_v0 }
  0xa5   : > { %592 = vst [vmem:[#allocation2 + $0x170] sm:$0xff] %v3289_v0  ;;  %593 = vst [vmem:[#allocation2 + $0x178] sm:$0xff] %v3289_v0 }
  0xa6   : > { %594 = vst [vmem:[#allocation2 + $0x68] sm:$0xff] %v3289_v0  ;;  %595 = vst [vmem:[#allocation2 + $0x190] sm:$0xff] %v3289_v0 }
  0xa7   : > { %596 = vst [vmem:[#allocation2 + $0x198] sm:$0xff] %v3289_v0  ;;  %597 = vst [vmem:[#allocation2 + $0x38] sm:$0xff] %v3289_v0 }
  0xa8   : > { %598 = vst [vmem:[#allocation2 + $0xc0] sm:$0xff] %v3289_v0  ;;  %599 = vst [vmem:[#allocation2 + $0x1c0] sm:$0xff] %v3289_v0 }
  0xa9   : > { %600 = vst [vmem:[#allocation2 + $0x158] sm:$0xff] %v3289_v0  ;;  %601 = vst [vmem:[#allocation2 + $0x10] sm:$0xff] %v3289_v0 }
  0xaa   : > { %602 = vst [vmem:[#allocation2 + $0x58] sm:$0xff] %v3289_v0  ;;  %603 = vst [vmem:[#allocation2 + $0xa0] sm:$0xff] %v3289_v0 }
  0xab PF: > { %s604_s1 = sld [smem:[#allocation5 + %s3273_s29]] }
  0xb1   : > { %p2752_p8 = scmp.ge.s32.totalorder %s3269_s28, %s604_s1 }
  0xb2   : > { %s2753_s23 = sshll.u32 (!%p2752_p8), %s3273_s29, 1 }
  0xb3   : > { %608 = sbr.rel (%p2752_p8) target bundleno = 705 (0x2c1), region = 63  ;;  %s610_s24 = sadd.s32 (!%p2752_p8), %s3269_s28, %s2753_s23 }
  0xb4   : > { %s611_s25 = sld [smem:[#allocation4 + %s610_s24]] (!%p2752_p8) }
  0xb8   : > { %v3290_v1 = vmov 0   ;;  %v3015_v2 = vld [vmem:[%s3657_s22 + $0x4] ss:$16 sps:$4 sm:$0xff]   ;;  %v3018_v3 = vld [vmem:[%s3657_s22 + $0xc] ss:$16 sps:$4 sm:$0xff]  }
  0xb9   : > { %1705 = vmatprep.subr.bf16.mxu0 %v3290_v1  ;;  %1994 = vmatprep.subr.bf16.mxu1 %v3290_v1  ;;  %v3013_v36 = vld [vmem:[%s3657_s22] ss:$16 sps:$4 sm:$0xff]   ;;  %v3016_v37 = vld [vmem:[%s3657_s22 + $0x8] ss:$16 sps:$4 sm:$0xff]   ;;  %v3019_v38 = vld [vmem:[%s3657_s22 + $0x24] ss:$16 sps:$4 sm:$0xff]  }
  0xba   : > { %1737 = vmatprep.mubr.bf16.mxu0 %v3015_v2  ;;  %2026 = vmatprep.mubr.bf16.mxu1 %v3018_v3  ;;  %s2754_s26 = sshll.u32 %s611_s25, 9  ;;  %v3021_v39 = vld [vmem:[%s3657_s22 + $0x2c] ss:$16 sps:$4 sm:$0xff]   ;;  %v3023_v40 = vld [vmem:[%s3657_s22 + $0x20] ss:$16 sps:$4 sm:$0xff]  }
  0xbb   : > { %s613_s0 = sshra.s32 %s2754_s26, 3  ;;  %v3024_v41 = vld [vmem:[%s3657_s22 + $0x28] ss:$16 sps:$4 sm:$0xff]   ;;  %v3025_v42 = vld [vmem:[%s3657_s22 + $0x44] ss:$16 sps:$4 sm:$0xff]  }
  0xbc   : > { %s2755_s10 = sshll.u32 %s613_s0, 2  ;;  %v3027_v43 = vld [vmem:[%s3657_s22 + $0x4c] ss:$16 sps:$4 sm:$0xff]   ;;  %v3029_v44 = vld [vmem:[%s3657_s22 + $0x40] ss:$16 sps:$4 sm:$0xff]  }
  0xbd   : > { %s3735_s11 = scalar_lea.vmem %s4082_s3, %s2755_s10  ;;  %v3030_v45 = vld [vmem:[%s3657_s22 + $0x48] ss:$16 sps:$4 sm:$0xff]   ;;  %v3031_v46 = vld [vmem:[%s3657_s22 + $0x64] ss:$16 sps:$4 sm:$0xff]   ;;  %v3033_v47 = vld [vmem:[%s3657_s22 + $0x6c] ss:$16 sps:$4 sm:$0xff]  }
  0xbe   : > { %v2981_v4 = vld [vmem:[%s3735_s11 + $0x38] sm:$0xff]   ;;  %v2983_v6 = vld [vmem:[%s3735_s11 + $0x30] sm:$0xff]   ;;  %v2985_v8 = vld [vmem:[%s3735_s11 + $0x28] sm:$0xff]  }
  0xbf   : > { %v2982_v5 = vld [vmem:[%s3735_s11 + $0xb8] sm:$0xff]   ;;  %1706 = vmatpush1.bf16.msra.mxu0 %v2981_v4  ;;  %v2984_v7 = vld [vmem:[%s3735_s11 + $0xb0] sm:$0xff]   ;;  %v2986_v9 = vld [vmem:[%s3735_s11 + $0xa8] sm:$0xff]  }
  0xc0   : > { %1995 = vmatpush1.bf16.msra.mxu1 %v2982_v5  ;;  %1707 = vmatprep.subr.bf16.mxu0 %v3290_v1  ;;  %v2987_v10 = vld [vmem:[%s3735_s11 + $0x20] sm:$0xff]   ;;  %v2989_v12 = vld [vmem:[%s3735_s11 + $0x18] sm:$0xff]   ;;  %v2991_v14 = vld [vmem:[%s3735_s11 + $0x10] sm:$0xff]  }
  0xc1   : > { %1996 = vmatprep.subr.bf16.mxu1 %v3290_v1  ;;  %v2988_v11 = vld [vmem:[%s3735_s11 + $0xa0] sm:$0xff]   ;;  %v2990_v13 = vld [vmem:[%s3735_s11 + $0x98] sm:$0xff]   ;;  %v2992_v15 = vld [vmem:[%s3735_s11 + $0x90] sm:$0xff]  }
  0xc2   : > { %v2993_v16 = vld [vmem:[%s3735_s11 + $0x8] sm:$0xff]   ;;  %v2995_v18 = vld [vmem:[%s3735_s11] sm:$0xff]   ;;  %v2997_v20 = vld [vmem:[%s3735_s11 + $0x78] sm:$0xff]  }
  0xc3   : > { %1708 = vmatpush1.bf16.msra.mxu0 %v2983_v6  ;;  %v2994_v17 = vld [vmem:[%s3735_s11 + $0x88] sm:$0xff]   ;;  %v2996_v19 = vld [vmem:[%s3735_s11 + $0x80] sm:$0xff]   ;;  %v2998_v21 = vld [vmem:[%s3735_s11 + $0xf8] sm:$0xff]  }
  0xc4   : > { %1997 = vmatpush1.bf16.msra.mxu1 %v2984_v7  ;;  %1709 = vmatprep.subr.bf16.mxu0 %v3290_v1  ;;  %v2999_v22 = vld [vmem:[%s3735_s11 + $0x70] sm:$0xff]   ;;  %v3001_v24 = vld [vmem:[%s3735_s11 + $0x68] sm:$0xff]   ;;  %v3003_v26 = vld [vmem:[%s3735_s11 + $0x60] sm:$0xff]  }
  0xc5   : > { %1998 = vmatprep.subr.bf16.mxu1 %v3290_v1  ;;  %v3000_v23 = vld [vmem:[%s3735_s11 + $0xf0] sm:$0xff]   ;;  %v3002_v25 = vld [vmem:[%s3735_s11 + $0xe8] sm:$0xff]   ;;  %v3004_v27 = vld [vmem:[%s3735_s11 + $0xe0] sm:$0xff]  }
  0xc6   : > { %v3005_v28 = vld [vmem:[%s3735_s11 + $0x58] sm:$0xff]   ;;  %v3007_v30 = vld [vmem:[%s3735_s11 + $0x50] sm:$0xff]   ;;  %v3009_v32 = vld [vmem:[%s3735_s11 + $0x48] sm:$0xff]  }
  0xc7   : > { %1710 = vmatpush1.bf16.msra.mxu0 %v2985_v8  ;;  %v3006_v29 = vld [vmem:[%s3735_s11 + $0xd8] sm:$0xff]   ;;  %v3008_v31 = vld [vmem:[%s3735_s11 + $0xd0] sm:$0xff]   ;;  %v3010_v33 = vld [vmem:[%s3735_s11 + $0xc8] sm:$0xff]  }
  0xc8   : > { %1999 = vmatpush1.bf16.msra.mxu1 %v2986_v9  ;;  %1711 = vmatprep.subr.bf16.mxu0 %v3290_v1  ;;  %v3011_v34 = vld [vmem:[%s3735_s11 + $0x40] sm:$0xff]   ;;  %v3036_v49 = vld [vmem:[%s3657_s22 + $0x68] ss:$16 sps:$4 sm:$0xff]   ;;  %v3039_v51 = vld [vmem:[%s3657_s22 + $0x8c] ss:$16 sps:$4 sm:$0xff]  }
  0xc9   : > { %2000 = vmatprep.subr.bf16.mxu1 %v3290_v1  ;;  %v3012_v35 = vld [vmem:[%s3735_s11 + $0xc0] sm:$0xff]   ;;  %v3042_v53 = vld [vmem:[%s3657_s22 + $0x88] ss:$16 sps:$4 sm:$0xff]   ;;  %v3045_v55 = vld [vmem:[%s3657_s22 + $0xac] ss:$16 sps:$4 sm:$0xff]  }
  0xca   : > { %v3035_v48 = vld [vmem:[%s3657_s22 + $0x60] ss:$16 sps:$4 sm:$0xff]   ;;  %v3037_v50 = vld [vmem:[%s3657_s22 + $0x84] ss:$16 sps:$4 sm:$0xff]   ;;  %v3048_v57 = vld [vmem:[%s3657_s22 + $0xa8] ss:$16 sps:$4 sm:$0xff]  }
  0xcb   : > { %1712 = vmatpush1.bf16.msra.mxu0 %v2987_v10  ;;  %v3041_v52 = vld [vmem:[%s3657_s22 + $0x80] ss:$16 sps:$4 sm:$0xff]   ;;  %v3043_v54 = vld [vmem:[%s3657_s22 + $0xa4] ss:$16 sps:$4 sm:$0xff]   ;;  %v3051_v59 = vld [vmem:[%s3657_s22 + $0xcc] ss:$16 sps:$4 sm:$0xff]  }
  0xcc   : > { %2001 = vmatpush1.bf16.msra.mxu1 %v2988_v11  ;;  %1713 = vmatprep.subr.bf16.mxu0 %v3290_v1  ;;  %v3047_v56 = vld [vmem:[%s3657_s22 + $0xa0] ss:$16 sps:$4 sm:$0xff]   ;;  %v3049_v58 = vld [vmem:[%s3657_s22 + $0xc4] ss:$16 sps:$4 sm:$0xff]   ;;  %v3054_v61 = vld [vmem:[%s3657_s22 + $0xc8] ss:$16 sps:$4 sm:$0xff]  }
  0xcd   : > { %2002 = vmatprep.subr.bf16.mxu1 %v3290_v1  ;;  %v3053_v60 = vld [vmem:[%s3657_s22 + $0xc0] ss:$16 sps:$4 sm:$0xff]   ;;  %v3055_v62 = vld [vmem:[%s3657_s22 + $0xe4] ss:$16 sps:$4 sm:$0xff]   ;;  %v3057_v63 = vld [vmem:[%s3657_s22 + $0xec] ss:$16 sps:$4 sm:$0xff]  }
  0xce   : > { %v3059_v0 = vld [vmem:[%s3657_s22 + $0xe0] ss:$16 sps:$4 sm:$0xff]   ;;  %v3061_v2 = vld [vmem:[%s3657_s22 + $0x104] ss:$16 sps:$4 sm:$0xff]   ;;  %v3063_v3 = vld [vmem:[%s3657_s22 + $0x10c] ss:$16 sps:$4 sm:$0xff]  }
  0xcf   : > { %1714 = vmatpush1.bf16.msra.mxu0 %v2989_v12  ;;  %v3065_v4 = vld [vmem:[%s3657_s22 + $0x100] ss:$16 sps:$4 sm:$0xff]   ;;  %v3066_v5 = vld [vmem:[%s3657_s22 + $0x108] ss:$16 sps:$4 sm:$0xff]   ;;  %v3067_v6 = vld [vmem:[%s3657_s22 + $0x124] ss:$16 sps:$4 sm:$0xff]  }
  0xd0   : > { %2003 = vmatpush1.bf16.msra.mxu1 %v2990_v13  ;;  %1715 = vmatprep.subr.bf16.mxu0 %v3290_v1  ;;  %v3069_v7 = vld [vmem:[%s3657_s22 + $0x12c] ss:$16 sps:$4 sm:$0xff]   ;;  %v3071_v8 = vld [vmem:[%s3657_s22 + $0x120] ss:$16 sps:$4 sm:$0xff]   ;;  %v3072_v9 = vld [vmem:[%s3657_s22 + $0x128] ss:$16 sps:$4 sm:$0xff]  }
  0xd1   : > { %2004 = vmatprep.subr.bf16.mxu1 %v3290_v1  ;;  %v3073_v10 = vld [vmem:[%s3657_s22 + $0x144] ss:$16 sps:$4 sm:$0xff]   ;;  %v3075_v11 = vld [vmem:[%s3657_s22 + $0x14c] ss:$16 sps:$4 sm:$0xff]   ;;  %v3077_v12 = vld [vmem:[%s3657_s22 + $0x140] ss:$16 sps:$4 sm:$0xff]  }
  0xd2   : > { %v3078_v13 = vld [vmem:[%s3657_s22 + $0x148] ss:$16 sps:$4 sm:$0xff]  }
  0xd3   : > { %1716 = vmatpush1.bf16.msra.mxu0 %v2991_v14  ;;  %v3079_v14 = vld [vmem:[%s3657_s22 + $0x164] ss:$16 sps:$4 sm:$0xff]  }
  0xd4   : > { %2005 = vmatpush1.bf16.msra.mxu1 %v2992_v15  ;;  %1717 = vmatprep.subr.bf16.mxu0 %v3290_v1  ;;  %v3081_v15 = vld [vmem:[%s3657_s22 + $0x16c] ss:$16 sps:$4 sm:$0xff]  }
  0xd5   : > { %2006 = vmatprep.subr.bf16.mxu1 %v3290_v1 }
  0xd7   : > { %1718 = vmatpush1.bf16.msra.mxu0 %v2993_v16  ;;  %v3083_v16 = vld [vmem:[%s3657_s22 + $0x160] ss:$16 sps:$4 sm:$0xff]  }
  0xd8   : > { %2007 = vmatpush1.bf16.msra.mxu1 %v2994_v17  ;;  %1719 = vmatprep.subr.bf16.mxu0 %v3290_v1  ;;  %v3084_v17 = vld [vmem:[%s3657_s22 + $0x168] ss:$16 sps:$4 sm:$0xff]  }
  0xd9   : > { %2008 = vmatprep.subr.bf16.mxu1 %v3290_v1 }
  0xdb   : > { %1720 = vmatpush1.bf16.msra.mxu0 %v2995_v18  ;;  %v3085_v18 = vld [vmem:[%s3657_s22 + $0x184] ss:$16 sps:$4 sm:$0xff]  }
  0xdc   : > { %2009 = vmatpush1.bf16.msra.mxu1 %v2996_v19  ;;  %1721 = vmatprep.subr.bf16.mxu0 %v3290_v1  ;;  %v3087_v19 = vld [vmem:[%s3657_s22 + $0x18c] ss:$16 sps:$4 sm:$0xff]  }
  0xdd   : > { %2010 = vmatprep.subr.bf16.mxu1 %v3290_v1 }
  0xdf   : > { %1722 = vmatpush2.bf16.msra.mxu0 %v2997_v20  ;;  %v3089_v20 = vld [vmem:[%s3657_s22 + $0x180] ss:$16 sps:$4 sm:$0xff]  }
  0xe0   : > { %2011 = vmatpush2.bf16.msra.mxu1 %v2998_v21  ;;  %1723 = vmatprep.subr.bf16.mxu0 %v3290_v1  ;;  %v3090_v21 = vld [vmem:[%s3657_s22 + $0x188] ss:$16 sps:$4 sm:$0xff]  }
  0xe1   : > { %2012 = vmatprep.subr.bf16.mxu1 %v3290_v1 }
  0xe3   : > { %1724 = vmatpush2.bf16.msra.mxu0 %v2999_v22  ;;  %v3091_v22 = vld [vmem:[%s3657_s22 + $0x1a4] ss:$16 sps:$4 sm:$0xff]  }
  0xe4   : > { %2013 = vmatpush2.bf16.msra.mxu1 %v3000_v23  ;;  %1725 = vmatprep.subr.bf16.mxu0 %v3290_v1  ;;  %v3093_v23 = vld [vmem:[%s3657_s22 + $0x1ac] ss:$16 sps:$4 sm:$0xff]  }
  0xe5   : > { %2014 = vmatprep.subr.bf16.mxu1 %v3290_v1 }
  0xe7   : > { %1726 = vmatpush2.bf16.msra.mxu0 %v3001_v24  ;;  %v3095_v24 = vld [vmem:[%s3657_s22 + $0x1a0] ss:$16 sps:$4 sm:$0xff]  }
  0xe8   : > { %2015 = vmatpush2.bf16.msra.mxu1 %v3002_v25  ;;  %1727 = vmatprep.subr.bf16.mxu0 %v3290_v1  ;;  %v3096_v25 = vld [vmem:[%s3657_s22 + $0x1a8] ss:$16 sps:$4 sm:$0xff]  }
  0xe9   : > { %2016 = vmatprep.subr.bf16.mxu1 %v3290_v1 }
  0xeb   : > { %1728 = vmatpush2.bf16.msra.mxu0 %v3003_v26  ;;  %v3097_v26 = vld [vmem:[%s3657_s22 + $0x1c4] ss:$16 sps:$4 sm:$0xff]  }
  0xec   : > { %2017 = vmatpush2.bf16.msra.mxu1 %v3004_v27  ;;  %1729 = vmatprep.subr.bf16.mxu0 %v3290_v1  ;;  %v3099_v27 = vld [vmem:[%s3657_s22 + $0x1cc] ss:$16 sps:$4 sm:$0xff]  }
  0xed   : > { %2018 = vmatprep.subr.bf16.mxu1 %v3290_v1 }
  0xef   : > { %1730 = vmatpush2.bf16.msra.mxu0 %v3005_v28  ;;  %v3101_v28 = vld [vmem:[%s3657_s22 + $0x1c0] ss:$16 sps:$4 sm:$0xff]  }
  0xf0   : > { %2019 = vmatpush2.bf16.msra.mxu1 %v3006_v29  ;;  %1731 = vmatprep.subr.bf16.mxu0 %v3290_v1  ;;  %v3102_v29 = vld [vmem:[%s3657_s22 + $0x1c8] ss:$16 sps:$4 sm:$0xff]  }
  0xf1   : > { %2020 = vmatprep.subr.bf16.mxu1 %v3290_v1 }
  0xf3   : > { %1732 = vmatpush2.bf16.msra.mxu0 %v3007_v30  ;;  %v3103_v30 = vld [vmem:[%s3657_s22 + $0x1e4] ss:$16 sps:$4 sm:$0xff]  }
  0xf4   : > { %2021 = vmatpush2.bf16.msra.mxu1 %v3008_v31  ;;  %1733 = vmatprep.subr.bf16.mxu0 %v3290_v1  ;;  %v3105_v31 = vld [vmem:[%s3657_s22 + $0x1ec] ss:$16 sps:$4 sm:$0xff]  }
  0xf5   : > { %2022 = vmatprep.subr.bf16.mxu1 %v3290_v1 }
  0xf7   : > { %1734 = vmatpush2.bf16.msra.mxu0 %v3009_v32  ;;  %v3107_v32 = vld [vmem:[%s3657_s22 + $0x1e0] ss:$16 sps:$4 sm:$0xff]  }
  0xf8   : > { %2023 = vmatpush2.bf16.msra.mxu1 %v3010_v33  ;;  %1735 = vmatprep.subr.bf16.mxu0 %v3290_v1  ;;  %v3108_v33 = vld [vmem:[%s3657_s22 + $0x1e8] ss:$16 sps:$4 sm:$0xff]  }
  0xf9   : > { %2024 = vmatprep.subr.bf16.mxu1 %v3290_v1  ;;  %v3060_v1 = vld [vmem:[%s3657_s22 + $0xe8] ss:$16 sps:$4 sm:$0xff]  }
  0xfb   : > { %1736 = vmatpush2.bf16.msra.mxu0 %v3011_v34  ;;  %v3109_v34 = vld [vmem:[%s3657_s22 + $0x204] ss:$16 sps:$4 sm:$0xff]  }
  0xfc   : > { %2025 = vmatpush2.bf16.msra.mxu1 %v3012_v35  ;;  %v3111_v35 = vld [vmem:[%s3657_s22 + $0x20c] ss:$16 sps:$4 sm:$0xff]  }
  0xfe   : > { %1738 = vmatmul.mubr.bf16.vlgmr.msra.gmra.mxu0 %v3013_v36  ;;  %v3113_v36 = vld [vmem:[%s3657_s22 + $0x200] ss:$16 sps:$4 sm:$0xff]  }
  0xff   : > { %2027 = vmatmul.mubr.bf16.vlgmr.msra.gmra.mxu1 %v3016_v37  ;;  %1745 = vmatprep.mubr.bf16.mxu0 %v3019_v38  ;;  %v3114_v37 = vld [vmem:[%s3657_s22 + $0x208] ss:$16 sps:$4 sm:$0xff]   ;;  %v3115_v38 = vld [vmem:[%s3657_s22 + $0x224] ss:$16 sps:$4 sm:$0xff]  }
 0x100   : > { %2034 = vmatprep.mubr.bf16.mxu1 %v3021_v39  ;;  %v3117_v39 = vld [vmem:[%s3657_s22 + $0x22c] ss:$16 sps:$4 sm:$0xff]  }
 0x106   : > { %1746 = vmatmul.mubr.bf16.gmra.mxu0 %v3023_v40  ;;  %v3119_v40 = vld [vmem:[%s3657_s22 + $0x220] ss:$16 sps:$4 sm:$0xff]  }
 0x107   : > { %2035 = vmatmul.mubr.bf16.gmra.mxu1 %v3024_v41  ;;  %1753 = vmatprep.mubr.bf16.mxu0 %v3025_v42  ;;  %v3120_v41 = vld [vmem:[%s3657_s22 + $0x228] ss:$16 sps:$4 sm:$0xff]   ;;  %v3121_v42 = vld [vmem:[%s3657_s22 + $0x244] ss:$16 sps:$4 sm:$0xff]  }
 0x108   : > { %2042 = vmatprep.mubr.bf16.mxu1 %v3027_v43  ;;  %v3123_v43 = vld [vmem:[%s3657_s22 + $0x24c] ss:$16 sps:$4 sm:$0xff]  }
 0x10e   : > { %1754 = vmatmul.mubr.bf16.gmra.mxu0 %v3029_v44  ;;  %v3125_v44 = vld [vmem:[%s3657_s22 + $0x240] ss:$16 sps:$4 sm:$0xff]  }
 0x10f   : > { %2043 = vmatmul.mubr.bf16.gmra.mxu1 %v3030_v45  ;;  %1761 = vmatprep.mubr.bf16.mxu0 %v3031_v46  ;;  %v3126_v45 = vld [vmem:[%s3657_s22 + $0x248] ss:$16 sps:$4 sm:$0xff]   ;;  %v3127_v46 = vld [vmem:[%s3657_s22 + $0x264] ss:$16 sps:$4 sm:$0xff]  }
 0x110   : > { %2050 = vmatprep.mubr.bf16.mxu1 %v3033_v47  ;;  %v3129_v47 = vld [vmem:[%s3657_s22 + $0x26c] ss:$16 sps:$4 sm:$0xff]  }
 0x116   : > { %1762 = vmatmul.mubr.bf16.gmra.mxu0 %v3035_v48  ;;  %v3131_v48 = vld [vmem:[%s3657_s22 + $0x260] ss:$16 sps:$4 sm:$0xff]  }
 0x117   : > { %2051 = vmatmul.mubr.bf16.gmra.mxu1 %v3036_v49  ;;  %1769 = vmatprep.mubr.bf16.mxu0 %v3037_v50  ;;  %v3132_v49 = vld [vmem:[%s3657_s22 + $0x268] ss:$16 sps:$4 sm:$0xff]   ;;  %v3133_v50 = vld [vmem:[%s3657_s22 + $0x284] ss:$16 sps:$4 sm:$0xff]  }
 0x118   : > { %2058 = vmatprep.mubr.bf16.mxu1 %v3039_v51  ;;  %v3135_v51 = vld [vmem:[%s3657_s22 + $0x28c] ss:$16 sps:$4 sm:$0xff]  }
 0x11e   : > { %1770 = vmatmul.mubr.bf16.gmra.mxu0 %v3041_v52  ;;  %v3137_v52 = vld [vmem:[%s3657_s22 + $0x280] ss:$16 sps:$4 sm:$0xff]  }
 0x11f   : > { %2059 = vmatmul.mubr.bf16.gmra.mxu1 %v3042_v53  ;;  %1777 = vmatprep.mubr.bf16.mxu0 %v3043_v54  ;;  %v3138_v53 = vld [vmem:[%s3657_s22 + $0x288] ss:$16 sps:$4 sm:$0xff]   ;;  %v3139_v54 = vld [vmem:[%s3657_s22 + $0x2a4] ss:$16 sps:$4 sm:$0xff]  }
 0x120   : > { %2066 = vmatprep.mubr.bf16.mxu1 %v3045_v55  ;;  %v3141_v55 = vld [vmem:[%s3657_s22 + $0x2ac] ss:$16 sps:$4 sm:$0xff]  }
 0x126   : > { %1778 = vmatmul.mubr.bf16.gmra.mxu0 %v3047_v56  ;;  %v3143_v56 = vld [vmem:[%s3657_s22 + $0x2a0] ss:$16 sps:$4 sm:$0xff]  }
 0x127   : > { %2067 = vmatmul.mubr.bf16.gmra.mxu1 %v3048_v57  ;;  %1785 = vmatprep.mubr.bf16.mxu0 %v3049_v58  ;;  %v3144_v57 = vld [vmem:[%s3657_s22 + $0x2a8] ss:$16 sps:$4 sm:$0xff]   ;;  %v3145_v58 = vld [vmem:[%s3657_s22 + $0x2c4] ss:$16 sps:$4 sm:$0xff]  }
 0x128   : > { %2074 = vmatprep.mubr.bf16.mxu1 %v3051_v59  ;;  %v3147_v59 = vld [vmem:[%s3657_s22 + $0x2cc] ss:$16 sps:$4 sm:$0xff]  }
 0x12e   : > { %1786 = vmatmul.mubr.bf16.gmra.mxu0 %v3053_v60  ;;  %v3149_v60 = vld [vmem:[%s3657_s22 + $0x2c0] ss:$16 sps:$4 sm:$0xff]  }
 0x12f   : > { %2075 = vmatmul.mubr.bf16.gmra.mxu1 %v3054_v61  ;;  %1793 = vmatprep.mubr.bf16.mxu0 %v3055_v62  ;;  %v3150_v61 = vld [vmem:[%s3657_s22 + $0x2c8] ss:$16 sps:$4 sm:$0xff]   ;;  %v3151_v62 = vld [vmem:[%s3657_s22 + $0x2e4] ss:$16 sps:$4 sm:$0xff]  }
 0x130   : > { %2082 = vmatprep.mubr.bf16.mxu1 %v3057_v63  ;;  %v3153_v63 = vld [vmem:[%s3657_s22 + $0x2ec] ss:$16 sps:$4 sm:$0xff]  }
 0x136   : > { %1794 = vmatmul.mubr.bf16.gmra.mxu0 %v3059_v0  ;;  %v3155_v0 = vld [vmem:[%s3657_s22 + $0x2e0] ss:$16 sps:$4 sm:$0xff]  }
 0x137   : > { %2083 = vmatmul.mubr.bf16.gmra.mxu1 %v3060_v1  ;;  %1801 = vmatprep.mubr.bf16.mxu0 %v3061_v2  ;;  %v3156_v1 = vld [vmem:[%s3657_s22 + $0x2e8] ss:$16 sps:$4 sm:$0xff]   ;;  %v3157_v2 = vld [vmem:[%s3657_s22 + $0x304] ss:$16 sps:$4 sm:$0xff]  }
 0x138   : > { %2090 = vmatprep.mubr.bf16.mxu1 %v3063_v3  ;;  %v3159_v3 = vld [vmem:[%s3657_s22 + $0x30c] ss:$16 sps:$4 sm:$0xff]  }
 0x13e   : > { %1802 = vmatmul.mubr.bf16.gmra.mxu0 %v3065_v4  ;;  %v3161_v4 = vld [vmem:[%s3657_s22 + $0x300] ss:$16 sps:$4 sm:$0xff]  }
 0x13f   : > { %2091 = vmatmul.mubr.bf16.gmra.mxu1 %v3066_v5  ;;  %1809 = vmatprep.mubr.bf16.mxu0 %v3067_v6  ;;  %v3162_v5 = vld [vmem:[%s3657_s22 + $0x308] ss:$16 sps:$4 sm:$0xff]   ;;  %v3163_v6 = vld [vmem:[%s3657_s22 + $0x324] ss:$16 sps:$4 sm:$0xff]  }
 0x140   : > { %2098 = vmatprep.mubr.bf16.mxu1 %v3069_v7  ;;  %v3165_v7 = vld [vmem:[%s3657_s22 + $0x32c] ss:$16 sps:$4 sm:$0xff]  }
 0x146   : > { %1810 = vmatmul.mubr.bf16.gmra.mxu0 %v3071_v8 }
 0x147   : > { %2099 = vmatmul.mubr.bf16.gmra.mxu1 %v3072_v9  ;;  %1817 = vmatprep.mubr.bf16.mxu0 %v3073_v10  ;;  %v681_v9 = vld [vmem:[#allocation2 + $0xb0] sm:$0xff] }
 0x148   : > { %2106 = vmatprep.mubr.bf16.mxu1 %v3075_v11 }
 0x14e   : > { %1818 = vmatmul.mubr.bf16.gmra.mxu0 %v3077_v12 }
 0x14f   : > { %2107 = vmatmul.mubr.bf16.gmra.mxu1 %v3078_v13  ;;  %1825 = vmatprep.mubr.bf16.mxu0 %v3079_v14 }
 0x150   : > { %2114 = vmatprep.mubr.bf16.mxu1 %v3081_v15 }
 0x156   : > { %1826 = vmatmul.mubr.bf16.gmra.mxu0 %v3083_v16  ;;  %v3167_v16 = vld [vmem:[%s3657_s22 + $0x320] ss:$16 sps:$4 sm:$0xff]  }
 0x157   : > { %2115 = vmatmul.mubr.bf16.gmra.mxu1 %v3084_v17  ;;  %1833 = vmatprep.mubr.bf16.mxu0 %v3085_v18  ;;  %v682_v17 = vld [vmem:[#allocation2 + $0x1b0] sm:$0xff] }
 0x158   : > { %2122 = vmatprep.mubr.bf16.mxu1 %v3087_v19  ;;  %v3168_v19 = vld [vmem:[%s3657_s22 + $0x328] ss:$16 sps:$4 sm:$0xff]  }
 0x15e   : > { %1834 = vmatmul.mubr.bf16.gmra.mxu0 %v3089_v20  ;;  %v3169_v20 = vld [vmem:[%s3657_s22 + $0x344] ss:$16 sps:$4 sm:$0xff]  }
 0x15f   : > { %2123 = vmatmul.mubr.bf16.gmra.mxu1 %v3090_v21  ;;  %1841 = vmatprep.mubr.bf16.mxu0 %v3091_v22 }
 0x160   : > { %2130 = vmatprep.mubr.bf16.mxu1 %v3093_v23  ;;  %v3171_v23 = vld [vmem:[%s3657_s22 + $0x34c] ss:$16 sps:$4 sm:$0xff]  }
 0x166   : > { %1842 = vmatmul.mubr.bf16.gmra.mxu0 %v3095_v24 }
 0x167   : > { %2131 = vmatmul.mubr.bf16.gmra.mxu1 %v3096_v25  ;;  %1849 = vmatprep.mubr.bf16.mxu0 %v3097_v26 }
 0x168   : > { %2138 = vmatprep.mubr.bf16.mxu1 %v3099_v27  ;;  %v683_v27 = vld [vmem:[#allocation2 + $0xd8] sm:$0xff] }
 0x16e   : > { %1850 = vmatmul.mubr.bf16.gmra.mxu0 %v3101_v28 }
 0x16f   : > { %2139 = vmatmul.mubr.bf16.gmra.mxu1 %v3102_v29  ;;  %1857 = vmatprep.mubr.bf16.mxu0 %v3103_v30 }
 0x170   : > { %2146 = vmatprep.mubr.bf16.mxu1 %v3105_v31 }
 0x176   : > { %1858 = vmatmul.mubr.bf16.gmra.mxu0 %v3107_v32 }
 0x177   : > { %2147 = vmatmul.mubr.bf16.gmra.mxu1 %v3108_v33  ;;  %1865 = vmatprep.mubr.bf16.mxu0 %v3109_v34  ;;  %v3173_v34 = vld [vmem:[%s3657_s22 + $0x340] ss:$16 sps:$4 sm:$0xff]  }
 0x178   : > { %2154 = vmatprep.mubr.bf16.mxu1 %v3111_v35  ;;  %v684_v35 = vld [vmem:[#allocation2 + $0x18] sm:$0xff] }
 0x17e   : > { %1866 = vmatmul.mubr.bf16.gmra.mxu0 %v3113_v36 }
 0x17f   : > { %2155 = vmatmul.mubr.bf16.gmra.mxu1 %v3114_v37  ;;  %1873 = vmatprep.mubr.bf16.mxu0 %v3115_v38  ;;  %v3174_v37 = vld [vmem:[%s3657_s22 + $0x348] ss:$16 sps:$4 sm:$0xff]   ;;  %v3175_v38 = vld [vmem:[%s3657_s22 + $0x364] ss:$16 sps:$4 sm:$0xff]  }
 0x180   : > { %2162 = vmatprep.mubr.bf16.mxu1 %v3117_v39 }
 0x186   : > { %1874 = vmatmul.mubr.bf16.gmra.mxu0 %v3119_v40 }
 0x187   : > { %2163 = vmatmul.mubr.bf16.gmra.mxu1 %v3120_v41  ;;  %1881 = vmatprep.mubr.bf16.mxu0 %v3121_v42  ;;  %v3177_v41 = vld [vmem:[%s3657_s22 + $0x36c] ss:$16 sps:$4 sm:$0xff]  }
 0x188   : > { %2170 = vmatprep.mubr.bf16.mxu1 %v3123_v43 }
 0x18e   : > { %1882 = vmatmul.mubr.bf16.gmra.mxu0 %v3125_v44 }
 0x18f   : > { %2171 = vmatmul.mubr.bf16.gmra.mxu1 %v3126_v45  ;;  %1889 = vmatprep.mubr.bf16.mxu0 %v3127_v46  ;;  %v685_v45 = vld [vmem:[#allocation2 + $0x50] sm:$0xff] }
 0x190   : > { %2178 = vmatprep.mubr.bf16.mxu1 %v3129_v47 }
 0x196   : > { %1890 = vmatmul.mubr.bf16.gmra.mxu0 %v3131_v48 }
 0x197   : > { %2179 = vmatmul.mubr.bf16.gmra.mxu1 %v3132_v49  ;;  %1897 = vmatprep.mubr.bf16.mxu0 %v3133_v50 }
 0x198   : > { %2186 = vmatprep.mubr.bf16.mxu1 %v3135_v51 }
 0x19e   : > { %1898 = vmatmul.mubr.bf16.gmra.mxu0 %v3137_v52  ;;  %v3179_v52 = vld [vmem:[%s3657_s22 + $0x360] ss:$16 sps:$4 sm:$0xff]  }
 0x19f   : > { %2187 = vmatmul.mubr.bf16.gmra.mxu1 %v3138_v53  ;;  %1905 = vmatprep.mubr.bf16.mxu0 %v3139_v54  ;;  %v686_v53 = vld [vmem:[#allocation2 + $0x168] sm:$0xff] }
 0x1a0   : > { %2194 = vmatprep.mubr.bf16.mxu1 %v3141_v55  ;;  %v3180_v55 = vld [vmem:[%s3657_s22 + $0x368] ss:$16 sps:$4 sm:$0xff]  }
 0x1a6   : > { %1906 = vmatmul.mubr.bf16.gmra.mxu0 %v3143_v56  ;;  %v3183_v56 = vld [vmem:[%s3657_s22 + $0x384] ss:$16 sps:$4 sm:$0xff]  }
 0x1a7   : > { %2195 = vmatmul.mubr.bf16.gmra.mxu1 %v3144_v57  ;;  %1913 = vmatprep.mubr.bf16.mxu0 %v3145_v58 }
 0x1a8   : > { %2202 = vmatprep.mubr.bf16.mxu1 %v3147_v59  ;;  %v3186_v59 = vld [vmem:[%s3657_s22 + $0x38c] ss:$16 sps:$4 sm:$0xff]  }
 0x1ae   : > { %1914 = vmatmul.mubr.bf16.gmra.mxu0 %v3149_v60 }
 0x1af   : > { %2203 = vmatmul.mubr.bf16.gmra.mxu1 %v3150_v61  ;;  %1921 = vmatprep.mubr.bf16.mxu0 %v3151_v62 }
 0x1b0   : > { %2210 = vmatprep.mubr.bf16.mxu1 %v3153_v63  ;;  %v687_v63 = vld [vmem:[#allocation2 + $0x130] sm:$0xff] }
 0x1b6   : > { %1922 = vmatmul.mubr.bf16.gmra.mxu0 %v3155_v0 }
 0x1b7   : > { %2211 = vmatmul.mubr.bf16.gmra.mxu1 %v3156_v1  ;;  %1929 = vmatprep.mubr.bf16.mxu0 %v3157_v2 }
 0x1b8   : > { %2218 = vmatprep.mubr.bf16.mxu1 %v3159_v3 }
 0x1be   : > { %v1739_v8 = vpop.f32.mrf.mxu0  ;;  %1930 = vmatmul.mubr.bf16.gmra.mxu0 %v3161_v4 }
 0x1bf   : > { %v2028_v10 = vpop.f32.mrf.mxu1  ;;  %2219 = vmatmul.mubr.bf16.gmra.mxu1 %v3162_v5  ;;  %1937 = vmatprep.mubr.bf16.mxu0 %v3163_v6  ;;  %v3181_v6 = vld [vmem:[%s3657_s22 + $0x380] ss:$16 sps:$4 sm:$0xff]  }
 0x1c0   : > { %v2029_v11 = vadd.f32 %v2028_v10, %v1739_v8  ;;  %v1741_v12 = vpop.f32.mrf.mxu0  ;;  %2226 = vmatprep.mubr.bf16.mxu1 %v3165_v7  ;;  %v688_v7 = vld [vmem:[#allocation2 + $0x48] sm:$0xff]  ;;  %v3189_v10 = vld [vmem:[%s3657_s22 + $0x3a4] ss:$16 sps:$4 sm:$0xff]  }
 0x1c1   : > { %v2030_v13 = vpop.f32.mrf.mxu1 }
 0x1c2   : > { %v2283_v14 = vadd.f32 %v2029_v11, %v681_v9  ;;  %v1742_v15 = vpop.f32.mrf.mxu0  ;;  %v3184_v9 = vld [vmem:[%s3657_s22 + $0x388] ss:$16 sps:$4 sm:$0xff]   ;;  %v3192_v13 = vld [vmem:[%s3657_s22 + $0x3ac] ss:$16 sps:$4 sm:$0xff]  }
 0x1c3   : > { %v2031_v18 = vpop.f32.mrf.mxu1 }
 0x1c4   : > { %2347 = vst [vmem:[#allocation2 + $0xb0] sm:$0xff] %v2283_v14  ;;  %v2032_v21 = vadd.f32 %v2031_v18, %v1742_v15  ;;  %v1744_v22 = vpop.f32.mrf.mxu0 }
 0x1c5   : > { %v2033_v24 = vpop.f32.mrf.mxu1 }
 0x1c6   : > { %v2284_v25 = vadd.f32 %v2032_v21, %v682_v17  ;;  %v1747_v26 = vpop.f32.mrf.mxu0  ;;  %1938 = vmatmul.mubr.bf16.gmra.mxu0 %v3167_v16  ;;  %v689_v17 = vld [vmem:[#allocation2 + $0x180] sm:$0xff] }
 0x1c7   : > { %v2036_v28 = vpop.f32.mrf.mxu1  ;;  %2227 = vmatmul.mubr.bf16.gmra.mxu1 %v3168_v19  ;;  %1945 = vmatprep.mubr.bf16.mxu0 %v3169_v20  ;;  %v3187_v24 = vld [vmem:[%s3657_s22 + $0x3a0] ss:$16 sps:$4 sm:$0xff]  }
 0x1c8   : > { %2348 = vst [vmem:[#allocation2 + $0x1b0] sm:$0xff] %v2284_v25  ;;  %v2037_v29 = vadd.f32 %v2036_v28, %v1747_v26  ;;  %v1749_v30 = vpop.f32.mrf.mxu0  ;;  %2234 = vmatprep.mubr.bf16.mxu1 %v3171_v23  ;;  %v690_v25 = vld [vmem:[#allocation2 + $0x110] sm:$0xff] }
 0x1c9   : > { %v2038_v31 = vpop.f32.mrf.mxu1  ;;  %v3195_v28 = vld [vmem:[%s3657_s22 + $0x3c4] ss:$16 sps:$4 sm:$0xff]  }
 0x1ca   : > { %v2285_v32 = vadd.f32 %v2037_v29, %v683_v27  ;;  %v1750_v33 = vpop.f32.mrf.mxu0  ;;  %v3190_v27 = vld [vmem:[%s3657_s22 + $0x3a8] ss:$16 sps:$4 sm:$0xff]   ;;  %v3198_v31 = vld [vmem:[%s3657_s22 + $0x3cc] ss:$16 sps:$4 sm:$0xff]  }
 0x1cb   : > { %v2039_v36 = vpop.f32.mrf.mxu1 }
 0x1cc   : > { %2349 = vst [vmem:[#allocation2 + $0xd8] sm:$0xff] %v2285_v32  ;;  %v2040_v39 = vadd.f32 %v2039_v36, %v1750_v33  ;;  %v1752_v40 = vpop.f32.mrf.mxu0 }
 0x1cd   : > { %v2041_v42 = vpop.f32.mrf.mxu1 }
 0x1ce   : > { %v2286_v43 = vadd.f32 %v2040_v39, %v684_v35  ;;  %v1755_v44 = vpop.f32.mrf.mxu0  ;;  %1946 = vmatmul.mubr.bf16.gmra.mxu0 %v3173_v34  ;;  %v691_v35 = vld [vmem:[#allocation2 + $0x118] sm:$0xff]  ;;  %v3193_v42 = vld [vmem:[%s3657_s22 + $0x3c0] ss:$16 sps:$4 sm:$0xff]  }
 0x1cf   : > { %v2044_v46 = vpop.f32.mrf.mxu1  ;;  %2235 = vmatmul.mubr.bf16.gmra.mxu1 %v3174_v37  ;;  %1953 = vmatprep.mubr.bf16.mxu0 %v3175_v38 }
 0x1d0   : > { %2350 = vst [vmem:[#allocation2 + $0x18] sm:$0xff] %v2286_v43  ;;  %v2045_v47 = vadd.f32 %v2044_v46, %v1755_v44  ;;  %v1757_v48 = vpop.f32.mrf.mxu0  ;;  %2242 = vmatprep.mubr.bf16.mxu1 %v3177_v41  ;;  %v692_v43 = vld [vmem:[#allocation2 + $0x98] sm:$0xff]  ;;  %v3201_v46 = vld [vmem:[%s3657_s22 + $0x3e4] ss:$16 sps:$4 sm:$0xff]  }
 0x1d1   : > { %v2046_v49 = vpop.f32.mrf.mxu1 }
 0x1d2   : > { %v2287_v50 = vadd.f32 %v2045_v47, %v685_v45  ;;  %v1758_v51 = vpop.f32.mrf.mxu0  ;;  %v3196_v45 = vld [vmem:[%s3657_s22 + $0x3c8] ss:$16 sps:$4 sm:$0xff]   ;;  %v3204_v49 = vld [vmem:[%s3657_s22 + $0x3ec] ss:$16 sps:$4 sm:$0xff]  }
 0x1d3   : > { %v2047_v54 = vpop.f32.mrf.mxu1 }
 0x1d4   : > { %2351 = vst [vmem:[#allocation2 + $0x50] sm:$0xff] %v2287_v50  ;;  %v2048_v57 = vadd.f32 %v2047_v54, %v1758_v51  ;;  %v1760_v58 = vpop.f32.mrf.mxu0 }
 0x1d5   : > { %v2049_v60 = vpop.f32.mrf.mxu1 }
 0x1d6   : > { %v2288_v61 = vadd.f32 %v2048_v57, %v686_v53  ;;  %v1763_v62 = vpop.f32.mrf.mxu0  ;;  %1954 = vmatmul.mubr.bf16.gmra.mxu0 %v3179_v52  ;;  %v693_v53 = vld [vmem:[#allocation2 + $0x120] sm:$0xff] }
 0x1d7   : > { %v2052_v0 = vpop.f32.mrf.mxu1  ;;  %2243 = vmatmul.mubr.bf16.gmra.mxu1 %v3180_v55  ;;  %1961 = vmatprep.mubr.bf16.mxu0 %v3183_v56  ;;  %v3199_v60 = vld [vmem:[%s3657_s22 + $0x3e0] ss:$16 sps:$4 sm:$0xff]  }
 0x1d8   : > { %2352 = vst [vmem:[#allocation2 + $0x168] sm:$0xff] %v2288_v61  ;;  %v2053_v1 = vadd.f32 %v2052_v0, %v1763_v62  ;;  %v1765_v2 = vpop.f32.mrf.mxu0  ;;  %2250 = vmatprep.mubr.bf16.mxu1 %v3186_v59  ;;  %v694_v61 = vld [vmem:[#allocation2 + $0x150] sm:$0xff] }
 0x1d9   : > { %v2054_v3 = vpop.f32.mrf.mxu1 }
 0x1da   : > { %v2289_v4 = vadd.f32 %v2053_v1, %v687_v63  ;;  %v1766_v5 = vpop.f32.mrf.mxu0  ;;  %v3202_v63 = vld [vmem:[%s3657_s22 + $0x3e8] ss:$16 sps:$4 sm:$0xff]  }
 0x1db   : > { %v2055_v8 = vpop.f32.mrf.mxu1 }
 0x1dc   : > { %2353 = vst [vmem:[#allocation2 + $0x130] sm:$0xff] %v2289_v4  ;;  %v2056_v11 = vadd.f32 %v2055_v8, %v1766_v5  ;;  %v1768_v12 = vpop.f32.mrf.mxu0  ;;  %v695_v5 = vld [vmem:[#allocation2 + $0x108] sm:$0xff] }
 0x1dd   : > { %v2057_v14 = vpop.f32.mrf.mxu1  ;;  %v696_v12 = vld [vmem:[#allocation2 + $0x60] sm:$0xff] }
 0x1de   : > { %v2290_v15 = vadd.f32 %v2056_v11, %v688_v7  ;;  %v1771_v16 = vpop.f32.mrf.mxu0  ;;  %1962 = vmatmul.mubr.bf16.gmra.mxu0 %v3181_v6 }
 0x1df   : > { %v2060_v18 = vpop.f32.mrf.mxu1  ;;  %2251 = vmatmul.mubr.bf16.gmra.mxu1 %v3184_v9  ;;  %1969 = vmatprep.mubr.bf16.mxu0 %v3189_v10 }
 0x1e0   : > { %2354 = vst [vmem:[#allocation2 + $0x48] sm:$0xff] %v2290_v15  ;;  %v2061_v19 = vadd.f32 %v2060_v18, %v1771_v16  ;;  %v1773_v20 = vpop.f32.mrf.mxu0  ;;  %2258 = vmatprep.mubr.bf16.mxu1 %v3192_v13 }
 0x1e1   : > { %v2062_v21 = vpop.f32.mrf.mxu1 }
 0x1e2   : > { %v2291_v22 = vadd.f32 %v2061_v19, %v689_v17  ;;  %v1774_v23 = vpop.f32.mrf.mxu0  ;;  %v697_v19 = vld [vmem:[#allocation2 + $0xe0] sm:$0xff] }
 0x1e3   : > { %v2063_v26 = vpop.f32.mrf.mxu1 }
 0x1e4   : > { %2355 = vst [vmem:[#allocation2 + $0x180] sm:$0xff] %v2291_v22  ;;  %v2064_v29 = vadd.f32 %v2063_v26, %v1774_v23  ;;  %v1776_v30 = vpop.f32.mrf.mxu0  ;;  %v698_v26 = vld [vmem:[#allocation2 + $0x188] sm:$0xff] }
 0x1e5   : > { %v2065_v32 = vpop.f32.mrf.mxu1 }
 0x1e6   : > { %v2292_v33 = vadd.f32 %v2064_v29, %v690_v25  ;;  %v1779_v34 = vpop.f32.mrf.mxu0  ;;  %1970 = vmatmul.mubr.bf16.gmra.mxu0 %v3187_v24 }
 0x1e7   : > { %v2068_v36 = vpop.f32.mrf.mxu1  ;;  %2259 = vmatmul.mubr.bf16.gmra.mxu1 %v3190_v27  ;;  %1977 = vmatprep.mubr.bf16.mxu0 %v3195_v28 }
 0x1e8   : > { %2356 = vst [vmem:[#allocation2 + $0x110] sm:$0xff] %v2292_v33  ;;  %v2069_v37 = vadd.f32 %v2068_v36, %v1779_v34  ;;  %v1781_v38 = vpop.f32.mrf.mxu0  ;;  %2266 = vmatprep.mubr.bf16.mxu1 %v3198_v31  ;;  %v699_v33 = vld [vmem:[#allocation2 + $0x138] sm:$0xff] }
 0x1e9   : > { %v2070_v39 = vpop.f32.mrf.mxu1 }
 0x1ea   : > { %v2293_v40 = vadd.f32 %v2069_v37, %v691_v35  ;;  %v1782_v41 = vpop.f32.mrf.mxu0 }
 0x1eb   : > { %v2071_v44 = vpop.f32.mrf.mxu1 }
 0x1ec   : > { %2357 = vst [vmem:[#allocation2 + $0x118] sm:$0xff] %v2293_v40  ;;  %v2072_v47 = vadd.f32 %v2071_v44, %v1782_v41  ;;  %v1784_v48 = vpop.f32.mrf.mxu0  ;;  %v700_v40 = vld [vmem:[#allocation2 + $0x140] sm:$0xff] }
 0x1ed   : > { %v2073_v50 = vpop.f32.mrf.mxu1 }
 0x1ee   : > { %v2294_v51 = vadd.f32 %v2072_v47, %v692_v43  ;;  %v1787_v52 = vpop.f32.mrf.mxu0  ;;  %1978 = vmatmul.mubr.bf16.gmra.mxu0 %v3193_v42  ;;  %v701_v47 = vld [vmem:[#allocation2 + $0x80] sm:$0xff] }
 0x1ef   : > { %v2076_v54 = vpop.f32.mrf.mxu1  ;;  %2267 = vmatmul.mubr.bf16.gmra.mxu1 %v3196_v45  ;;  %1985 = vmatprep.mubr.bf16.mxu0 %v3201_v46 }
 0x1f0   : > { %2358 = vst [vmem:[#allocation2 + $0x98] sm:$0xff] %v2294_v51  ;;  %v2077_v55 = vadd.f32 %v2076_v54, %v1787_v52  ;;  %v1789_v56 = vpop.f32.mrf.mxu0  ;;  %2274 = vmatprep.mubr.bf16.mxu1 %v3204_v49  ;;  %v702_v54 = vld [vmem:[#allocation2 + $0x1a8] sm:$0xff] }
 0x1f1   : > { %v2078_v57 = vpop.f32.mrf.mxu1 }
 0x1f2   : > { %v2295_v58 = vadd.f32 %v2077_v55, %v693_v53  ;;  %v1790_v59 = vpop.f32.mrf.mxu0 }
 0x1f3   : > { %v2079_v62 = vpop.f32.mrf.mxu1 }
 0x1f4   : > { %2359 = vst [vmem:[#allocation2 + $0x120] sm:$0xff] %v2295_v58  ;;  %v2080_v0 = vadd.f32 %v2079_v62, %v1790_v59  ;;  %v1792_v1 = vpop.f32.mrf.mxu0 }
 0x1f5   : > { %v2081_v2 = vpop.f32.mrf.mxu1 }
 0x1f6   : > { %v2296_v3 = vadd.f32 %v2080_v0, %v694_v61  ;;  %v1795_v4 = vpop.f32.mrf.mxu0  ;;  %1986 = vmatmul.mubr.bf16.gmra.mxu0 %v3199_v60  ;;  %v703_v61 = vld [vmem:[#allocation2 + $0x1b8] sm:$0xff] }
 0x1f7   : > { %v2084_v6 = vpop.f32.mrf.mxu1  ;;  %2275 = vmatmul.mubr.bf16.gmra.mxu1 %v3202_v63 }
 0x1f8   : > { %2360 = vst [vmem:[#allocation2 + $0x150] sm:$0xff] %v2296_v3  ;;  %v2085_v7 = vadd.f32 %v2084_v6, %v1795_v4  ;;  %v1797_v8 = vpop.f32.mrf.mxu0  ;;  %v704_v4 = vld [vmem:[#allocation2 + $0x28] sm:$0xff] }
 0x1f9   : > { %v2086_v9 = vpop.f32.mrf.mxu1 }
 0x1fa   : > { %v2297_v10 = vadd.f32 %v2085_v7, %v695_v5  ;;  %v1798_v11 = vpop.f32.mrf.mxu0 }
 0x1fb   : > { %v2087_v13 = vpop.f32.mrf.mxu1 }
 0x1fc   : > { %2361 = vst [vmem:[#allocation2 + $0x108] sm:$0xff] %v2297_v10  ;;  %v2088_v14 = vadd.f32 %v2087_v13, %v1798_v11  ;;  %v1800_v15 = vpop.f32.mrf.mxu0  ;;  %v705_v11 = vld [vmem:[#allocation2 + $0x1e8] sm:$0xff] }
 0x1fd   : > { %v2089_v16 = vpop.f32.mrf.mxu1 }
 0x1fe   : > { %v2298_v17 = vadd.f32 %v2088_v14, %v696_v12  ;;  %v1803_v18 = vpop.f32.mrf.mxu0 }
 0x1ff   : > { %v2092_v20 = vpop.f32.mrf.mxu1 }
 0x200   : > { %2362 = vst [vmem:[#allocation2 + $0x60] sm:$0xff] %v2298_v17  ;;  %v2093_v21 = vadd.f32 %v2092_v20, %v1803_v18  ;;  %v1805_v22 = vpop.f32.mrf.mxu0  ;;  %v706_v18 = vld [vmem:[#allocation2 + $0xf8] sm:$0xff] }
 0x201   : > { %v2094_v23 = vpop.f32.mrf.mxu1 }
 0x202   : > { %v2299_v24 = vadd.f32 %v2093_v21, %v697_v19  ;;  %v1806_v25 = vpop.f32.mrf.mxu0 }
 0x203   : > { %v2095_v27 = vpop.f32.mrf.mxu1 }
 0x204   : > { %2363 = vst [vmem:[#allocation2 + $0xe0] sm:$0xff] %v2299_v24  ;;  %v2096_v28 = vadd.f32 %v2095_v27, %v1806_v25  ;;  %v1808_v29 = vpop.f32.mrf.mxu0  ;;  %v707_v25 = vld [vmem:[#allocation2 + $0x160] sm:$0xff] }
 0x205   : > { %v2097_v30 = vpop.f32.mrf.mxu1 }
 0x206   : > { %v2300_v31 = vadd.f32 %v2096_v28, %v698_v26  ;;  %v1811_v32 = vpop.f32.mrf.mxu0 }
 0x207   : > { %v2100_v34 = vpop.f32.mrf.mxu1 }
 0x208   : > { %2364 = vst [vmem:[#allocation2 + $0x188] sm:$0xff] %v2300_v31  ;;  %v2101_v35 = vadd.f32 %v2100_v34, %v1811_v32  ;;  %v1813_v36 = vpop.f32.mrf.mxu0  ;;  %v708_v32 = vld [vmem:[#allocation2 + $0x30] sm:$0xff] }
 0x209   : > { %v2102_v37 = vpop.f32.mrf.mxu1 }
 0x20a   : > { %v2301_v38 = vadd.f32 %v2101_v35, %v699_v33  ;;  %v1814_v39 = vpop.f32.mrf.mxu0 }
 0x20b   : > { %v2103_v41 = vpop.f32.mrf.mxu1 }
 0x20c   : > { %2365 = vst [vmem:[#allocation2 + $0x138] sm:$0xff] %v2301_v38  ;;  %v2104_v42 = vadd.f32 %v2103_v41, %v1814_v39  ;;  %v1816_v43 = vpop.f32.mrf.mxu0  ;;  %v709_v39 = vld [vmem:[#allocation2 + $0x1e0] sm:$0xff] }
 0x20d   : > { %v2105_v44 = vpop.f32.mrf.mxu1 }
 0x20e   : > { %v2302_v45 = vadd.f32 %v2104_v42, %v700_v40  ;;  %v1819_v46 = vpop.f32.mrf.mxu0 }
 0x20f   : > { %v2108_v48 = vpop.f32.mrf.mxu1 }
 0x210   : > { %2366 = vst [vmem:[#allocation2 + $0x140] sm:$0xff] %v2302_v45  ;;  %v2109_v49 = vadd.f32 %v2108_v48, %v1819_v46  ;;  %v1821_v50 = vpop.f32.mrf.mxu0  ;;  %v710_v46 = vld [vmem:[#allocation2] sm:$0xff] }
 0x211   : > { %v2110_v51 = vpop.f32.mrf.mxu1 }
 0x212   : > { %v2303_v52 = vadd.f32 %v2109_v49, %v701_v47  ;;  %v1822_v53 = vpop.f32.mrf.mxu0 }
 0x213   : > { %v2111_v55 = vpop.f32.mrf.mxu1 }
 0x214   : > { %2367 = vst [vmem:[#allocation2 + $0x80] sm:$0xff] %v2303_v52  ;;  %v2112_v56 = vadd.f32 %v2111_v55, %v1822_v53  ;;  %v1824_v57 = vpop.f32.mrf.mxu0  ;;  %v711_v53 = vld [vmem:[#allocation2 + $0xf0] sm:$0xff] }
 0x215   : > { %v2113_v58 = vpop.f32.mrf.mxu1 }
 0x216   : > { %v2304_v59 = vadd.f32 %v2112_v56, %v702_v54  ;;  %v1827_v60 = vpop.f32.mrf.mxu0 }
 0x217   : > { %v2116_v62 = vpop.f32.mrf.mxu1 }
 0x218   : > { %2368 = vst [vmem:[#allocation2 + $0x1a8] sm:$0xff] %v2304_v59  ;;  %v2117_v63 = vadd.f32 %v2116_v62, %v1827_v60  ;;  %v1829_v0 = vpop.f32.mrf.mxu0  ;;  %v712_v60 = vld [vmem:[#allocation2 + $0x8] sm:$0xff] }
 0x219   : > { %v2118_v1 = vpop.f32.mrf.mxu1 }
 0x21a   : > { %v2305_v2 = vadd.f32 %v2117_v63, %v703_v61  ;;  %v1830_v3 = vpop.f32.mrf.mxu0 }
 0x21b   : > { %v2119_v5 = vpop.f32.mrf.mxu1 }
 0x21c   : > { %2369 = vst [vmem:[#allocation2 + $0x1b8] sm:$0xff] %v2305_v2  ;;  %v2120_v6 = vadd.f32 %v2119_v5, %v1830_v3  ;;  %v1832_v7 = vpop.f32.mrf.mxu0  ;;  %v713_v3 = vld [vmem:[#allocation2 + $0x148] sm:$0xff] }
 0x21d   : > { %v2121_v8 = vpop.f32.mrf.mxu1 }
 0x21e   : > { %v2306_v9 = vadd.f32 %v2120_v6, %v704_v4  ;;  %v1835_v10 = vpop.f32.mrf.mxu0 }
 0x21f   : > { %v2124_v12 = vpop.f32.mrf.mxu1 }
 0x220   : > { %2370 = vst [vmem:[#allocation2 + $0x28] sm:$0xff] %v2306_v9  ;;  %v2125_v13 = vadd.f32 %v2124_v12, %v1835_v10  ;;  %v1837_v14 = vpop.f32.mrf.mxu0  ;;  %v714_v10 = vld [vmem:[#allocation2 + $0x1d0] sm:$0xff] }
 0x221   : > { %v2126_v15 = vpop.f32.mrf.mxu1 }
 0x222   : > { %v2307_v16 = vadd.f32 %v2125_v13, %v705_v11  ;;  %v1838_v17 = vpop.f32.mrf.mxu0 }
 0x223   : > { %v2127_v19 = vpop.f32.mrf.mxu1 }
 0x224   : > { %2371 = vst [vmem:[#allocation2 + $0x1e8] sm:$0xff] %v2307_v16  ;;  %v2128_v20 = vadd.f32 %v2127_v19, %v1838_v17  ;;  %v1840_v21 = vpop.f32.mrf.mxu0  ;;  %v715_v17 = vld [vmem:[#allocation2 + $0x100] sm:$0xff] }
 0x225   : > { %v2129_v22 = vpop.f32.mrf.mxu1 }
 0x226   : > { %v2308_v23 = vadd.f32 %v2128_v20, %v706_v18  ;;  %v1843_v24 = vpop.f32.mrf.mxu0 }
 0x227   : > { %v2132_v26 = vpop.f32.mrf.mxu1 }
 0x228   : > { %2372 = vst [vmem:[#allocation2 + $0xf8] sm:$0xff] %v2308_v23  ;;  %v2133_v27 = vadd.f32 %v2132_v26, %v1843_v24  ;;  %v1845_v28 = vpop.f32.mrf.mxu0  ;;  %v716_v24 = vld [vmem:[#allocation2 + $0xc8] sm:$0xff] }
 0x229   : > { %v2134_v29 = vpop.f32.mrf.mxu1 }
 0x22a   : > { %v2309_v30 = vadd.f32 %v2133_v27, %v707_v25  ;;  %v1846_v31 = vpop.f32.mrf.mxu0 }
 0x22b   : > { %v2135_v33 = vpop.f32.mrf.mxu1 }
 0x22c   : > { %2373 = vst [vmem:[#allocation2 + $0x160] sm:$0xff] %v2309_v30  ;;  %v2136_v34 = vadd.f32 %v2135_v33, %v1846_v31  ;;  %v1848_v35 = vpop.f32.mrf.mxu0  ;;  %v717_v31 = vld [vmem:[#allocation2 + $0x40] sm:$0xff] }
 0x22d   : > { %v2137_v36 = vpop.f32.mrf.mxu1 }
 0x22e   : > { %v2310_v37 = vadd.f32 %v2136_v34, %v708_v32  ;;  %v1851_v38 = vpop.f32.mrf.mxu0 }
 0x22f   : > { %v2140_v40 = vpop.f32.mrf.mxu1 }
 0x230   : > { %2374 = vst [vmem:[#allocation2 + $0x30] sm:$0xff] %v2310_v37  ;;  %v2141_v41 = vadd.f32 %v2140_v40, %v1851_v38  ;;  %v1853_v42 = vpop.f32.mrf.mxu0  ;;  %v718_v38 = vld [vmem:[#allocation2 + $0x1f8] sm:$0xff] }
 0x231   : > { %v2142_v43 = vpop.f32.mrf.mxu1 }
 0x232   : > { %v2311_v44 = vadd.f32 %v2141_v41, %v709_v39  ;;  %v1854_v45 = vpop.f32.mrf.mxu0 }
 0x233   : > { %v2143_v47 = vpop.f32.mrf.mxu1 }
 0x234   : > { %2375 = vst [vmem:[#allocation2 + $0x1e0] sm:$0xff] %v2311_v44  ;;  %v2144_v48 = vadd.f32 %v2143_v47, %v1854_v45  ;;  %v1856_v49 = vpop.f32.mrf.mxu0  ;;  %v719_v45 = vld [vmem:[#allocation2 + $0x20] sm:$0xff] }
 0x235   : > { %v2145_v50 = vpop.f32.mrf.mxu1 }
 0x236   : > { %v2312_v51 = vadd.f32 %v2144_v48, %v710_v46  ;;  %v1859_v52 = vpop.f32.mrf.mxu0 }
 0x237   : > { %v2148_v54 = vpop.f32.mrf.mxu1 }
 0x238   : > { %2376 = vst [vmem:[#allocation2] sm:$0xff] %v2312_v51  ;;  %v2149_v55 = vadd.f32 %v2148_v54, %v1859_v52  ;;  %v1861_v56 = vpop.f32.mrf.mxu0  ;;  %v720_v52 = vld [vmem:[#allocation2 + $0x128] sm:$0xff] }
 0x239   : > { %v2150_v57 = vpop.f32.mrf.mxu1 }
 0x23a   : > { %v2313_v58 = vadd.f32 %v2149_v55, %v711_v53  ;;  %v1862_v59 = vpop.f32.mrf.mxu0 }
 0x23b   : > { %v2151_v61 = vpop.f32.mrf.mxu1 }
 0x23c   : > { %2377 = vst [vmem:[#allocation2 + $0xf0] sm:$0xff] %v2313_v58  ;;  %v2152_v62 = vadd.f32 %v2151_v61, %v1862_v59  ;;  %v1864_v63 = vpop.f32.mrf.mxu0  ;;  %v721_v59 = vld [vmem:[#allocation2 + $0x1a0] sm:$0xff] }
 0x23d   : > { %v2153_v0 = vpop.f32.mrf.mxu1 }
 0x23e   : > { %v2314_v1 = vadd.f32 %v2152_v62, %v712_v60  ;;  %v1867_v2 = vpop.f32.mrf.mxu0 }
 0x23f   : > { %v2156_v4 = vpop.f32.mrf.mxu1 }
 0x240   : > { %2378 = vst [vmem:[#allocation2 + $0x8] sm:$0xff] %v2314_v1  ;;  %v2157_v5 = vadd.f32 %v2156_v4, %v1867_v2  ;;  %v1869_v6 = vpop.f32.mrf.mxu0  ;;  %v722_v2 = vld [vmem:[#allocation2 + $0x1f0] sm:$0xff] }
 0x241   : > { %v2158_v7 = vpop.f32.mrf.mxu1 }
 0x242   : > { %v2315_v8 = vadd.f32 %v2157_v5, %v713_v3  ;;  %v1870_v9 = vpop.f32.mrf.mxu0 }
 0x243   : > { %v2159_v11 = vpop.f32.mrf.mxu1 }
 0x244   : > { %2379 = vst [vmem:[#allocation2 + $0x148] sm:$0xff] %v2315_v8  ;;  %v2160_v12 = vadd.f32 %v2159_v11, %v1870_v9  ;;  %v1872_v13 = vpop.f32.mrf.mxu0  ;;  %v723_v9 = vld [vmem:[#allocation2 + $0xe8] sm:$0xff] }
 0x245   : > { %v2161_v14 = vpop.f32.mrf.mxu1 }
 0x246   : > { %v2316_v15 = vadd.f32 %v2160_v12, %v714_v10  ;;  %v1875_v16 = vpop.f32.mrf.mxu0 }
 0x247   : > { %v2164_v18 = vpop.f32.mrf.mxu1 }
 0x248   : > { %2380 = vst [vmem:[#allocation2 + $0x1d0] sm:$0xff] %v2316_v15  ;;  %v2165_v19 = vadd.f32 %v2164_v18, %v1875_v16  ;;  %v1877_v20 = vpop.f32.mrf.mxu0  ;;  %v724_v16 = vld [vmem:[#allocation2 + $0x78] sm:$0xff] }
 0x249   : > { %v2166_v21 = vpop.f32.mrf.mxu1 }
 0x24a   : > { %v2317_v22 = vadd.f32 %v2165_v19, %v715_v17  ;;  %v1878_v23 = vpop.f32.mrf.mxu0 }
 0x24b   : > { %v2167_v25 = vpop.f32.mrf.mxu1 }
 0x24c   : > { %2381 = vst [vmem:[#allocation2 + $0x100] sm:$0xff] %v2317_v22  ;;  %v2168_v26 = vadd.f32 %v2167_v25, %v1878_v23  ;;  %v1880_v27 = vpop.f32.mrf.mxu0  ;;  %v725_v23 = vld [vmem:[#allocation2 + $0x70] sm:$0xff] }
 0x24d   : > { %v2169_v28 = vpop.f32.mrf.mxu1 }
 0x24e   : > { %v2318_v29 = vadd.f32 %v2168_v26, %v716_v24  ;;  %v1883_v30 = vpop.f32.mrf.mxu0 }
 0x24f   : > { %v2172_v32 = vpop.f32.mrf.mxu1 }
 0x250   : > { %2382 = vst [vmem:[#allocation2 + $0xc8] sm:$0xff] %v2318_v29  ;;  %v2173_v33 = vadd.f32 %v2172_v32, %v1883_v30  ;;  %v1885_v34 = vpop.f32.mrf.mxu0  ;;  %v726_v30 = vld [vmem:[#allocation2 + $0x90] sm:$0xff] }
 0x251   : > { %v2174_v35 = vpop.f32.mrf.mxu1 }
 0x252   : > { %v2319_v36 = vadd.f32 %v2173_v33, %v717_v31  ;;  %v1886_v37 = vpop.f32.mrf.mxu0 }
 0x253   : > { %v2175_v39 = vpop.f32.mrf.mxu1 }
 0x254   : > { %2383 = vst [vmem:[#allocation2 + $0x40] sm:$0xff] %v2319_v36  ;;  %v2176_v40 = vadd.f32 %v2175_v39, %v1886_v37  ;;  %v1888_v41 = vpop.f32.mrf.mxu0  ;;  %v727_v37 = vld [vmem:[#allocation2 + $0x1d8] sm:$0xff] }
 0x255   : > { %v2177_v42 = vpop.f32.mrf.mxu1 }
 0x256   : > { %v2320_v43 = vadd.f32 %v2176_v40, %v718_v38  ;;  %v1891_v44 = vpop.f32.mrf.mxu0 }
 0x257   : > { %v2180_v46 = vpop.f32.mrf.mxu1 }
 0x258   : > { %2384 = vst [vmem:[#allocation2 + $0x1f8] sm:$0xff] %v2320_v43  ;;  %v2181_v47 = vadd.f32 %v2180_v46, %v1891_v44  ;;  %v1893_v48 = vpop.f32.mrf.mxu0  ;;  %v728_v44 = vld [vmem:[#allocation2 + $0xd0] sm:$0xff] }
 0x259   : > { %v2182_v49 = vpop.f32.mrf.mxu1 }
 0x25a   : > { %v2321_v50 = vadd.f32 %v2181_v47, %v719_v45  ;;  %v1894_v51 = vpop.f32.mrf.mxu0 }
 0x25b   : > { %v2183_v53 = vpop.f32.mrf.mxu1 }
 0x25c   : > { %2385 = vst [vmem:[#allocation2 + $0x20] sm:$0xff] %v2321_v50  ;;  %v2184_v54 = vadd.f32 %v2183_v53, %v1894_v51  ;;  %v1896_v55 = vpop.f32.mrf.mxu0  ;;  %v729_v51 = vld [vmem:[#allocation2 + $0xb8] sm:$0xff] }
 0x25d   : > { %v2185_v56 = vpop.f32.mrf.mxu1 }
 0x25e   : > { %v2322_v57 = vadd.f32 %v2184_v54, %v720_v52  ;;  %v1899_v58 = vpop.f32.mrf.mxu0 }
 0x25f   : > { %v2188_v60 = vpop.f32.mrf.mxu1 }
 0x260   : > { %2386 = vst [vmem:[#allocation2 + $0x128] sm:$0xff] %v2322_v57  ;;  %v2189_v61 = vadd.f32 %v2188_v60, %v1899_v58  ;;  %v1901_v62 = vpop.f32.mrf.mxu0  ;;  %v730_v58 = vld [vmem:[#allocation2 + $0x88] sm:$0xff] }
 0x261   : > { %v2190_v63 = vpop.f32.mrf.mxu1 }
 0x262   : > { %v2323_v0 = vadd.f32 %v2189_v61, %v721_v59  ;;  %v1902_v1 = vpop.f32.mrf.mxu0 }
 0x263   : > { %v2191_v3 = vpop.f32.mrf.mxu1 }
 0x264   : > { %2387 = vst [vmem:[#allocation2 + $0x1a0] sm:$0xff] %v2323_v0  ;;  %v2192_v4 = vadd.f32 %v2191_v3, %v1902_v1  ;;  %v1904_v5 = vpop.f32.mrf.mxu0  ;;  %v731_v1 = vld [vmem:[#allocation2 + $0xa8] sm:$0xff] }
 0x265   : > { %v2193_v6 = vpop.f32.mrf.mxu1 }
 0x266   : > { %v2324_v7 = vadd.f32 %v2192_v4, %v722_v2  ;;  %v1907_v8 = vpop.f32.mrf.mxu0 }
 0x267   : > { %v2196_v10 = vpop.f32.mrf.mxu1 }
 0x268   : > { %2388 = vst [vmem:[#allocation2 + $0x1f0] sm:$0xff] %v2324_v7  ;;  %v2197_v11 = vadd.f32 %v2196_v10, %v1907_v8  ;;  %v1909_v12 = vpop.f32.mrf.mxu0  ;;  %v732_v8 = vld [vmem:[#allocation2 + $0x1c8] sm:$0xff] }
 0x269   : > { %v2198_v13 = vpop.f32.mrf.mxu1 }
 0x26a   : > { %v2325_v14 = vadd.f32 %v2197_v11, %v723_v9  ;;  %v1910_v15 = vpop.f32.mrf.mxu0 }
 0x26b   : > { %v2199_v17 = vpop.f32.mrf.mxu1 }
 0x26c   : > { %2389 = vst [vmem:[#allocation2 + $0xe8] sm:$0xff] %v2325_v14  ;;  %v2200_v18 = vadd.f32 %v2199_v17, %v1910_v15  ;;  %v1912_v19 = vpop.f32.mrf.mxu0  ;;  %v733_v15 = vld [vmem:[#allocation2 + $0x170] sm:$0xff] }
 0x26d   : > { %v2201_v20 = vpop.f32.mrf.mxu1 }
 0x26e   : > { %v2326_v21 = vadd.f32 %v2200_v18, %v724_v16  ;;  %v1915_v22 = vpop.f32.mrf.mxu0 }
 0x26f   : > { %v2204_v24 = vpop.f32.mrf.mxu1 }
 0x270   : > { %2390 = vst [vmem:[#allocation2 + $0x78] sm:$0xff] %v2326_v21  ;;  %v2205_v25 = vadd.f32 %v2204_v24, %v1915_v22  ;;  %v1917_v26 = vpop.f32.mrf.mxu0  ;;  %v734_v22 = vld [vmem:[#allocation2 + $0x178] sm:$0xff] }
 0x271   : > { %v2206_v27 = vpop.f32.mrf.mxu1 }
 0x272   : > { %v2327_v28 = vadd.f32 %v2205_v25, %v725_v23  ;;  %v1918_v29 = vpop.f32.mrf.mxu0 }
 0x273   : > { %v2207_v31 = vpop.f32.mrf.mxu1 }
 0x274   : > { %2391 = vst [vmem:[#allocation2 + $0x70] sm:$0xff] %v2327_v28  ;;  %v2208_v32 = vadd.f32 %v2207_v31, %v1918_v29  ;;  %v1920_v33 = vpop.f32.mrf.mxu0  ;;  %v735_v29 = vld [vmem:[#allocation2 + $0x68] sm:$0xff] }
 0x275   : > { %v2209_v34 = vpop.f32.mrf.mxu1 }
 0x276   : > { %v2328_v35 = vadd.f32 %v2208_v32, %v726_v30  ;;  %v1923_v36 = vpop.f32.mrf.mxu0 }
 0x277   : > { %v2212_v38 = vpop.f32.mrf.mxu1 }
 0x278   : > { %2392 = vst [vmem:[#allocation2 + $0x90] sm:$0xff] %v2328_v35  ;;  %v2213_v39 = vadd.f32 %v2212_v38, %v1923_v36  ;;  %v1925_v40 = vpop.f32.mrf.mxu0  ;;  %v736_v36 = vld [vmem:[#allocation2 + $0x190] sm:$0xff] }
 0x279   : > { %v2214_v41 = vpop.f32.mrf.mxu1 }
 0x27a   : > { %v2329_v42 = vadd.f32 %v2213_v39, %v727_v37  ;;  %v1926_v43 = vpop.f32.mrf.mxu0 }
 0x27b   : > { %v2215_v45 = vpop.f32.mrf.mxu1 }
 0x27c   : > { %2393 = vst [vmem:[#allocation2 + $0x1d8] sm:$0xff] %v2329_v42  ;;  %v2216_v46 = vadd.f32 %v2215_v45, %v1926_v43  ;;  %v1928_v47 = vpop.f32.mrf.mxu0  ;;  %v737_v43 = vld [vmem:[#allocation2 + $0x198] sm:$0xff] }
 0x27d   : > { %v2217_v48 = vpop.f32.mrf.mxu1 }
 0x27e   : > { %v2330_v49 = vadd.f32 %v2216_v46, %v728_v44  ;;  %v1931_v50 = vpop.f32.mrf.mxu0 }
 0x27f   : > { %v2220_v52 = vpop.f32.mrf.mxu1 }
 0x280   : > { %2394 = vst [vmem:[#allocation2 + $0xd0] sm:$0xff] %v2330_v49  ;;  %v2221_v53 = vadd.f32 %v2220_v52, %v1931_v50  ;;  %v1933_v54 = vpop.f32.mrf.mxu0  ;;  %v738_v50 = vld [vmem:[#allocation2 + $0x38] sm:$0xff] }
 0x281   : > { %v2222_v55 = vpop.f32.mrf.mxu1 }
 0x282   : > { %v2331_v56 = vadd.f32 %v2221_v53, %v729_v51  ;;  %v1934_v57 = vpop.f32.mrf.mxu0 }
 0x283   : > { %v2223_v59 = vpop.f32.mrf.mxu1 }
 0x284   : > { %2395 = vst [vmem:[#allocation2 + $0xb8] sm:$0xff] %v2331_v56  ;;  %v2224_v60 = vadd.f32 %v2223_v59, %v1934_v57  ;;  %v1936_v61 = vpop.f32.mrf.mxu0  ;;  %v739_v57 = vld [vmem:[#allocation2 + $0xc0] sm:$0xff] }
 0x285   : > { %v2225_v62 = vpop.f32.mrf.mxu1 }
 0x286   : > { %v2332_v63 = vadd.f32 %v2224_v60, %v730_v58  ;;  %v1939_v0 = vpop.f32.mrf.mxu0 }
 0x287   : > { %v2228_v2 = vpop.f32.mrf.mxu1 }
 0x288   : > { %2396 = vst [vmem:[#allocation2 + $0x88] sm:$0xff] %v2332_v63  ;;  %v2229_v3 = vadd.f32 %v2228_v2, %v1939_v0  ;;  %v1941_v4 = vpop.f32.mrf.mxu0  ;;  %v740_v0 = vld [vmem:[#allocation2 + $0x1c0] sm:$0xff] }
 0x289   : > { %v2230_v5 = vpop.f32.mrf.mxu1 }
 0x28a   : > { %v2333_v6 = vadd.f32 %v2229_v3, %v731_v1  ;;  %v1942_v7 = vpop.f32.mrf.mxu0 }
 0x28b   : > { %v2231_v9 = vpop.f32.mrf.mxu1 }
 0x28c   : > { %2397 = vst [vmem:[#allocation2 + $0xa8] sm:$0xff] %v2333_v6  ;;  %v2232_v10 = vadd.f32 %v2231_v9, %v1942_v7  ;;  %v1944_v11 = vpop.f32.mrf.mxu0  ;;  %v741_v7 = vld [vmem:[#allocation2 + $0x158] sm:$0xff] }
 0x28d   : > { %v2233_v12 = vpop.f32.mrf.mxu1 }
 0x28e   : > { %v2334_v13 = vadd.f32 %v2232_v10, %v732_v8  ;;  %v1947_v14 = vpop.f32.mrf.mxu0 }
 0x28f   : > { %v2236_v16 = vpop.f32.mrf.mxu1 }
 0x290   : > { %2398 = vst [vmem:[#allocation2 + $0x1c8] sm:$0xff] %v2334_v13  ;;  %v2237_v17 = vadd.f32 %v2236_v16, %v1947_v14  ;;  %v1949_v18 = vpop.f32.mrf.mxu0  ;;  %v742_v14 = vld [vmem:[#allocation2 + $0x10] sm:$0xff] }
 0x291   : > { %v2238_v19 = vpop.f32.mrf.mxu1 }
 0x292   : > { %v2335_v20 = vadd.f32 %v2237_v17, %v733_v15  ;;  %v1950_v21 = vpop.f32.mrf.mxu0 }
 0x293   : > { %v2239_v23 = vpop.f32.mrf.mxu1 }
 0x294   : > { %2399 = vst [vmem:[#allocation2 + $0x170] sm:$0xff] %v2335_v20  ;;  %v2240_v24 = vadd.f32 %v2239_v23, %v1950_v21  ;;  %v1952_v25 = vpop.f32.mrf.mxu0  ;;  %v743_v21 = vld [vmem:[#allocation2 + $0x58] sm:$0xff] }
 0x295   : > { %v2241_v26 = vpop.f32.mrf.mxu1 }
 0x296   : > { %v2336_v27 = vadd.f32 %v2240_v24, %v734_v22  ;;  %v1955_v28 = vpop.f32.mrf.mxu0 }
 0x297   : > { %v2244_v30 = vpop.f32.mrf.mxu1 }
 0x298   : > { %2400 = vst [vmem:[#allocation2 + $0x178] sm:$0xff] %v2336_v27  ;;  %v2245_v31 = vadd.f32 %v2244_v30, %v1955_v28  ;;  %v1957_v32 = vpop.f32.mrf.mxu0  ;;  %v744_v28 = vld [vmem:[#allocation2 + $0xa0] sm:$0xff] }
 0x299   : > { %v2246_v33 = vpop.f32.mrf.mxu1 }
 0x29a   : > { %v2337_v34 = vadd.f32 %v2245_v31, %v735_v29  ;;  %v1958_v35 = vpop.f32.mrf.mxu0 }
 0x29b   : > { %v2247_v37 = vpop.f32.mrf.mxu1 }
 0x29c   : > { %2401 = vst [vmem:[#allocation2 + $0x68] sm:$0xff] %v2337_v34  ;;  %v2248_v38 = vadd.f32 %v2247_v37, %v1958_v35  ;;  %v1960_v39 = vpop.f32.mrf.mxu0 }
 0x29d   : > { %v2249_v40 = vpop.f32.mrf.mxu1 }
 0x29e   : > { %v2338_v41 = vadd.f32 %v2248_v38, %v736_v36  ;;  %v1963_v42 = vpop.f32.mrf.mxu0 }
 0x29f   : > { %v2252_v44 = vpop.f32.mrf.mxu1 }
 0x2a0   : > { %2402 = vst [vmem:[#allocation2 + $0x190] sm:$0xff] %v2338_v41  ;;  %v2253_v45 = vadd.f32 %v2252_v44, %v1963_v42  ;;  %v1965_v46 = vpop.f32.mrf.mxu0 }
 0x2a1   : > { %v2254_v47 = vpop.f32.mrf.mxu1 }
 0x2a2   : > { %v2339_v48 = vadd.f32 %v2253_v45, %v737_v43  ;;  %v1966_v49 = vpop.f32.mrf.mxu0 }
 0x2a3   : > { %v2255_v51 = vpop.f32.mrf.mxu1 }
 0x2a4   : > { %2403 = vst [vmem:[#allocation2 + $0x198] sm:$0xff] %v2339_v48  ;;  %v2256_v52 = vadd.f32 %v2255_v51, %v1966_v49  ;;  %v1968_v53 = vpop.f32.mrf.mxu0 }
 0x2a5   : > { %v2257_v54 = vpop.f32.mrf.mxu1 }
 0x2a6   : > { %v2340_v55 = vadd.f32 %v2256_v52, %v738_v50  ;;  %v1971_v56 = vpop.f32.mrf.mxu0 }
 0x2a7   : > { %v2260_v58 = vpop.f32.mrf.mxu1 }
 0x2a8   : > { %2404 = vst [vmem:[#allocation2 + $0x38] sm:$0xff] %v2340_v55  ;;  %v2261_v59 = vadd.f32 %v2260_v58, %v1971_v56  ;;  %v1973_v60 = vpop.f32.mrf.mxu0 }
 0x2a9   : > { %v2262_v61 = vpop.f32.mrf.mxu1 }
 0x2aa   : > { %v2341_v62 = vadd.f32 %v2261_v59, %v739_v57  ;;  %v1974_v63 = vpop.f32.mrf.mxu0 }
 0x2ab   : > { %v2263_v1 = vpop.f32.mrf.mxu1 }
 0x2ac   : > { %2405 = vst [vmem:[#allocation2 + $0xc0] sm:$0xff] %v2341_v62  ;;  %v2264_v2 = vadd.f32 %v2263_v1, %v1974_v63  ;;  %v1976_v3 = vpop.f32.mrf.mxu0 }
 0x2ad   : > { %v2265_v4 = vpop.f32.mrf.mxu1 }
 0x2ae   : > { %v2342_v5 = vadd.f32 %v2264_v2, %v740_v0  ;;  %v1979_v6 = vpop.f32.mrf.mxu0 }
 0x2af   : > { %v2268_v8 = vpop.f32.mrf.mxu1 }
 0x2b0   : > { %2406 = vst [vmem:[#allocation2 + $0x1c0] sm:$0xff] %v2342_v5  ;;  %v2269_v9 = vadd.f32 %v2268_v8, %v1979_v6  ;;  %v1981_v10 = vpop.f32.mrf.mxu0 }
 0x2b1   : > { %v2270_v11 = vpop.f32.mrf.mxu1 }
 0x2b2   : > { %v2343_v12 = vadd.f32 %v2269_v9, %v741_v7  ;;  %v1982_v13 = vpop.f32.mrf.mxu0 }
 0x2b3   : > { %v2271_v15 = vpop.f32.mrf.mxu1 }
 0x2b4   : > { %2407 = vst [vmem:[#allocation2 + $0x158] sm:$0xff] %v2343_v12  ;;  %v2272_v16 = vadd.f32 %v2271_v15, %v1982_v13  ;;  %v1984_v17 = vpop.f32.mrf.mxu0 }
 0x2b5   : > { %v2273_v18 = vpop.f32.mrf.mxu1 }
 0x2b6   : > { %v2344_v19 = vadd.f32 %v2272_v16, %v742_v14  ;;  %v1987_v20 = vpop.f32.mrf.mxu0 }
 0x2b7   : > { %v2276_v22 = vpop.f32.mrf.mxu1 }
 0x2b8   : > { %2408 = vst [vmem:[#allocation2 + $0x10] sm:$0xff] %v2344_v19  ;;  %v2277_v23 = vadd.f32 %v2276_v22, %v1987_v20  ;;  %v1989_v24 = vpop.f32.mrf.mxu0 }
 0x2b9   : > { %v2278_v25 = vpop.f32.mrf.mxu1 }
 0x2ba   : > { %v2345_v26 = vadd.f32 %v2277_v23, %v743_v21  ;;  %v1990_v27 = vpop.f32.mrf.mxu0 }
 0x2bb   : > { %v2279_v29 = vpop.f32.mrf.mxu1 }
 0x2bc   : > { %2409 = vst [vmem:[#allocation2 + $0x58] sm:$0xff] %v2345_v26  ;;  %v2280_v30 = vadd.f32 %v2279_v29, %v1990_v27  ;;  %v1992_v31 = vpop.f32.mrf.mxu0 }
 0x2bd   : > { %v2281_v32 = vpop.f32.mrf.mxu1 }
 0x2be   : > { %v2346_v33 = vadd.f32 %v2280_v30, %v744_v28 }
 0x2c0   : > { %2410 = vst [vmem:[#allocation2 + $0xa0] sm:$0xff] %v2346_v33 }
 0x2c1 PF: > { %p2916_p9 = scmp.ne.s32.totalorder %s3269_s28, 1 }
 0x2c3   : > { %2414 = sbr.rel (%p2916_p9) target bundleno = 747 (0x2eb), region = 67 }
 0x2c8   : > { %v2415_v34 = vld [vmem:[#allocation2 + $0xb0] sm:$0xff]  ;;  %v3929_v35 = vld [vmem:[%s4083_s4] ss:$0 sm:$0xff]  ;;  %v2417_v39 = vld [vmem:[#allocation2 + $0xd8] sm:$0xff] }
 0x2c9   : > { %v2416_v36 = vld [vmem:[#allocation2 + $0x1b0] sm:$0xff]  ;;  %v2486_v37 = vadd.f32 %v3929_v35, %v2415_v34  ;;  %v2418_v40 = vld [vmem:[#allocation2 + $0x18] sm:$0xff]  ;;  %v2488_v42 = vadd.f32 %v3929_v35, %v2417_v39  ;;  %v2420_v45 = vld [vmem:[#allocation2 + $0x168] sm:$0xff] }
 0x2ca   : > { %v2487_v38 = vadd.f32 %v3929_v35, %v2416_v36  ;;  %v2419_v41 = vld [vmem:[#allocation2 + $0x50] sm:$0xff]  ;;  %v2489_v43 = vadd.f32 %v3929_v35, %v2418_v40  ;;  %v2422_v47 = vld [vmem:[#allocation2 + $0x48] sm:$0xff]  ;;  %v2491_v48 = vadd.f32 %v3929_v35, %v2420_v45  ;;  %v2423_v51 = vld [vmem:[#allocation2 + $0x180] sm:$0xff] }
 0x2cb   : > { %v2490_v44 = vadd.f32 %v3929_v35, %v2419_v41  ;;  %v2421_v46 = vld [vmem:[#allocation2 + $0x130] sm:$0xff]  ;;  %2550 = vst [vmem:[%s3655_s21] sm:$0xff] %v2486_v37  ;;  %v2493_v50 = vadd.f32 %v3929_v35, %v2422_v47  ;;  %v2425_v53 = vld [vmem:[#allocation2 + $0x118] sm:$0xff]  ;;  %2552 = vst [vmem:[%s3655_s21 + $0x10] sm:$0xff] %v2488_v42  ;;  %v2494_v54 = vadd.f32 %v3929_v35, %v2423_v51 }
 0x2cc   : > { %2551 = vst [vmem:[%s3655_s21 + $0x8] sm:$0xff] %v2487_v38  ;;  %v2492_v49 = vadd.f32 %v3929_v35, %v2421_v46  ;;  %v2424_v52 = vld [vmem:[#allocation2 + $0x110] sm:$0xff]  ;;  %2553 = vst [vmem:[%s3655_s21 + $0x18] sm:$0xff] %v2489_v43  ;;  %v2496_v56 = vadd.f32 %v3929_v35, %v2425_v53  ;;  %v2426_v57 = vld [vmem:[#allocation2 + $0x98] sm:$0xff] }
 0x2cd   : > { %2554 = vst [vmem:[%s3655_s21 + $0x20] sm:$0xff] %v2490_v44  ;;  %v2495_v55 = vadd.f32 %v3929_v35, %v2424_v52  ;;  %v2427_v58 = vld [vmem:[#allocation2 + $0x120] sm:$0xff]  ;;  %v2428_v59 = vld [vmem:[#allocation2 + $0x150] sm:$0xff]  ;;  %2555 = vst [vmem:[%s3655_s21 + $0x28] sm:$0xff] %v2491_v48  ;;  %v2497_v60 = vadd.f32 %v3929_v35, %v2426_v57 }
 0x2ce   : > { %2556 = vst [vmem:[%s3655_s21 + $0x30] sm:$0xff] %v2492_v49  ;;  %2557 = vst [vmem:[%s3655_s21 + $0x38] sm:$0xff] %v2493_v50  ;;  %v2498_v61 = vadd.f32 %v3929_v35, %v2427_v58  ;;  %v2499_v62 = vadd.f32 %v3929_v35, %v2428_v59  ;;  %v2429_v63 = vld [vmem:[#allocation2 + $0x108] sm:$0xff]  ;;  %v2430_v0 = vld [vmem:[#allocation2 + $0x60] sm:$0xff] }
 0x2cf   : > { %v2431_v1 = vld [vmem:[#allocation2 + $0xe0] sm:$0xff]  ;;  %2558 = vst [vmem:[%s3655_s21 + $0x40] sm:$0xff] %v2494_v54  ;;  %2559 = vst [vmem:[%s3655_s21 + $0x48] sm:$0xff] %v2495_v55  ;;  %v2500_v2 = vadd.f32 %v3929_v35, %v2429_v63  ;;  %v2501_v3 = vadd.f32 %v3929_v35, %v2430_v0  ;;  %v2432_v5 = vld [vmem:[#allocation2 + $0x188] sm:$0xff] }
 0x2d0   : > { %2560 = vst [vmem:[%s3655_s21 + $0x50] sm:$0xff] %v2496_v56  ;;  %v2502_v4 = vadd.f32 %v3929_v35, %v2431_v1  ;;  %v2433_v6 = vld [vmem:[#allocation2 + $0x138] sm:$0xff]  ;;  %v2434_v7 = vld [vmem:[#allocation2 + $0x140] sm:$0xff]  ;;  %2561 = vst [vmem:[%s3655_s21 + $0x58] sm:$0xff] %v2497_v60  ;;  %v2503_v8 = vadd.f32 %v3929_v35, %v2432_v5 }
 0x2d1   : > { %2562 = vst [vmem:[%s3655_s21 + $0x60] sm:$0xff] %v2498_v61  ;;  %2563 = vst [vmem:[%s3655_s21 + $0x68] sm:$0xff] %v2499_v62  ;;  %v2504_v9 = vadd.f32 %v3929_v35, %v2433_v6  ;;  %v2505_v10 = vadd.f32 %v3929_v35, %v2434_v7  ;;  %v2435_v11 = vld [vmem:[#allocation2 + $0x80] sm:$0xff]  ;;  %v2436_v12 = vld [vmem:[#allocation2 + $0x1a8] sm:$0xff] }
 0x2d2   : > { %v2437_v13 = vld [vmem:[#allocation2 + $0x1b8] sm:$0xff]  ;;  %2564 = vst [vmem:[%s3655_s21 + $0x70] sm:$0xff] %v2500_v2  ;;  %2565 = vst [vmem:[%s3655_s21 + $0x78] sm:$0xff] %v2501_v3  ;;  %v2506_v14 = vadd.f32 %v3929_v35, %v2435_v11  ;;  %v2507_v15 = vadd.f32 %v3929_v35, %v2436_v12  ;;  %v2438_v17 = vld [vmem:[#allocation2 + $0x28] sm:$0xff] }
 0x2d3   : > { %2566 = vst [vmem:[%s3655_s21 + $0x80] sm:$0xff] %v2502_v4  ;;  %v2508_v16 = vadd.f32 %v3929_v35, %v2437_v13  ;;  %v2439_v18 = vld [vmem:[#allocation2 + $0x1e8] sm:$0xff]  ;;  %v2440_v19 = vld [vmem:[#allocation2 + $0xf8] sm:$0xff]  ;;  %2567 = vst [vmem:[%s3655_s21 + $0x88] sm:$0xff] %v2503_v8  ;;  %v2509_v20 = vadd.f32 %v3929_v35, %v2438_v17 }
 0x2d4   : > { %2568 = vst [vmem:[%s3655_s21 + $0x90] sm:$0xff] %v2504_v9  ;;  %2569 = vst [vmem:[%s3655_s21 + $0x98] sm:$0xff] %v2505_v10  ;;  %v2510_v21 = vadd.f32 %v3929_v35, %v2439_v18  ;;  %v2511_v22 = vadd.f32 %v3929_v35, %v2440_v19  ;;  %v2441_v23 = vld [vmem:[#allocation2 + $0x160] sm:$0xff]  ;;  %v2442_v24 = vld [vmem:[#allocation2 + $0x30] sm:$0xff] }
 0x2d5   : > { %v2443_v25 = vld [vmem:[#allocation2 + $0x1e0] sm:$0xff]  ;;  %2570 = vst [vmem:[%s3655_s21 + $0xa0] sm:$0xff] %v2506_v14  ;;  %2571 = vst [vmem:[%s3655_s21 + $0xa8] sm:$0xff] %v2507_v15  ;;  %v2512_v26 = vadd.f32 %v3929_v35, %v2441_v23  ;;  %v2513_v27 = vadd.f32 %v3929_v35, %v2442_v24  ;;  %v2445_v30 = vld [vmem:[#allocation2 + $0xf0] sm:$0xff] }
 0x2d6   : > { %2572 = vst [vmem:[%s3655_s21 + $0xb0] sm:$0xff] %v2508_v16  ;;  %v2514_v28 = vadd.f32 %v3929_v35, %v2443_v25  ;;  %v2444_v29 = vld [vmem:[#allocation2] sm:$0xff]  ;;  %v2446_v31 = vld [vmem:[#allocation2 + $0x8] sm:$0xff]  ;;  %2573 = vst [vmem:[%s3655_s21 + $0xb8] sm:$0xff] %v2509_v20  ;;  %v2516_v33 = vadd.f32 %v3929_v35, %v2445_v30 }
 0x2d7   : > { %2574 = vst [vmem:[%s3655_s21 + $0xc0] sm:$0xff] %v2510_v21  ;;  %2575 = vst [vmem:[%s3655_s21 + $0xc8] sm:$0xff] %v2511_v22  ;;  %v2515_v32 = vadd.f32 %v3929_v35, %v2444_v29  ;;  %v2517_v34 = vadd.f32 %v3929_v35, %v2446_v31  ;;  %v2447_v36 = vld [vmem:[#allocation2 + $0x148] sm:$0xff]  ;;  %v2448_v37 = vld [vmem:[#allocation2 + $0x1d0] sm:$0xff] }
 0x2d8   : > { %v2449_v38 = vld [vmem:[#allocation2 + $0x100] sm:$0xff]  ;;  %2576 = vst [vmem:[%s3655_s21 + $0xd0] sm:$0xff] %v2512_v26  ;;  %2577 = vst [vmem:[%s3655_s21 + $0xd8] sm:$0xff] %v2513_v27  ;;  %v2518_v39 = vadd.f32 %v3929_v35, %v2447_v36  ;;  %v2519_v40 = vadd.f32 %v3929_v35, %v2448_v37  ;;  %v2450_v42 = vld [vmem:[#allocation2 + $0xc8] sm:$0xff] }
 0x2d9   : > { %2578 = vst [vmem:[%s3655_s21 + $0xe0] sm:$0xff] %v2514_v28  ;;  %v2520_v41 = vadd.f32 %v3929_v35, %v2449_v38  ;;  %v2451_v43 = vld [vmem:[#allocation2 + $0x40] sm:$0xff]  ;;  %v2452_v44 = vld [vmem:[#allocation2 + $0x1f8] sm:$0xff]  ;;  %2579 = vst [vmem:[%s3655_s21 + $0xe8] sm:$0xff] %v2515_v32  ;;  %v2521_v45 = vadd.f32 %v3929_v35, %v2450_v42 }
 0x2da   : > { %2580 = vst [vmem:[%s3655_s21 + $0xf0] sm:$0xff] %v2516_v33  ;;  %2581 = vst [vmem:[%s3655_s21 + $0xf8] sm:$0xff] %v2517_v34  ;;  %v2522_v46 = vadd.f32 %v3929_v35, %v2451_v43  ;;  %v2523_v47 = vadd.f32 %v3929_v35, %v2452_v44  ;;  %v2453_v48 = vld [vmem:[#allocation2 + $0x20] sm:$0xff]  ;;  %v2454_v49 = vld [vmem:[#allocation2 + $0x128] sm:$0xff] }
 0x2db   : > { %v2455_v50 = vld [vmem:[#allocation2 + $0x1a0] sm:$0xff]  ;;  %2582 = vst [vmem:[%s3655_s21 + $0x100] sm:$0xff] %v2518_v39  ;;  %2583 = vst [vmem:[%s3655_s21 + $0x108] sm:$0xff] %v2519_v40  ;;  %v2524_v51 = vadd.f32 %v3929_v35, %v2453_v48  ;;  %v2525_v52 = vadd.f32 %v3929_v35, %v2454_v49  ;;  %v2456_v54 = vld [vmem:[#allocation2 + $0x1f0] sm:$0xff] }
 0x2dc   : > { %2584 = vst [vmem:[%s3655_s21 + $0x110] sm:$0xff] %v2520_v41  ;;  %v2526_v53 = vadd.f32 %v3929_v35, %v2455_v50  ;;  %v2457_v55 = vld [vmem:[#allocation2 + $0xe8] sm:$0xff]  ;;  %v2458_v56 = vld [vmem:[#allocation2 + $0x78] sm:$0xff]  ;;  %2585 = vst [vmem:[%s3655_s21 + $0x118] sm:$0xff] %v2521_v45  ;;  %v2527_v57 = vadd.f32 %v3929_v35, %v2456_v54 }
 0x2dd   : > { %2586 = vst [vmem:[%s3655_s21 + $0x120] sm:$0xff] %v2522_v46  ;;  %2587 = vst [vmem:[%s3655_s21 + $0x128] sm:$0xff] %v2523_v47  ;;  %v2528_v58 = vadd.f32 %v3929_v35, %v2457_v55  ;;  %v2529_v59 = vadd.f32 %v3929_v35, %v2458_v56  ;;  %v2459_v60 = vld [vmem:[#allocation2 + $0x70] sm:$0xff]  ;;  %v2461_v62 = vld [vmem:[#allocation2 + $0x1d8] sm:$0xff] }
 0x2de   : > { %v2460_v61 = vld [vmem:[#allocation2 + $0x90] sm:$0xff]  ;;  %2588 = vst [vmem:[%s3655_s21 + $0x130] sm:$0xff] %v2524_v51  ;;  %2589 = vst [vmem:[%s3655_s21 + $0x138] sm:$0xff] %v2525_v52  ;;  %v2530_v63 = vadd.f32 %v3929_v35, %v2459_v60  ;;  %v2532_v1 = vadd.f32 %v3929_v35, %v2461_v62  ;;  %v2463_v3 = vld [vmem:[#allocation2 + $0xb8] sm:$0xff] }
 0x2df   : > { %2590 = vst [vmem:[%s3655_s21 + $0x140] sm:$0xff] %v2526_v53  ;;  %v2531_v0 = vadd.f32 %v3929_v35, %v2460_v61  ;;  %v2462_v2 = vld [vmem:[#allocation2 + $0xd0] sm:$0xff]  ;;  %v2464_v4 = vld [vmem:[#allocation2 + $0x88] sm:$0xff]  ;;  %2591 = vst [vmem:[%s3655_s21 + $0x148] sm:$0xff] %v2527_v57  ;;  %v2534_v6 = vadd.f32 %v3929_v35, %v2463_v3 }
 0x2e0   : > { %2592 = vst [vmem:[%s3655_s21 + $0x150] sm:$0xff] %v2528_v58  ;;  %2593 = vst [vmem:[%s3655_s21 + $0x158] sm:$0xff] %v2529_v59  ;;  %v2533_v5 = vadd.f32 %v3929_v35, %v2462_v2  ;;  %v2535_v7 = vadd.f32 %v3929_v35, %v2464_v4  ;;  %v2465_v8 = vld [vmem:[#allocation2 + $0xa8] sm:$0xff]  ;;  %v2467_v10 = vld [vmem:[#allocation2 + $0x170] sm:$0xff] }
 0x2e1   : > { %v2466_v9 = vld [vmem:[#allocation2 + $0x1c8] sm:$0xff]  ;;  %2594 = vst [vmem:[%s3655_s21 + $0x160] sm:$0xff] %v2530_v63  ;;  %2595 = vst [vmem:[%s3655_s21 + $0x168] sm:$0xff] %v2531_v0  ;;  %v2536_v11 = vadd.f32 %v3929_v35, %v2465_v8  ;;  %v2538_v13 = vadd.f32 %v3929_v35, %v2467_v10  ;;  %v2468_v14 = vld [vmem:[#allocation2 + $0x178] sm:$0xff] }
 0x2e2   : > { %2596 = vst [vmem:[%s3655_s21 + $0x170] sm:$0xff] %v2532_v1  ;;  %v2537_v12 = vadd.f32 %v3929_v35, %v2466_v9  ;;  %v2469_v15 = vld [vmem:[#allocation2 + $0x68] sm:$0xff]  ;;  %v2470_v16 = vld [vmem:[#allocation2 + $0x190] sm:$0xff]  ;;  %2597 = vst [vmem:[%s3655_s21 + $0x178] sm:$0xff] %v2533_v5  ;;  %v2539_v17 = vadd.f32 %v3929_v35, %v2468_v14 }
 0x2e3   : > { %2598 = vst [vmem:[%s3655_s21 + $0x180] sm:$0xff] %v2534_v6  ;;  %2599 = vst [vmem:[%s3655_s21 + $0x188] sm:$0xff] %v2535_v7  ;;  %v2540_v18 = vadd.f32 %v3929_v35, %v2469_v15  ;;  %v2541_v19 = vadd.f32 %v3929_v35, %v2470_v16  ;;  %v2471_v20 = vld [vmem:[#allocation2 + $0x198] sm:$0xff]  ;;  %v2473_v22 = vld [vmem:[#allocation2 + $0xc0] sm:$0xff] }
 0x2e4   : > { %v2472_v21 = vld [vmem:[#allocation2 + $0x38] sm:$0xff]  ;;  %2600 = vst [vmem:[%s3655_s21 + $0x190] sm:$0xff] %v2536_v11  ;;  %2601 = vst [vmem:[%s3655_s21 + $0x198] sm:$0xff] %v2537_v12  ;;  %v2542_v23 = vadd.f32 %v3929_v35, %v2471_v20  ;;  %v2544_v25 = vadd.f32 %v3929_v35, %v2473_v22  ;;  %v2474_v26 = vld [vmem:[#allocation2 + $0x1c0] sm:$0xff] }
 0x2e5   : > { %2602 = vst [vmem:[%s3655_s21 + $0x1a0] sm:$0xff] %v2538_v13  ;;  %v2543_v24 = vadd.f32 %v3929_v35, %v2472_v21  ;;  %v2475_v27 = vld [vmem:[#allocation2 + $0x158] sm:$0xff]  ;;  %v2476_v28 = vld [vmem:[#allocation2 + $0x10] sm:$0xff]  ;;  %2603 = vst [vmem:[%s3655_s21 + $0x1a8] sm:$0xff] %v2539_v17  ;;  %v2545_v29 = vadd.f32 %v3929_v35, %v2474_v26 }
 0x2e6   : > { %2604 = vst [vmem:[%s3655_s21 + $0x1b0] sm:$0xff] %v2540_v18  ;;  %2605 = vst [vmem:[%s3655_s21 + $0x1b8] sm:$0xff] %v2541_v19  ;;  %v2546_v30 = vadd.f32 %v3929_v35, %v2475_v27  ;;  %v2547_v31 = vadd.f32 %v3929_v35, %v2476_v28  ;;  %v2477_v32 = vld [vmem:[#allocation2 + $0x58] sm:$0xff]  ;;  %v2478_v33 = vld [vmem:[#allocation2 + $0xa0] sm:$0xff] }
 0x2e7   : > { %2606 = vst [vmem:[%s3655_s21 + $0x1c0] sm:$0xff] %v2542_v23  ;;  %2607 = vst [vmem:[%s3655_s21 + $0x1c8] sm:$0xff] %v2543_v24  ;;  %v2548_v34 = vadd.f32 %v3929_v35, %v2477_v32  ;;  %v2549_v36 = vadd.f32 %v3929_v35, %v2478_v33 }
 0x2e8   : > { %2608 = vst [vmem:[%s3655_s21 + $0x1d0] sm:$0xff] %v2544_v25  ;;  %2609 = vst [vmem:[%s3655_s21 + $0x1d8] sm:$0xff] %v2545_v29 }
 0x2e9   : > { %2610 = vst [vmem:[%s3655_s21 + $0x1e0] sm:$0xff] %v2546_v30  ;;  %2611 = vst [vmem:[%s3655_s21 + $0x1e8] sm:$0xff] %v2547_v31 }
 0x2ea   : > { %2612 = vst [vmem:[%s3655_s21 + $0x1f0] sm:$0xff] %v2548_v34  ;;  %2613 = vst [vmem:[%s3655_s21 + $0x1f8] sm:$0xff] %v2549_v36 }
 0x2eb PF: > { %s25_s7 = sadd.s32 1, %s3285_s7   ;;  %s4086_s1 = smov %s3265_s27 }
 0x2ec   : > { %p22_p10 = scmp.ge.s32.totalorder %s25_s7, 6   ;;  %s4087_s27 = smov %s3380_s20 }
 0x2ed   : > { %s4088_s28 = smov %s3277_s30  ;;  %s4089_s29 = smov %s3281_s6 }
 0x2ee   : > { %s4090_s30 = smov %s4095_s8  ;;  %s4091_s6 = smov %s4097_s9 }
 0x2ef   :  { %24 = sbr.rel (!%p22_p10) target bundleno = 29 (0x1d), region = 109 }

// kernel: gcn_forward.4
= control target key start
LH: loop header
LB: loop body
LE: loop exit
PB: predicated region body
PF: predicated region fallthrough
CT: control target
= control target key end

     0   :  { %s4321_s21 = smov [#allocation4]   ;;  %s4322_s24 = smov [#allocation5]   ;;  %s4949_s0 = inlined_call_operand.hbm [shape: s32[4], index: 0, kind: input, shape index: {}]   ;;  %s4950_s2 = inlined_call_operand.hbm [shape: bf16[1024,1024], index: 2, kind: input, shape index: {}]   ;;  %s4951_s3 = inlined_call_operand.vmem [shape: bf16[1024,128], index: 3, kind: input, shape index: {}]   ;;  %s4952_s4 = inlined_call_operand.hbm [shape: f32[1,128], index: 4, kind: input, shape index: {}]   ;;  %s4953_s5 = inlined_call_operand.vmem [shape: bf16[128,128], index: 5, kind: input, shape index: {}]   ;;  %s4954_s6 = inlined_call_operand.vmem [shape: bf16[1024,128], index: 6, kind: output, shape index: {}]   ;;  %s4955_s1 = inlined_call_operand.hbm [shape: s32[2], index: 1, kind: input, shape index: {}]  }
   0x1   :  { %4964 = sst [smem:[#allocation18_spill]] %s4952_s4 }
   0x2   :  { %12 = dma.hbm_to_smem %s4949_s0, 16, %s4321_s21, [#allocation3] }
   0x3   :  { %14 = dma.hbm_to_smem %s4955_s1, 16, %s4322_s24, [#allocation3] }
   0x4   :  { %4279 = dma.done.wait [#allocation3], 32 }
   0x5   :  { %4280 = vsyncadd [#allocation3], 4294967264 }
   0x6   :  { %16 = sfence }
   0x7   :  { %17 = vsyncpa [#allocation7], 0 }
   0x8   :  { %19 = vsyncpa [#allocation7 + $0x1], 0 }
   0x9   :  { %20 = vsyncpa [#allocation9], 0  ;;  %s4371_s27 = smov 0   ;;  %s4373_s28 = smov 0  }
   0xa   :  { %s4375_s29 = smov 0   ;;  %s4377_s30 = smov 0  }
   0xb   :  { %s4379_s0 = smov 0   ;;  %s4381_s7 = smov 0  }
   0xc   :  { %s4383_s8 = smov 0   ;;  %s4385_s1 = smov 0  }
   0xd LB: > { %4965 = sst [smem:[#allocation15_spill]] %s4311_s7  ;;  %s38_s9 = sadd.s32 1, %s4311_s7  ;;  %s4319_s1 = sphi %s4385_s1, %s26_s1   ;;  %s4315_s8 = sphi %s4383_s8, %s4987_s8   ;;  %s4311_s7 = sphi %s4381_s7, %s4981_s7   ;;  %s4307_s0 = sphi %s4379_s0, %s4986_s0   ;;  %s4303_s30 = sphi %s4377_s30, %s4980_s30   ;;  %s4299_s29 = sphi %s4375_s29, %s4985_s29   ;;  %s4295_s28 = sphi %s4373_s28, %s4984_s28   ;;  %s4291_s27 = sphi %s4371_s27, %s4983_s27  }
   0xe   : > { %p39_p0 = scmp.ge.s32.totalorder %s38_s9, 2  ;;  %s45_s10 = sadd.s32 1, %s4315_s8 }
   0xf   : > { %s3200_s11 = sadd.s32 4294967295, %s4319_s1   ;;  %s3202_s12 = sshll.u32 %s4315_s8, 1 }
  0x10   : > { %s4989_s9 = smov (%p39_p0, %s38_s9), 0  ;;  %s4991_s10 = smov (!%p39_p0, %s45_s10), %s4315_s8 }
  0x11   : > { %4966 = sst [smem:[#allocation16_spill]] %s4989_s9  ;;  %s4417_s13 = sadd.s32 %s4311_s7, %s3202_s12 }
  0x12   : > { %s60_s14 = sadd.s32 1, %s4299_s29  ;;  %p47_p1 = scmp.ge.s32.totalorder %s4991_s10, 2 }
  0x13   : > { %p67_p2 = scmp.ne.s32.totalorder %s4299_s29, %s4295_s28  ;;  %p68_p3 = scmp.eq.s32.totalorder %s4319_s1, 0 }
  0x14   : > { %p73_p4 = scmp.ne.s32.totalorder %s4295_s28, %s4291_s27  ;;  %s4993_s10 = smov (%p47_p1, %s4991_s10), 0 }
  0x15   : > { %4967 = sst [smem:[#allocation17_spill]] %s4993_s10  ;;  %p4427_p5 = scmp.eq.s32.totalorder %s3200_s11, 0 }
  0x16   : > { %s51_s15 = sld [smem:[#allocation4 + %s4417_s13]]  ;;  %s3203_s17 = sshll.u32 %s4993_s10, 1 }
  0x17   : > { %s4968_s16 = scalar_select %p4427_p5, 1, 0 }
  0x18   : > { %p4432_p6 = por %p68_p3, %p67_p2  ;;  %s53_s19 = sadd.s32 %s3203_s17, %s4989_s9 }
  0x19   : > { %p4439_p7 = por %p4427_p5, %p73_p4  ;;  %s54_s21 = sld [smem:[#allocation4 + %s53_s19]] }
  0x1a   : > { %p3204_p8 = scmp.ge.s32.totalorder %s4319_s1, 1  ;;  %p183_p9 = scmp.lt.s32.totalorder %s4319_s1, 5 }
  0x1b   : > { %s4970_s20 = scalar_select %p4439_p7, 1, 0 }
  0x1c   : > { %p4445_p10 = pnand %p3204_p8, %p183_p9  ;;  %s4323_s23 = smov [#allocation8]  }
  0x1d   : > { %s205_s24 = sshll.u32 %s4323_s23, 4  ;;  %s55_s25 = ssub.s32 %s4315_s8, %s4993_s10  ;;  %s206_s24 = int_to_ptr.vmem [resolvable:$true] %s205_s24 }
  0x1e   : > { %s4971_s22 = scalar_select %p4445_p10, 1, 0 }
  0x1f   : > { %p4956_p11 = scmp.lt.s32.totalorder %s4319_s1, 4  ;;  %p3860_p12 = pneg %p4445_p10 }
  0x20   : > { %s56_s26 = ssub.s32 %s51_s15, %s54_s21  ;;  %s219_s17 = sand.u32 1, %s4299_s29  }
  0x21   : > { %p4458_p13 = pnand %p4956_p11, %p4432_p6  ;;  %s57_s11 = sor.u32 %s56_s26, %s55_s25 }
  0x22   : > { %p4464_p0 = pnand %p3860_p12, %p4427_p5  ;;  %p58_p1 = scmp.eq.s32.totalorder %s57_s11, 0 }
  0x23   : > { %s4204_s15 = scalar_lea.vmem %s206_s24, 16  ;;  %s4211_s21 = scalar_lea.vmem %s206_s24, 32 }
  0x24   : > { %s4470_s19 = scalar_select %p58_p1, %s4299_s29, %s60_s14  }
  0x25   : > { %p4195_p2 = pneg %p4464_p0  ;;  %p4205_p3 = scmp.ne.s32.totalorder %s206_s24, %s4204_s15 }
  0x26   : > { %p4212_p9 = scmp.lt.s32.totalorder %s206_s24, %s206_s24  ;;  %p4213_p11 = scmp.lt.s32.totalorder %s4211_s21, %s4204_s15 }
  0x27   : > { %p4207_p4 = pnand %p4205_p3, %p4195_p2 }
  0x28   : > { %p4214_p7 = por %p4213_p11, %p4212_p9 }
  0x29   : > { %p4208_p8 = pneg %p4207_p4 }
  0x2b   : > { %p4215_p10 = pnand %p4214_p7, %p4208_p8 }
  0x2d   : > { %4218 = shalt.err (!%p4215_p10)
}
  0x2e   : > { %s4974_s4 = sld [smem:[#allocation18_spill]]  ;;  %s4995_s13 = smov (!%p4432_p6, %s4417_s13), 0 }
  0x2f   : > { %s3854_s14 = scalar_select %p4432_p6, [#allocation4], [#allocation10] }
  0x30   : > { %s3208_s26 = sshll.u32 %s219_s17, 10  ;;  %p4975_p7 = scmp.lt.s32.totalorder %s4319_s1, 4 }
  0x31   : > { %s223_s12 = scalar_lea.vmem [#allocation6], %s3208_s26  ;;  %s3460_s21 = sshll.u32 %s4315_s8, 9 }
  0x32   : > { %s4997_s14 = smov (!%p4975_p7, %s3854_s14), [#allocation11]  ;;  %p4976_p10 = pmov %p4975_p7 }
  0x33   : > { %s236_s15 = sshll.u32 %s223_s12, 4  ;;  %s4496_s9 = scalar_lea.sflag [#allocation7], %s219_s17  ;;  %s4489_s15 = int_to_ptr.vmem [resolvable:$true] %s236_s15 }
  0x34   : > { %3863 = dma.hbm_to_vmem [thread:$0]  (!%p4464_p0), %s4974_s4, 16, %s206_s24, [#allocation9]  }
  0x35   : > { %s4999_s13 = smov (!%p4976_p10, %s4995_s13), 0  ;;  %p4221_p11 = pneg %p4458_p13 }
  0x36   : > { %s226_s11 = sld [smem:[%s4997_s14 + %s4999_s13]]  ;;  %s4224_s26 = scalar_lea.hbm %s4950_s2, 65536 }
  0x3c   : > { %s3211_s23 = sshll.u32 %s226_s11, 2 }
  0x3d   : > { %s233_s25 = sadd.s32 %s3460_s21, %s3211_s23 }
  0x3e   : > { %s3213_s10 = sshll.u32 %s233_s25, 6 }
  0x3f   : > { %s4494_s18 = scalar_lea.hbm %s4950_s2, %s3213_s10 }
  0x40   : > { %s4219_s7 = scalar_lea.hbm %s4494_s18, 16384  ;;  %p4225_p1 = scmp.lt.s32.totalorder %s4494_s18, %s4950_s2 }
  0x41   : > { %p4220_p6 = scmp.ne.s32.totalorder %s4494_s18, %s4219_s7  ;;  %p4226_p2 = scmp.lt.s32.totalorder %s4224_s26, %s4219_s7 }
  0x43   : > { %p4222_p12 = pnand %p4221_p11, %p4220_p6  ;;  %p4227_p3 = por %p4226_p2, %p4225_p1 }
  0x45   : > { %p4223_p0 = pneg %p4222_p12 }
  0x47   : > { %p4228_p4 = pnand %p4227_p3, %p4223_p0 }
  0x49   : > { %4231 = shalt.err (!%p4228_p4)
}
  0x4a   : > { %s4232_s4 = scalar_lea.vmem %s4489_s15, 16384  ;;  %s4324_s10 = smov [#allocation6]  }
  0x4b   : > { %p4233_p8 = scmp.ne.s32.totalorder %s4489_s15, %s4232_s4  ;;  %s4237_s17 = sshll.u32 %s4324_s10, 4  ;;  %s4238_s17 = int_to_ptr.vmem [resolvable:$false] %s4237_s17 }
  0x4c   : > { %s4239_s21 = scalar_lea.vmem %s4238_s17, 32768  ;;  %p4240_p10 = scmp.lt.s32.totalorder %s4489_s15, %s4238_s17 }
  0x4d   : > { %p4235_p9 = pnand %p4233_p8, %p4221_p11  ;;  %p4241_p6 = scmp.lt.s32.totalorder %s4239_s21, %s4232_s4 }
  0x4f   : > { %p4236_p7 = pneg %p4235_p9  ;;  %p4242_p12 = por %p4241_p6, %p4240_p10 }
  0x51   : > { %p4243_p5 = pnand %p4242_p12, %p4236_p7 }
  0x53   : > { %4246 = shalt.err (!%p4243_p5)
}
  0x54   : > { %s4325_s7 = smov 512   ;;  %s4326_s23 = smov 256  }
  0x55   : > { %s4327_s25 = smov 16   ;;  %p4977_p11 = scmp.ne.s32.totalorder %s4971_s22, 0 }
  0x56   : > { %3869 = dma.hbm_to_vmem [thread:$0]  (!%p4458_p13), %s4494_s18, 16384, %s4489_s15, %s4496_s9, %s4325_s7, %s4326_s23, %s4327_s25  }
  0x57   : > { %248 = sbr.rel (%p4977_p11) target bundleno = 968 (0x3c8), region = 36  ;;  %s250_s24 = sand.u32 (!%p4977_p11), 1, %s4295_s28  }
  0x58   : > { %s3215_s13 = sshll.u32 (!%p4977_p11), %s250_s24, 10  ;;  %s251_s14 = scalar_lea.sflag (!%p4977_p11), [#allocation7], %s250_s24 }
  0x59   : > { %s4520_s26 = scalar_lea.vmem (!%p4977_p11), [#allocation6], %s3215_s13  ;;  %p4978_p5 = scmp.ne.s32.totalorder (!%p4977_p11), %s4970_s20, 0 }
  0x5c   : > { %4282 = dma.done.wait (%p4978_p5), %s251_s14, 16384  }
  0x5d   : > { %4284 = vsyncadd (%p4978_p5), %s251_s14, 4294950912  ;;  %p4979_p0 = scmp.ne.s32.totalorder %s4968_s16, 0 }
  0x5f   : > { %4286 = dma.done.wait (%p4979_p0), [#allocation9], 16  }
  0x60   : > { %4288 = vsyncadd (%p4979_p0), [#allocation9], 4294967280  ;;  %s3217_s9 = sshll.u32 %s4307_s0, 6  ;;  %p3219_p1 = scmp.ne.s32.totalorder %s4303_s30, 0 }
  0x61   : > { %p297_p13 = scmp.lt.s32.totalorder %s3217_s9, 127 }
  0x62   : > { %306 = sbr.rel (%p3219_p1) target bundleno = 136 (0x88), region = 48 }
  0x63   : > { %s5001_s9 = smov (!%p297_p13, %s3217_s9), 127 }
  0x64   : > { %s3218_s22 = sshll.u32 %s5001_s9, 2 }
  0x65   : > { %s4534_s18 = scalar_lea.vmem %s4954_s6, %s3218_s22 }
  0x67   : > { %v4328_v0 = vmov 0.0  }
  0x68   : > { %307 = vst [vmem:[#allocation2 + $0xb0] sm:$0xff] %v4328_v0  ;;  %308 = vst [vmem:[#allocation2 + $0x1b0] sm:$0xff] %v4328_v0 }
  0x69   : > { %309 = vst [vmem:[#allocation2 + $0xd8] sm:$0xff] %v4328_v0  ;;  %310 = vst [vmem:[#allocation2 + $0x18] sm:$0xff] %v4328_v0 }
  0x6a   : > { %311 = vst [vmem:[#allocation2 + $0x50] sm:$0xff] %v4328_v0  ;;  %312 = vst [vmem:[#allocation2 + $0x168] sm:$0xff] %v4328_v0 }
  0x6b   : > { %313 = vst [vmem:[#allocation2 + $0x130] sm:$0xff] %v4328_v0  ;;  %314 = vst [vmem:[#allocation2 + $0x48] sm:$0xff] %v4328_v0 }
  0x6c   : > { %315 = vst [vmem:[#allocation2 + $0x180] sm:$0xff] %v4328_v0  ;;  %316 = vst [vmem:[#allocation2 + $0x110] sm:$0xff] %v4328_v0 }
  0x6d   : > { %317 = vst [vmem:[#allocation2 + $0x118] sm:$0xff] %v4328_v0  ;;  %318 = vst [vmem:[#allocation2 + $0x98] sm:$0xff] %v4328_v0 }
  0x6e   : > { %319 = vst [vmem:[#allocation2 + $0x120] sm:$0xff] %v4328_v0  ;;  %320 = vst [vmem:[#allocation2 + $0x150] sm:$0xff] %v4328_v0 }
  0x6f   : > { %321 = vst [vmem:[#allocation2 + $0x108] sm:$0xff] %v4328_v0  ;;  %322 = vst [vmem:[#allocation2 + $0x60] sm:$0xff] %v4328_v0 }
  0x70   : > { %323 = vst [vmem:[#allocation2 + $0xe0] sm:$0xff] %v4328_v0  ;;  %324 = vst [vmem:[#allocation2 + $0x188] sm:$0xff] %v4328_v0 }
  0x71   : > { %325 = vst [vmem:[#allocation2 + $0x138] sm:$0xff] %v4328_v0  ;;  %326 = vst [vmem:[#allocation2 + $0x140] sm:$0xff] %v4328_v0 }
  0x72   : > { %327 = vst [vmem:[#allocation2 + $0x80] sm:$0xff] %v4328_v0  ;;  %328 = vst [vmem:[#allocation2 + $0x1a8] sm:$0xff] %v4328_v0 }
  0x73   : > { %329 = vst [vmem:[#allocation2 + $0x1b8] sm:$0xff] %v4328_v0  ;;  %330 = vst [vmem:[#allocation2 + $0x28] sm:$0xff] %v4328_v0 }
  0x74   : > { %331 = vst [vmem:[#allocation2 + $0x1e8] sm:$0xff] %v4328_v0  ;;  %332 = vst [vmem:[#allocation2 + $0xf8] sm:$0xff] %v4328_v0 }
  0x75   : > { %333 = vst [vmem:[#allocation2 + $0x160] sm:$0xff] %v4328_v0  ;;  %334 = vst [vmem:[#allocation2 + $0x30] sm:$0xff] %v4328_v0 }
  0x76   : > { %335 = vst [vmem:[#allocation2 + $0x1e0] sm:$0xff] %v4328_v0  ;;  %336 = vst [vmem:[#allocation2] sm:$0xff] %v4328_v0 }
  0x77   : > { %337 = vst [vmem:[#allocation2 + $0xf0] sm:$0xff] %v4328_v0  ;;  %338 = vst [vmem:[#allocation2 + $0x8] sm:$0xff] %v4328_v0 }
  0x78   : > { %339 = vst [vmem:[#allocation2 + $0x148] sm:$0xff] %v4328_v0  ;;  %340 = vst [vmem:[#allocation2 + $0x1d0] sm:$0xff] %v4328_v0 }
  0x79   : > { %341 = vst [vmem:[#allocation2 + $0x100] sm:$0xff] %v4328_v0  ;;  %342 = vst [vmem:[#allocation2 + $0xc8] sm:$0xff] %v4328_v0 }
  0x7a   : > { %343 = vst [vmem:[#allocation2 + $0x40] sm:$0xff] %v4328_v0  ;;  %344 = vst [vmem:[#allocation2 + $0x1f8] sm:$0xff] %v4328_v0 }
  0x7b   : > { %345 = vst [vmem:[#allocation2 + $0x20] sm:$0xff] %v4328_v0  ;;  %346 = vst [vmem:[#allocation2 + $0x128] sm:$0xff] %v4328_v0 }
  0x7c   : > { %347 = vst [vmem:[#allocation2 + $0x1a0] sm:$0xff] %v4328_v0  ;;  %348 = vst [vmem:[#allocation2 + $0x1f0] sm:$0xff] %v4328_v0 }
  0x7d   : > { %349 = vst [vmem:[#allocation2 + $0xe8] sm:$0xff] %v4328_v0  ;;  %350 = vst [vmem:[#allocation2 + $0x78] sm:$0xff] %v4328_v0 }
  0x7e   : > { %351 = vst [vmem:[#allocation2 + $0x70] sm:$0xff] %v4328_v0  ;;  %352 = vst [vmem:[#allocation2 + $0x90] sm:$0xff] %v4328_v0 }
  0x7f   : > { %353 = vst [vmem:[#allocation2 + $0x1d8] sm:$0xff] %v4328_v0  ;;  %354 = vst [vmem:[#allocation2 + $0xd0] sm:$0xff] %v4328_v0 }
  0x80   : > { %355 = vst [vmem:[#allocation2 + $0xb8] sm:$0xff] %v4328_v0  ;;  %356 = vst [vmem:[#allocation2 + $0x88] sm:$0xff] %v4328_v0 }
  0x81   : > { %357 = vst [vmem:[#allocation2 + $0xa8] sm:$0xff] %v4328_v0  ;;  %358 = vst [vmem:[#allocation2 + $0x1c8] sm:$0xff] %v4328_v0 }
  0x82   : > { %359 = vst [vmem:[#allocation2 + $0x170] sm:$0xff] %v4328_v0  ;;  %360 = vst [vmem:[#allocation2 + $0x178] sm:$0xff] %v4328_v0 }
  0x83   : > { %361 = vst [vmem:[#allocation2 + $0x68] sm:$0xff] %v4328_v0  ;;  %362 = vst [vmem:[#allocation2 + $0x190] sm:$0xff] %v4328_v0 }
  0x84   : > { %363 = vst [vmem:[#allocation2 + $0x198] sm:$0xff] %v4328_v0  ;;  %364 = vst [vmem:[#allocation2 + $0x38] sm:$0xff] %v4328_v0 }
  0x85   : > { %365 = vst [vmem:[#allocation2 + $0xc0] sm:$0xff] %v4328_v0  ;;  %366 = vst [vmem:[#allocation2 + $0x1c0] sm:$0xff] %v4328_v0 }
  0x86   : > { %367 = vst [vmem:[#allocation2 + $0x158] sm:$0xff] %v4328_v0  ;;  %368 = vst [vmem:[#allocation2 + $0x10] sm:$0xff] %v4328_v0 }
  0x87   : > { %369 = vst [vmem:[#allocation2 + $0x58] sm:$0xff] %v4328_v0  ;;  %370 = vst [vmem:[#allocation2 + $0xa0] sm:$0xff] %v4328_v0 }
  0x88 PF: > { %s371_s16 = sld [smem:[#allocation5 + %s4307_s0]] }
  0x8e   : > { %p3220_p2 = scmp.ge.s32.totalorder %s4303_s30, %s371_s16 }
  0x8f   : > { %s3221_s20 = sshll.u32 (!%p3220_p2), %s4307_s0, 1 }
  0x90   : > { %375 = sbr.rel (%p3220_p2) target bundleno = 670 (0x29e), region = 52  ;;  %s377_s11 = sadd.s32 (!%p3220_p2), %s4303_s30, %s3221_s20 }
  0x91   : > { %s378_s12 = sld [smem:[#allocation4 + %s377_s11]] (!%p3220_p2) }
  0x95   : > { %v4329_v1 = vmov 0   ;;  %v3979_v2 = vld [vmem:[%s4520_s26 + $0x4] ss:$16 sps:$4 sm:$0xff]   ;;  %v3982_v3 = vld [vmem:[%s4520_s26 + $0xc] ss:$16 sps:$4 sm:$0xff]  }
  0x96   : > { %1472 = vmatprep.subr.bf16.mxu0 %v4329_v1  ;;  %1761 = vmatprep.subr.bf16.mxu1 %v4329_v1  ;;  %v3977_v36 = vld [vmem:[%s4520_s26] ss:$16 sps:$4 sm:$0xff]   ;;  %v3980_v37 = vld [vmem:[%s4520_s26 + $0x8] ss:$16 sps:$4 sm:$0xff]   ;;  %v3983_v38 = vld [vmem:[%s4520_s26 + $0x24] ss:$16 sps:$4 sm:$0xff]  }
  0x97   : > { %1504 = vmatprep.mubr.bf16.mxu0 %v3979_v2  ;;  %1793 = vmatprep.mubr.bf16.mxu1 %v3982_v3  ;;  %s3222_s4 = sshll.u32 %s378_s12, 9  ;;  %v3985_v39 = vld [vmem:[%s4520_s26 + $0x2c] ss:$16 sps:$4 sm:$0xff]   ;;  %v3987_v40 = vld [vmem:[%s4520_s26 + $0x20] ss:$16 sps:$4 sm:$0xff]  }
  0x98   : > { %s380_s10 = sshra.s32 %s3222_s4, 3  ;;  %v3988_v41 = vld [vmem:[%s4520_s26 + $0x28] ss:$16 sps:$4 sm:$0xff]   ;;  %v3989_v42 = vld [vmem:[%s4520_s26 + $0x44] ss:$16 sps:$4 sm:$0xff]  }
  0x99   : > { %s3223_s17 = sshll.u32 %s380_s10, 2  ;;  %v3991_v43 = vld [vmem:[%s4520_s26 + $0x4c] ss:$16 sps:$4 sm:$0xff]   ;;  %v3993_v44 = vld [vmem:[%s4520_s26 + $0x40] ss:$16 sps:$4 sm:$0xff]  }
  0x9a   : > { %s4612_s23 = scalar_lea.vmem %s4951_s3, %s3223_s17  ;;  %v3994_v45 = vld [vmem:[%s4520_s26 + $0x48] ss:$16 sps:$4 sm:$0xff]   ;;  %v3995_v46 = vld [vmem:[%s4520_s26 + $0x64] ss:$16 sps:$4 sm:$0xff]   ;;  %v3997_v47 = vld [vmem:[%s4520_s26 + $0x6c] ss:$16 sps:$4 sm:$0xff]  }
  0x9b   : > { %v3945_v4 = vld [vmem:[%s4612_s23 + $0x38] sm:$0xff]   ;;  %v3947_v6 = vld [vmem:[%s4612_s23 + $0x30] sm:$0xff]   ;;  %v3949_v8 = vld [vmem:[%s4612_s23 + $0x28] sm:$0xff]  }
  0x9c   : > { %v3946_v5 = vld [vmem:[%s4612_s23 + $0xb8] sm:$0xff]   ;;  %1473 = vmatpush1.bf16.msra.mxu0 %v3945_v4  ;;  %v3948_v7 = vld [vmem:[%s4612_s23 + $0xb0] sm:$0xff]   ;;  %v3950_v9 = vld [vmem:[%s4612_s23 + $0xa8] sm:$0xff]  }
  0x9d   : > { %1762 = vmatpush1.bf16.msra.mxu1 %v3946_v5  ;;  %1474 = vmatprep.subr.bf16.mxu0 %v4329_v1  ;;  %v3951_v10 = vld [vmem:[%s4612_s23 + $0x20] sm:$0xff]   ;;  %v3953_v12 = vld [vmem:[%s4612_s23 + $0x18] sm:$0xff]   ;;  %v3955_v14 = vld [vmem:[%s4612_s23 + $0x10] sm:$0xff]  }
  0x9e   : > { %1763 = vmatprep.subr.bf16.mxu1 %v4329_v1  ;;  %v3952_v11 = vld [vmem:[%s4612_s23 + $0xa0] sm:$0xff]   ;;  %v3954_v13 = vld [vmem:[%s4612_s23 + $0x98] sm:$0xff]   ;;  %v3956_v15 = vld [vmem:[%s4612_s23 + $0x90] sm:$0xff]  }
  0x9f   : > { %v3957_v16 = vld [vmem:[%s4612_s23 + $0x8] sm:$0xff]   ;;  %v3959_v18 = vld [vmem:[%s4612_s23] sm:$0xff]   ;;  %v3961_v20 = vld [vmem:[%s4612_s23 + $0x78] sm:$0xff]  }
  0xa0   : > { %1475 = vmatpush1.bf16.msra.mxu0 %v3947_v6  ;;  %v3958_v17 = vld [vmem:[%s4612_s23 + $0x88] sm:$0xff]   ;;  %v3960_v19 = vld [vmem:[%s4612_s23 + $0x80] sm:$0xff]   ;;  %v3962_v21 = vld [vmem:[%s4612_s23 + $0xf8] sm:$0xff]  }
  0xa1   : > { %1764 = vmatpush1.bf16.msra.mxu1 %v3948_v7  ;;  %1476 = vmatprep.subr.bf16.mxu0 %v4329_v1  ;;  %v3963_v22 = vld [vmem:[%s4612_s23 + $0x70] sm:$0xff]   ;;  %v3965_v24 = vld [vmem:[%s4612_s23 + $0x68] sm:$0xff]   ;;  %v3967_v26 = vld [vmem:[%s4612_s23 + $0x60] sm:$0xff]  }
  0xa2   : > { %1765 = vmatprep.subr.bf16.mxu1 %v4329_v1  ;;  %v3964_v23 = vld [vmem:[%s4612_s23 + $0xf0] sm:$0xff]   ;;  %v3966_v25 = vld [vmem:[%s4612_s23 + $0xe8] sm:$0xff]   ;;  %v3968_v27 = vld [vmem:[%s4612_s23 + $0xe0] sm:$0xff]  }
  0xa3   : > { %v3969_v28 = vld [vmem:[%s4612_s23 + $0x58] sm:$0xff]   ;;  %v3971_v30 = vld [vmem:[%s4612_s23 + $0x50] sm:$0xff]   ;;  %v3973_v32 = vld [vmem:[%s4612_s23 + $0x48] sm:$0xff]  }
  0xa4   : > { %1477 = vmatpush1.bf16.msra.mxu0 %v3949_v8  ;;  %v3970_v29 = vld [vmem:[%s4612_s23 + $0xd8] sm:$0xff]   ;;  %v3972_v31 = vld [vmem:[%s4612_s23 + $0xd0] sm:$0xff]   ;;  %v3974_v33 = vld [vmem:[%s4612_s23 + $0xc8] sm:$0xff]  }
  0xa5   : > { %1766 = vmatpush1.bf16.msra.mxu1 %v3950_v9  ;;  %1478 = vmatprep.subr.bf16.mxu0 %v4329_v1  ;;  %v3975_v34 = vld [vmem:[%s4612_s23 + $0x40] sm:$0xff]   ;;  %v4000_v49 = vld [vmem:[%s4520_s26 + $0x68] ss:$16 sps:$4 sm:$0xff]   ;;  %v4003_v51 = vld [vmem:[%s4520_s26 + $0x8c] ss:$16 sps:$4 sm:$0xff]  }
  0xa6   : > { %1767 = vmatprep.subr.bf16.mxu1 %v4329_v1  ;;  %v3976_v35 = vld [vmem:[%s4612_s23 + $0xc0] sm:$0xff]   ;;  %v4006_v53 = vld [vmem:[%s4520_s26 + $0x88] ss:$16 sps:$4 sm:$0xff]   ;;  %v4009_v55 = vld [vmem:[%s4520_s26 + $0xac] ss:$16 sps:$4 sm:$0xff]  }
  0xa7   : > { %v3999_v48 = vld [vmem:[%s4520_s26 + $0x60] ss:$16 sps:$4 sm:$0xff]   ;;  %v4001_v50 = vld [vmem:[%s4520_s26 + $0x84] ss:$16 sps:$4 sm:$0xff]   ;;  %v4012_v57 = vld [vmem:[%s4520_s26 + $0xa8] ss:$16 sps:$4 sm:$0xff]  }
  0xa8   : > { %1479 = vmatpush1.bf16.msra.mxu0 %v3951_v10  ;;  %v4005_v52 = vld [vmem:[%s4520_s26 + $0x80] ss:$16 sps:$4 sm:$0xff]   ;;  %v4007_v54 = vld [vmem:[%s4520_s26 + $0xa4] ss:$16 sps:$4 sm:$0xff]   ;;  %v4015_v59 = vld [vmem:[%s4520_s26 + $0xcc] ss:$16 sps:$4 sm:$0xff]  }
  0xa9   : > { %1768 = vmatpush1.bf16.msra.mxu1 %v3952_v11  ;;  %1480 = vmatprep.subr.bf16.mxu0 %v4329_v1  ;;  %v4011_v56 = vld [vmem:[%s4520_s26 + $0xa0] ss:$16 sps:$4 sm:$0xff]   ;;  %v4013_v58 = vld [vmem:[%s4520_s26 + $0xc4] ss:$16 sps:$4 sm:$0xff]   ;;  %v4018_v61 = vld [vmem:[%s4520_s26 + $0xc8] ss:$16 sps:$4 sm:$0xff]  }
  0xaa   : > { %1769 = vmatprep.subr.bf16.mxu1 %v4329_v1  ;;  %v4017_v60 = vld [vmem:[%s4520_s26 + $0xc0] ss:$16 sps:$4 sm:$0xff]   ;;  %v4019_v62 = vld [vmem:[%s4520_s26 + $0xe4] ss:$16 sps:$4 sm:$0xff]   ;;  %v4021_v63 = vld [vmem:[%s4520_s26 + $0xec] ss:$16 sps:$4 sm:$0xff]  }
  0xab   : > { %v4023_v0 = vld [vmem:[%s4520_s26 + $0xe0] ss:$16 sps:$4 sm:$0xff]   ;;  %v4025_v2 = vld [vmem:[%s4520_s26 + $0x104] ss:$16 sps:$4 sm:$0xff]   ;;  %v4027_v3 = vld [vmem:[%s4520_s26 + $0x10c] ss:$16 sps:$4 sm:$0xff]  }
  0xac   : > { %1481 = vmatpush1.bf16.msra.mxu0 %v3953_v12  ;;  %v4029_v4 = vld [vmem:[%s4520_s26 + $0x100] ss:$16 sps:$4 sm:$0xff]   ;;  %v4030_v5 = vld [vmem:[%s4520_s26 + $0x108] ss:$16 sps:$4 sm:$0xff]   ;;  %v4031_v6 = vld [vmem:[%s4520_s26 + $0x124] ss:$16 sps:$4 sm:$0xff]  }
  0xad   : > { %1770 = vmatpush1.bf16.msra.mxu1 %v3954_v13  ;;  %1482 = vmatprep.subr.bf16.mxu0 %v4329_v1  ;;  %v4033_v7 = vld [vmem:[%s4520_s26 + $0x12c] ss:$16 sps:$4 sm:$0xff]   ;;  %v4035_v8 = vld [vmem:[%s4520_s26 + $0x120] ss:$16 sps:$4 sm:$0xff]   ;;  %v4036_v9 = vld [vmem:[%s4520_s26 + $0x128] ss:$16 sps:$4 sm:$0xff]  }
  0xae   : > { %1771 = vmatprep.subr.bf16.mxu1 %v4329_v1  ;;  %v4037_v10 = vld [vmem:[%s4520_s26 + $0x144] ss:$16 sps:$4 sm:$0xff]   ;;  %v4039_v11 = vld [vmem:[%s4520_s26 + $0x14c] ss:$16 sps:$4 sm:$0xff]   ;;  %v4041_v12 = vld [vmem:[%s4520_s26 + $0x140] ss:$16 sps:$4 sm:$0xff]  }
  0xaf   : > { %v4042_v13 = vld [vmem:[%s4520_s26 + $0x148] ss:$16 sps:$4 sm:$0xff]  }
  0xb0   : > { %1483 = vmatpush1.bf16.msra.mxu0 %v3955_v14  ;;  %v4043_v14 = vld [vmem:[%s4520_s26 + $0x164] ss:$16 sps:$4 sm:$0xff]  }
  0xb1   : > { %1772 = vmatpush1.bf16.msra.mxu1 %v3956_v15  ;;  %1484 = vmatprep.subr.bf16.mxu0 %v4329_v1  ;;  %v4045_v15 = vld [vmem:[%s4520_s26 + $0x16c] ss:$16 sps:$4 sm:$0xff]  }
  0xb2   : > { %1773 = vmatprep.subr.bf16.mxu1 %v4329_v1 }
  0xb4   : > { %1485 = vmatpush1.bf16.msra.mxu0 %v3957_v16  ;;  %v4047_v16 = vld [vmem:[%s4520_s26 + $0x160] ss:$16 sps:$4 sm:$0xff]  }
  0xb5   : > { %1774 = vmatpush1.bf16.msra.mxu1 %v3958_v17  ;;  %1486 = vmatprep.subr.bf16.mxu0 %v4329_v1  ;;  %v4048_v17 = vld [vmem:[%s4520_s26 + $0x168] ss:$16 sps:$4 sm:$0xff]  }
  0xb6   : > { %1775 = vmatprep.subr.bf16.mxu1 %v4329_v1 }
  0xb8   : > { %1487 = vmatpush1.bf16.msra.mxu0 %v3959_v18  ;;  %v4049_v18 = vld [vmem:[%s4520_s26 + $0x184] ss:$16 sps:$4 sm:$0xff]  }
  0xb9   : > { %1776 = vmatpush1.bf16.msra.mxu1 %v3960_v19  ;;  %1488 = vmatprep.subr.bf16.mxu0 %v4329_v1  ;;  %v4051_v19 = vld [vmem:[%s4520_s26 + $0x18c] ss:$16 sps:$4 sm:$0xff]  }
  0xba   : > { %1777 = vmatprep.subr.bf16.mxu1 %v4329_v1 }
  0xbc   : > { %1489 = vmatpush2.bf16.msra.mxu0 %v3961_v20  ;;  %v4053_v20 = vld [vmem:[%s4520_s26 + $0x180] ss:$16 sps:$4 sm:$0xff]  }
  0xbd   : > { %1778 = vmatpush2.bf16.msra.mxu1 %v3962_v21  ;;  %1490 = vmatprep.subr.bf16.mxu0 %v4329_v1  ;;  %v4054_v21 = vld [vmem:[%s4520_s26 + $0x188] ss:$16 sps:$4 sm:$0xff]  }
  0xbe   : > { %1779 = vmatprep.subr.bf16.mxu1 %v4329_v1 }
  0xc0   : > { %1491 = vmatpush2.bf16.msra.mxu0 %v3963_v22  ;;  %v4055_v22 = vld [vmem:[%s4520_s26 + $0x1a4] ss:$16 sps:$4 sm:$0xff]  }
  0xc1   : > { %1780 = vmatpush2.bf16.msra.mxu1 %v3964_v23  ;;  %1492 = vmatprep.subr.bf16.mxu0 %v4329_v1  ;;  %v4057_v23 = vld [vmem:[%s4520_s26 + $0x1ac] ss:$16 sps:$4 sm:$0xff]  }
  0xc2   : > { %1781 = vmatprep.subr.bf16.mxu1 %v4329_v1 }
  0xc4   : > { %1493 = vmatpush2.bf16.msra.mxu0 %v3965_v24  ;;  %v4059_v24 = vld [vmem:[%s4520_s26 + $0x1a0] ss:$16 sps:$4 sm:$0xff]  }
  0xc5   : > { %1782 = vmatpush2.bf16.msra.mxu1 %v3966_v25  ;;  %1494 = vmatprep.subr.bf16.mxu0 %v4329_v1  ;;  %v4060_v25 = vld [vmem:[%s4520_s26 + $0x1a8] ss:$16 sps:$4 sm:$0xff]  }
  0xc6   : > { %1783 = vmatprep.subr.bf16.mxu1 %v4329_v1 }
  0xc8   : > { %1495 = vmatpush2.bf16.msra.mxu0 %v3967_v26  ;;  %v4061_v26 = vld [vmem:[%s4520_s26 + $0x1c4] ss:$16 sps:$4 sm:$0xff]  }
  0xc9   : > { %1784 = vmatpush2.bf16.msra.mxu1 %v3968_v27  ;;  %1496 = vmatprep.subr.bf16.mxu0 %v4329_v1  ;;  %v4063_v27 = vld [vmem:[%s4520_s26 + $0x1cc] ss:$16 sps:$4 sm:$0xff]  }
  0xca   : > { %1785 = vmatprep.subr.bf16.mxu1 %v4329_v1 }
  0xcc   : > { %1497 = vmatpush2.bf16.msra.mxu0 %v3969_v28  ;;  %v4065_v28 = vld [vmem:[%s4520_s26 + $0x1c0] ss:$16 sps:$4 sm:$0xff]  }
  0xcd   : > { %1786 = vmatpush2.bf16.msra.mxu1 %v3970_v29  ;;  %1498 = vmatprep.subr.bf16.mxu0 %v4329_v1  ;;  %v4066_v29 = vld [vmem:[%s4520_s26 + $0x1c8] ss:$16 sps:$4 sm:$0xff]  }
  0xce   : > { %1787 = vmatprep.subr.bf16.mxu1 %v4329_v1 }
  0xd0   : > { %1499 = vmatpush2.bf16.msra.mxu0 %v3971_v30  ;;  %v4067_v30 = vld [vmem:[%s4520_s26 + $0x1e4] ss:$16 sps:$4 sm:$0xff]  }
  0xd1   : > { %1788 = vmatpush2.bf16.msra.mxu1 %v3972_v31  ;;  %1500 = vmatprep.subr.bf16.mxu0 %v4329_v1  ;;  %v4069_v31 = vld [vmem:[%s4520_s26 + $0x1ec] ss:$16 sps:$4 sm:$0xff]  }
  0xd2   : > { %1789 = vmatprep.subr.bf16.mxu1 %v4329_v1 }
  0xd4   : > { %1501 = vmatpush2.bf16.msra.mxu0 %v3973_v32  ;;  %v4071_v32 = vld [vmem:[%s4520_s26 + $0x1e0] ss:$16 sps:$4 sm:$0xff]  }
  0xd5   : > { %1790 = vmatpush2.bf16.msra.mxu1 %v3974_v33  ;;  %1502 = vmatprep.subr.bf16.mxu0 %v4329_v1  ;;  %v4072_v33 = vld [vmem:[%s4520_s26 + $0x1e8] ss:$16 sps:$4 sm:$0xff]  }
  0xd6   : > { %1791 = vmatprep.subr.bf16.mxu1 %v4329_v1  ;;  %v4024_v1 = vld [vmem:[%s4520_s26 + $0xe8] ss:$16 sps:$4 sm:$0xff]  }
  0xd8   : > { %1503 = vmatpush2.bf16.msra.mxu0 %v3975_v34  ;;  %v4073_v34 = vld [vmem:[%s4520_s26 + $0x204] ss:$16 sps:$4 sm:$0xff]  }
  0xd9   : > { %1792 = vmatpush2.bf16.msra.mxu1 %v3976_v35  ;;  %v4075_v35 = vld [vmem:[%s4520_s26 + $0x20c] ss:$16 sps:$4 sm:$0xff]  }
  0xdb   : > { %1505 = vmatmul.mubr.bf16.vlgmr.msra.gmra.mxu0 %v3977_v36  ;;  %v4077_v36 = vld [vmem:[%s4520_s26 + $0x200] ss:$16 sps:$4 sm:$0xff]  }
  0xdc   : > { %1794 = vmatmul.mubr.bf16.vlgmr.msra.gmra.mxu1 %v3980_v37  ;;  %1512 = vmatprep.mubr.bf16.mxu0 %v3983_v38  ;;  %v4078_v37 = vld [vmem:[%s4520_s26 + $0x208] ss:$16 sps:$4 sm:$0xff]   ;;  %v4079_v38 = vld [vmem:[%s4520_s26 + $0x224] ss:$16 sps:$4 sm:$0xff]  }
  0xdd   : > { %1801 = vmatprep.mubr.bf16.mxu1 %v3985_v39  ;;  %v4081_v39 = vld [vmem:[%s4520_s26 + $0x22c] ss:$16 sps:$4 sm:$0xff]  }
  0xe3   : > { %1513 = vmatmul.mubr.bf16.gmra.mxu0 %v3987_v40  ;;  %v4083_v40 = vld [vmem:[%s4520_s26 + $0x220] ss:$16 sps:$4 sm:$0xff]  }
  0xe4   : > { %1802 = vmatmul.mubr.bf16.gmra.mxu1 %v3988_v41  ;;  %1520 = vmatprep.mubr.bf16.mxu0 %v3989_v42  ;;  %v4084_v41 = vld [vmem:[%s4520_s26 + $0x228] ss:$16 sps:$4 sm:$0xff]   ;;  %v4085_v42 = vld [vmem:[%s4520_s26 + $0x244] ss:$16 sps:$4 sm:$0xff]  }
  0xe5   : > { %1809 = vmatprep.mubr.bf16.mxu1 %v3991_v43  ;;  %v4087_v43 = vld [vmem:[%s4520_s26 + $0x24c] ss:$16 sps:$4 sm:$0xff]  }
  0xeb   : > { %1521 = vmatmul.mubr.bf16.gmra.mxu0 %v3993_v44  ;;  %v4089_v44 = vld [vmem:[%s4520_s26 + $0x240] ss:$16 sps:$4 sm:$0xff]  }
  0xec   : > { %1810 = vmatmul.mubr.bf16.gmra.mxu1 %v3994_v45  ;;  %1528 = vmatprep.mubr.bf16.mxu0 %v3995_v46  ;;  %v4090_v45 = vld [vmem:[%s4520_s26 + $0x248] ss:$16 sps:$4 sm:$0xff]   ;;  %v4091_v46 = vld [vmem:[%s4520_s26 + $0x264] ss:$16 sps:$4 sm:$0xff]  }
  0xed   : > { %1817 = vmatprep.mubr.bf16.mxu1 %v3997_v47  ;;  %v4093_v47 = vld [vmem:[%s4520_s26 + $0x26c] ss:$16 sps:$4 sm:$0xff]  }
  0xf3   : > { %1529 = vmatmul.mubr.bf16.gmra.mxu0 %v3999_v48  ;;  %v4095_v48 = vld [vmem:[%s4520_s26 + $0x260] ss:$16 sps:$4 sm:$0xff]  }
  0xf4   : > { %1818 = vmatmul.mubr.bf16.gmra.mxu1 %v4000_v49  ;;  %1536 = vmatprep.mubr.bf16.mxu0 %v4001_v50  ;;  %v4096_v49 = vld [vmem:[%s4520_s26 + $0x268] ss:$16 sps:$4 sm:$0xff]   ;;  %v4097_v50 = vld [vmem:[%s4520_s26 + $0x284] ss:$16 sps:$4 sm:$0xff]  }
  0xf5   : > { %1825 = vmatprep.mubr.bf16.mxu1 %v4003_v51  ;;  %v4099_v51 = vld [vmem:[%s4520_s26 + $0x28c] ss:$16 sps:$4 sm:$0xff]  }
  0xfb   : > { %1537 = vmatmul.mubr.bf16.gmra.mxu0 %v4005_v52  ;;  %v4101_v52 = vld [vmem:[%s4520_s26 + $0x280] ss:$16 sps:$4 sm:$0xff]  }
  0xfc   : > { %1826 = vmatmul.mubr.bf16.gmra.mxu1 %v4006_v53  ;;  %1544 = vmatprep.mubr.bf16.mxu0 %v4007_v54  ;;  %v4102_v53 = vld [vmem:[%s4520_s26 + $0x288] ss:$16 sps:$4 sm:$0xff]   ;;  %v4103_v54 = vld [vmem:[%s4520_s26 + $0x2a4] ss:$16 sps:$4 sm:$0xff]  }
  0xfd   : > { %1833 = vmatprep.mubr.bf16.mxu1 %v4009_v55  ;;  %v4105_v55 = vld [vmem:[%s4520_s26 + $0x2ac] ss:$16 sps:$4 sm:$0xff]  }
 0x103   : > { %1545 = vmatmul.mubr.bf16.gmra.mxu0 %v4011_v56  ;;  %v4107_v56 = vld [vmem:[%s4520_s26 + $0x2a0] ss:$16 sps:$4 sm:$0xff]  }
 0x104   : > { %1834 = vmatmul.mubr.bf16.gmra.mxu1 %v4012_v57  ;;  %1552 = vmatprep.mubr.bf16.mxu0 %v4013_v58  ;;  %v4108_v57 = vld [vmem:[%s4520_s26 + $0x2a8] ss:$16 sps:$4 sm:$0xff]   ;;  %v4109_v58 = vld [vmem:[%s4520_s26 + $0x2c4] ss:$16 sps:$4 sm:$0xff]  }
 0x105   : > { %1841 = vmatprep.mubr.bf16.mxu1 %v4015_v59  ;;  %v4111_v59 = vld [vmem:[%s4520_s26 + $0x2cc] ss:$16 sps:$4 sm:$0xff]  }
 0x10b   : > { %1553 = vmatmul.mubr.bf16.gmra.mxu0 %v4017_v60  ;;  %v4113_v60 = vld [vmem:[%s4520_s26 + $0x2c0] ss:$16 sps:$4 sm:$0xff]  }
 0x10c   : > { %1842 = vmatmul.mubr.bf16.gmra.mxu1 %v4018_v61  ;;  %1560 = vmatprep.mubr.bf16.mxu0 %v4019_v62  ;;  %v4114_v61 = vld [vmem:[%s4520_s26 + $0x2c8] ss:$16 sps:$4 sm:$0xff]   ;;  %v4115_v62 = vld [vmem:[%s4520_s26 + $0x2e4] ss:$16 sps:$4 sm:$0xff]  }
 0x10d   : > { %1849 = vmatprep.mubr.bf16.mxu1 %v4021_v63  ;;  %v4117_v63 = vld [vmem:[%s4520_s26 + $0x2ec] ss:$16 sps:$4 sm:$0xff]  }
 0x113   : > { %1561 = vmatmul.mubr.bf16.gmra.mxu0 %v4023_v0  ;;  %v4119_v0 = vld [vmem:[%s4520_s26 + $0x2e0] ss:$16 sps:$4 sm:$0xff]  }
 0x114   : > { %1850 = vmatmul.mubr.bf16.gmra.mxu1 %v4024_v1  ;;  %1568 = vmatprep.mubr.bf16.mxu0 %v4025_v2  ;;  %v4120_v1 = vld [vmem:[%s4520_s26 + $0x2e8] ss:$16 sps:$4 sm:$0xff]   ;;  %v4121_v2 = vld [vmem:[%s4520_s26 + $0x304] ss:$16 sps:$4 sm:$0xff]  }
 0x115   : > { %1857 = vmatprep.mubr.bf16.mxu1 %v4027_v3  ;;  %v4123_v3 = vld [vmem:[%s4520_s26 + $0x30c] ss:$16 sps:$4 sm:$0xff]  }
 0x11b   : > { %1569 = vmatmul.mubr.bf16.gmra.mxu0 %v4029_v4  ;;  %v4125_v4 = vld [vmem:[%s4520_s26 + $0x300] ss:$16 sps:$4 sm:$0xff]  }
 0x11c   : > { %1858 = vmatmul.mubr.bf16.gmra.mxu1 %v4030_v5  ;;  %1576 = vmatprep.mubr.bf16.mxu0 %v4031_v6  ;;  %v4126_v5 = vld [vmem:[%s4520_s26 + $0x308] ss:$16 sps:$4 sm:$0xff]   ;;  %v4127_v6 = vld [vmem:[%s4520_s26 + $0x324] ss:$16 sps:$4 sm:$0xff]  }
 0x11d   : > { %1865 = vmatprep.mubr.bf16.mxu1 %v4033_v7  ;;  %v4129_v7 = vld [vmem:[%s4520_s26 + $0x32c] ss:$16 sps:$4 sm:$0xff]  }
 0x123   : > { %1577 = vmatmul.mubr.bf16.gmra.mxu0 %v4035_v8 }
 0x124   : > { %1866 = vmatmul.mubr.bf16.gmra.mxu1 %v4036_v9  ;;  %1584 = vmatprep.mubr.bf16.mxu0 %v4037_v10  ;;  %v448_v9 = vld [vmem:[#allocation2 + $0xb0] sm:$0xff] }
 0x125   : > { %1873 = vmatprep.mubr.bf16.mxu1 %v4039_v11 }
 0x12b   : > { %1585 = vmatmul.mubr.bf16.gmra.mxu0 %v4041_v12 }
 0x12c   : > { %1874 = vmatmul.mubr.bf16.gmra.mxu1 %v4042_v13  ;;  %1592 = vmatprep.mubr.bf16.mxu0 %v4043_v14 }
 0x12d   : > { %1881 = vmatprep.mubr.bf16.mxu1 %v4045_v15 }
 0x133   : > { %1593 = vmatmul.mubr.bf16.gmra.mxu0 %v4047_v16  ;;  %v4131_v16 = vld [vmem:[%s4520_s26 + $0x320] ss:$16 sps:$4 sm:$0xff]  }
 0x134   : > { %1882 = vmatmul.mubr.bf16.gmra.mxu1 %v4048_v17  ;;  %1600 = vmatprep.mubr.bf16.mxu0 %v4049_v18  ;;  %v449_v17 = vld [vmem:[#allocation2 + $0x1b0] sm:$0xff] }
 0x135   : > { %1889 = vmatprep.mubr.bf16.mxu1 %v4051_v19  ;;  %v4132_v19 = vld [vmem:[%s4520_s26 + $0x328] ss:$16 sps:$4 sm:$0xff]  }
 0x13b   : > { %1601 = vmatmul.mubr.bf16.gmra.mxu0 %v4053_v20  ;;  %v4133_v20 = vld [vmem:[%s4520_s26 + $0x344] ss:$16 sps:$4 sm:$0xff]  }
 0x13c   : > { %1890 = vmatmul.mubr.bf16.gmra.mxu1 %v4054_v21  ;;  %1608 = vmatprep.mubr.bf16.mxu0 %v4055_v22 }
 0x13d   : > { %1897 = vmatprep.mubr.bf16.mxu1 %v4057_v23  ;;  %v4135_v23 = vld [vmem:[%s4520_s26 + $0x34c] ss:$16 sps:$4 sm:$0xff]  }
 0x143   : > { %1609 = vmatmul.mubr.bf16.gmra.mxu0 %v4059_v24 }
 0x144   : > { %1898 = vmatmul.mubr.bf16.gmra.mxu1 %v4060_v25  ;;  %1616 = vmatprep.mubr.bf16.mxu0 %v4061_v26 }
 0x145   : > { %1905 = vmatprep.mubr.bf16.mxu1 %v4063_v27  ;;  %v450_v27 = vld [vmem:[#allocation2 + $0xd8] sm:$0xff] }
 0x14b   : > { %1617 = vmatmul.mubr.bf16.gmra.mxu0 %v4065_v28 }
 0x14c   : > { %1906 = vmatmul.mubr.bf16.gmra.mxu1 %v4066_v29  ;;  %1624 = vmatprep.mubr.bf16.mxu0 %v4067_v30 }
 0x14d   : > { %1913 = vmatprep.mubr.bf16.mxu1 %v4069_v31 }
 0x153   : > { %1625 = vmatmul.mubr.bf16.gmra.mxu0 %v4071_v32 }
 0x154   : > { %1914 = vmatmul.mubr.bf16.gmra.mxu1 %v4072_v33  ;;  %1632 = vmatprep.mubr.bf16.mxu0 %v4073_v34  ;;  %v4137_v34 = vld [vmem:[%s4520_s26 + $0x340] ss:$16 sps:$4 sm:$0xff]  }
 0x155   : > { %1921 = vmatprep.mubr.bf16.mxu1 %v4075_v35  ;;  %v451_v35 = vld [vmem:[#allocation2 + $0x18] sm:$0xff] }
 0x15b   : > { %1633 = vmatmul.mubr.bf16.gmra.mxu0 %v4077_v36 }
 0x15c   : > { %1922 = vmatmul.mubr.bf16.gmra.mxu1 %v4078_v37  ;;  %1640 = vmatprep.mubr.bf16.mxu0 %v4079_v38  ;;  %v4138_v37 = vld [vmem:[%s4520_s26 + $0x348] ss:$16 sps:$4 sm:$0xff]   ;;  %v4139_v38 = vld [vmem:[%s4520_s26 + $0x364] ss:$16 sps:$4 sm:$0xff]  }
 0x15d   : > { %1929 = vmatprep.mubr.bf16.mxu1 %v4081_v39 }
 0x163   : > { %1641 = vmatmul.mubr.bf16.gmra.mxu0 %v4083_v40 }
 0x164   : > { %1930 = vmatmul.mubr.bf16.gmra.mxu1 %v4084_v41  ;;  %1648 = vmatprep.mubr.bf16.mxu0 %v4085_v42  ;;  %v4141_v41 = vld [vmem:[%s4520_s26 + $0x36c] ss:$16 sps:$4 sm:$0xff]  }
 0x165   : > { %1937 = vmatprep.mubr.bf16.mxu1 %v4087_v43 }
 0x16b   : > { %1649 = vmatmul.mubr.bf16.gmra.mxu0 %v4089_v44 }
 0x16c   : > { %1938 = vmatmul.mubr.bf16.gmra.mxu1 %v4090_v45  ;;  %1656 = vmatprep.mubr.bf16.mxu0 %v4091_v46  ;;  %v452_v45 = vld [vmem:[#allocation2 + $0x50] sm:$0xff] }
 0x16d   : > { %1945 = vmatprep.mubr.bf16.mxu1 %v4093_v47 }
 0x173   : > { %1657 = vmatmul.mubr.bf16.gmra.mxu0 %v4095_v48 }
 0x174   : > { %1946 = vmatmul.mubr.bf16.gmra.mxu1 %v4096_v49  ;;  %1664 = vmatprep.mubr.bf16.mxu0 %v4097_v50 }
 0x175   : > { %1953 = vmatprep.mubr.bf16.mxu1 %v4099_v51 }
 0x17b   : > { %1665 = vmatmul.mubr.bf16.gmra.mxu0 %v4101_v52  ;;  %v4143_v52 = vld [vmem:[%s4520_s26 + $0x360] ss:$16 sps:$4 sm:$0xff]  }
 0x17c   : > { %1954 = vmatmul.mubr.bf16.gmra.mxu1 %v4102_v53  ;;  %1672 = vmatprep.mubr.bf16.mxu0 %v4103_v54  ;;  %v453_v53 = vld [vmem:[#allocation2 + $0x168] sm:$0xff] }
 0x17d   : > { %1961 = vmatprep.mubr.bf16.mxu1 %v4105_v55  ;;  %v4144_v55 = vld [vmem:[%s4520_s26 + $0x368] ss:$16 sps:$4 sm:$0xff]  }
 0x183   : > { %1673 = vmatmul.mubr.bf16.gmra.mxu0 %v4107_v56  ;;  %v4147_v56 = vld [vmem:[%s4520_s26 + $0x384] ss:$16 sps:$4 sm:$0xff]  }
 0x184   : > { %1962 = vmatmul.mubr.bf16.gmra.mxu1 %v4108_v57  ;;  %1680 = vmatprep.mubr.bf16.mxu0 %v4109_v58 }
 0x185   : > { %1969 = vmatprep.mubr.bf16.mxu1 %v4111_v59  ;;  %v4150_v59 = vld [vmem:[%s4520_s26 + $0x38c] ss:$16 sps:$4 sm:$0xff]  }
 0x18b   : > { %1681 = vmatmul.mubr.bf16.gmra.mxu0 %v4113_v60 }
 0x18c   : > { %1970 = vmatmul.mubr.bf16.gmra.mxu1 %v4114_v61  ;;  %1688 = vmatprep.mubr.bf16.mxu0 %v4115_v62 }
 0x18d   : > { %1977 = vmatprep.mubr.bf16.mxu1 %v4117_v63  ;;  %v454_v63 = vld [vmem:[#allocation2 + $0x130] sm:$0xff] }
 0x193   : > { %1689 = vmatmul.mubr.bf16.gmra.mxu0 %v4119_v0 }
 0x194   : > { %1978 = vmatmul.mubr.bf16.gmra.mxu1 %v4120_v1  ;;  %1696 = vmatprep.mubr.bf16.mxu0 %v4121_v2 }
 0x195   : > { %1985 = vmatprep.mubr.bf16.mxu1 %v4123_v3 }
 0x19b   : > { %v1506_v8 = vpop.f32.mrf.mxu0  ;;  %1697 = vmatmul.mubr.bf16.gmra.mxu0 %v4125_v4 }
 0x19c   : > { %v1795_v10 = vpop.f32.mrf.mxu1  ;;  %1986 = vmatmul.mubr.bf16.gmra.mxu1 %v4126_v5  ;;  %1704 = vmatprep.mubr.bf16.mxu0 %v4127_v6  ;;  %v4145_v6 = vld [vmem:[%s4520_s26 + $0x380] ss:$16 sps:$4 sm:$0xff]  }
 0x19d   : > { %v1796_v11 = vadd.f32 %v1795_v10, %v1506_v8  ;;  %v1508_v12 = vpop.f32.mrf.mxu0  ;;  %1993 = vmatprep.mubr.bf16.mxu1 %v4129_v7  ;;  %v455_v7 = vld [vmem:[#allocation2 + $0x48] sm:$0xff]  ;;  %v4153_v10 = vld [vmem:[%s4520_s26 + $0x3a4] ss:$16 sps:$4 sm:$0xff]  }
 0x19e   : > { %v1797_v13 = vpop.f32.mrf.mxu1 }
 0x19f   : > { %v2050_v14 = vadd.f32 %v1796_v11, %v448_v9  ;;  %v1509_v15 = vpop.f32.mrf.mxu0  ;;  %v4148_v9 = vld [vmem:[%s4520_s26 + $0x388] ss:$16 sps:$4 sm:$0xff]   ;;  %v4156_v13 = vld [vmem:[%s4520_s26 + $0x3ac] ss:$16 sps:$4 sm:$0xff]  }
 0x1a0   : > { %v1798_v18 = vpop.f32.mrf.mxu1 }
 0x1a1   : > { %2114 = vst [vmem:[#allocation2 + $0xb0] sm:$0xff] %v2050_v14  ;;  %v1799_v21 = vadd.f32 %v1798_v18, %v1509_v15  ;;  %v1511_v22 = vpop.f32.mrf.mxu0 }
 0x1a2   : > { %v1800_v24 = vpop.f32.mrf.mxu1 }
 0x1a3   : > { %v2051_v25 = vadd.f32 %v1799_v21, %v449_v17  ;;  %v1514_v26 = vpop.f32.mrf.mxu0  ;;  %1705 = vmatmul.mubr.bf16.gmra.mxu0 %v4131_v16  ;;  %v456_v17 = vld [vmem:[#allocation2 + $0x180] sm:$0xff] }
 0x1a4   : > { %v1803_v28 = vpop.f32.mrf.mxu1  ;;  %1994 = vmatmul.mubr.bf16.gmra.mxu1 %v4132_v19  ;;  %1712 = vmatprep.mubr.bf16.mxu0 %v4133_v20  ;;  %v4151_v24 = vld [vmem:[%s4520_s26 + $0x3a0] ss:$16 sps:$4 sm:$0xff]  }
 0x1a5   : > { %2115 = vst [vmem:[#allocation2 + $0x1b0] sm:$0xff] %v2051_v25  ;;  %v1804_v29 = vadd.f32 %v1803_v28, %v1514_v26  ;;  %v1516_v30 = vpop.f32.mrf.mxu0  ;;  %2001 = vmatprep.mubr.bf16.mxu1 %v4135_v23  ;;  %v457_v25 = vld [vmem:[#allocation2 + $0x110] sm:$0xff] }
 0x1a6   : > { %v1805_v31 = vpop.f32.mrf.mxu1  ;;  %v4159_v28 = vld [vmem:[%s4520_s26 + $0x3c4] ss:$16 sps:$4 sm:$0xff]  }
 0x1a7   : > { %v2052_v32 = vadd.f32 %v1804_v29, %v450_v27  ;;  %v1517_v33 = vpop.f32.mrf.mxu0  ;;  %v4154_v27 = vld [vmem:[%s4520_s26 + $0x3a8] ss:$16 sps:$4 sm:$0xff]   ;;  %v4162_v31 = vld [vmem:[%s4520_s26 + $0x3cc] ss:$16 sps:$4 sm:$0xff]  }
 0x1a8   : > { %v1806_v36 = vpop.f32.mrf.mxu1 }
 0x1a9   : > { %2116 = vst [vmem:[#allocation2 + $0xd8] sm:$0xff] %v2052_v32  ;;  %v1807_v39 = vadd.f32 %v1806_v36, %v1517_v33  ;;  %v1519_v40 = vpop.f32.mrf.mxu0 }
 0x1aa   : > { %v1808_v42 = vpop.f32.mrf.mxu1 }
 0x1ab   : > { %v2053_v43 = vadd.f32 %v1807_v39, %v451_v35  ;;  %v1522_v44 = vpop.f32.mrf.mxu0  ;;  %1713 = vmatmul.mubr.bf16.gmra.mxu0 %v4137_v34  ;;  %v458_v35 = vld [vmem:[#allocation2 + $0x118] sm:$0xff]  ;;  %v4157_v42 = vld [vmem:[%s4520_s26 + $0x3c0] ss:$16 sps:$4 sm:$0xff]  }
 0x1ac   : > { %v1811_v46 = vpop.f32.mrf.mxu1  ;;  %2002 = vmatmul.mubr.bf16.gmra.mxu1 %v4138_v37  ;;  %1720 = vmatprep.mubr.bf16.mxu0 %v4139_v38 }
 0x1ad   : > { %2117 = vst [vmem:[#allocation2 + $0x18] sm:$0xff] %v2053_v43  ;;  %v1812_v47 = vadd.f32 %v1811_v46, %v1522_v44  ;;  %v1524_v48 = vpop.f32.mrf.mxu0  ;;  %2009 = vmatprep.mubr.bf16.mxu1 %v4141_v41  ;;  %v459_v43 = vld [vmem:[#allocation2 + $0x98] sm:$0xff]  ;;  %v4165_v46 = vld [vmem:[%s4520_s26 + $0x3e4] ss:$16 sps:$4 sm:$0xff]  }
 0x1ae   : > { %v1813_v49 = vpop.f32.mrf.mxu1 }
 0x1af   : > { %v2054_v50 = vadd.f32 %v1812_v47, %v452_v45  ;;  %v1525_v51 = vpop.f32.mrf.mxu0  ;;  %v4160_v45 = vld [vmem:[%s4520_s26 + $0x3c8] ss:$16 sps:$4 sm:$0xff]   ;;  %v4168_v49 = vld [vmem:[%s4520_s26 + $0x3ec] ss:$16 sps:$4 sm:$0xff]  }
 0x1b0   : > { %v1814_v54 = vpop.f32.mrf.mxu1 }
 0x1b1   : > { %2118 = vst [vmem:[#allocation2 + $0x50] sm:$0xff] %v2054_v50  ;;  %v1815_v57 = vadd.f32 %v1814_v54, %v1525_v51  ;;  %v1527_v58 = vpop.f32.mrf.mxu0 }
 0x1b2   : > { %v1816_v60 = vpop.f32.mrf.mxu1 }
 0x1b3   : > { %v2055_v61 = vadd.f32 %v1815_v57, %v453_v53  ;;  %v1530_v62 = vpop.f32.mrf.mxu0  ;;  %1721 = vmatmul.mubr.bf16.gmra.mxu0 %v4143_v52  ;;  %v460_v53 = vld [vmem:[#allocation2 + $0x120] sm:$0xff] }
 0x1b4   : > { %v1819_v0 = vpop.f32.mrf.mxu1  ;;  %2010 = vmatmul.mubr.bf16.gmra.mxu1 %v4144_v55  ;;  %1728 = vmatprep.mubr.bf16.mxu0 %v4147_v56  ;;  %v4163_v60 = vld [vmem:[%s4520_s26 + $0x3e0] ss:$16 sps:$4 sm:$0xff]  }
 0x1b5   : > { %2119 = vst [vmem:[#allocation2 + $0x168] sm:$0xff] %v2055_v61  ;;  %v1820_v1 = vadd.f32 %v1819_v0, %v1530_v62  ;;  %v1532_v2 = vpop.f32.mrf.mxu0  ;;  %2017 = vmatprep.mubr.bf16.mxu1 %v4150_v59  ;;  %v461_v61 = vld [vmem:[#allocation2 + $0x150] sm:$0xff] }
 0x1b6   : > { %v1821_v3 = vpop.f32.mrf.mxu1 }
 0x1b7   : > { %v2056_v4 = vadd.f32 %v1820_v1, %v454_v63  ;;  %v1533_v5 = vpop.f32.mrf.mxu0  ;;  %v4166_v63 = vld [vmem:[%s4520_s26 + $0x3e8] ss:$16 sps:$4 sm:$0xff]  }
 0x1b8   : > { %v1822_v8 = vpop.f32.mrf.mxu1 }
 0x1b9   : > { %2120 = vst [vmem:[#allocation2 + $0x130] sm:$0xff] %v2056_v4  ;;  %v1823_v11 = vadd.f32 %v1822_v8, %v1533_v5  ;;  %v1535_v12 = vpop.f32.mrf.mxu0  ;;  %v462_v5 = vld [vmem:[#allocation2 + $0x108] sm:$0xff] }
 0x1ba   : > { %v1824_v14 = vpop.f32.mrf.mxu1  ;;  %v463_v12 = vld [vmem:[#allocation2 + $0x60] sm:$0xff] }
 0x1bb   : > { %v2057_v15 = vadd.f32 %v1823_v11, %v455_v7  ;;  %v1538_v16 = vpop.f32.mrf.mxu0  ;;  %1729 = vmatmul.mubr.bf16.gmra.mxu0 %v4145_v6 }
 0x1bc   : > { %v1827_v18 = vpop.f32.mrf.mxu1  ;;  %2018 = vmatmul.mubr.bf16.gmra.mxu1 %v4148_v9  ;;  %1736 = vmatprep.mubr.bf16.mxu0 %v4153_v10 }
 0x1bd   : > { %2121 = vst [vmem:[#allocation2 + $0x48] sm:$0xff] %v2057_v15  ;;  %v1828_v19 = vadd.f32 %v1827_v18, %v1538_v16  ;;  %v1540_v20 = vpop.f32.mrf.mxu0  ;;  %2025 = vmatprep.mubr.bf16.mxu1 %v4156_v13 }
 0x1be   : > { %v1829_v21 = vpop.f32.mrf.mxu1 }
 0x1bf   : > { %v2058_v22 = vadd.f32 %v1828_v19, %v456_v17  ;;  %v1541_v23 = vpop.f32.mrf.mxu0  ;;  %v464_v19 = vld [vmem:[#allocation2 + $0xe0] sm:$0xff] }
 0x1c0   : > { %v1830_v26 = vpop.f32.mrf.mxu1 }
 0x1c1   : > { %2122 = vst [vmem:[#allocation2 + $0x180] sm:$0xff] %v2058_v22  ;;  %v1831_v29 = vadd.f32 %v1830_v26, %v1541_v23  ;;  %v1543_v30 = vpop.f32.mrf.mxu0  ;;  %v465_v26 = vld [vmem:[#allocation2 + $0x188] sm:$0xff] }
 0x1c2   : > { %v1832_v32 = vpop.f32.mrf.mxu1 }
 0x1c3   : > { %v2059_v33 = vadd.f32 %v1831_v29, %v457_v25  ;;  %v1546_v34 = vpop.f32.mrf.mxu0  ;;  %1737 = vmatmul.mubr.bf16.gmra.mxu0 %v4151_v24 }
 0x1c4   : > { %v1835_v36 = vpop.f32.mrf.mxu1  ;;  %2026 = vmatmul.mubr.bf16.gmra.mxu1 %v4154_v27  ;;  %1744 = vmatprep.mubr.bf16.mxu0 %v4159_v28 }
 0x1c5   : > { %2123 = vst [vmem:[#allocation2 + $0x110] sm:$0xff] %v2059_v33  ;;  %v1836_v37 = vadd.f32 %v1835_v36, %v1546_v34  ;;  %v1548_v38 = vpop.f32.mrf.mxu0  ;;  %2033 = vmatprep.mubr.bf16.mxu1 %v4162_v31  ;;  %v466_v33 = vld [vmem:[#allocation2 + $0x138] sm:$0xff] }
 0x1c6   : > { %v1837_v39 = vpop.f32.mrf.mxu1 }
 0x1c7   : > { %v2060_v40 = vadd.f32 %v1836_v37, %v458_v35  ;;  %v1549_v41 = vpop.f32.mrf.mxu0 }
 0x1c8   : > { %v1838_v44 = vpop.f32.mrf.mxu1 }
 0x1c9   : > { %2124 = vst [vmem:[#allocation2 + $0x118] sm:$0xff] %v2060_v40  ;;  %v1839_v47 = vadd.f32 %v1838_v44, %v1549_v41  ;;  %v1551_v48 = vpop.f32.mrf.mxu0  ;;  %v467_v40 = vld [vmem:[#allocation2 + $0x140] sm:$0xff] }
 0x1ca   : > { %v1840_v50 = vpop.f32.mrf.mxu1 }
 0x1cb   : > { %v2061_v51 = vadd.f32 %v1839_v47, %v459_v43  ;;  %v1554_v52 = vpop.f32.mrf.mxu0  ;;  %1745 = vmatmul.mubr.bf16.gmra.mxu0 %v4157_v42  ;;  %v468_v47 = vld [vmem:[#allocation2 + $0x80] sm:$0xff] }
 0x1cc   : > { %v1843_v54 = vpop.f32.mrf.mxu1  ;;  %2034 = vmatmul.mubr.bf16.gmra.mxu1 %v4160_v45  ;;  %1752 = vmatprep.mubr.bf16.mxu0 %v4165_v46 }
 0x1cd   : > { %2125 = vst [vmem:[#allocation2 + $0x98] sm:$0xff] %v2061_v51  ;;  %v1844_v55 = vadd.f32 %v1843_v54, %v1554_v52  ;;  %v1556_v56 = vpop.f32.mrf.mxu0  ;;  %2041 = vmatprep.mubr.bf16.mxu1 %v4168_v49  ;;  %v469_v54 = vld [vmem:[#allocation2 + $0x1a8] sm:$0xff] }
 0x1ce   : > { %v1845_v57 = vpop.f32.mrf.mxu1 }
 0x1cf   : > { %v2062_v58 = vadd.f32 %v1844_v55, %v460_v53  ;;  %v1557_v59 = vpop.f32.mrf.mxu0 }
 0x1d0   : > { %v1846_v62 = vpop.f32.mrf.mxu1 }
 0x1d1   : > { %2126 = vst [vmem:[#allocation2 + $0x120] sm:$0xff] %v2062_v58  ;;  %v1847_v0 = vadd.f32 %v1846_v62, %v1557_v59  ;;  %v1559_v1 = vpop.f32.mrf.mxu0 }
 0x1d2   : > { %v1848_v2 = vpop.f32.mrf.mxu1 }
 0x1d3   : > { %v2063_v3 = vadd.f32 %v1847_v0, %v461_v61  ;;  %v1562_v4 = vpop.f32.mrf.mxu0  ;;  %1753 = vmatmul.mubr.bf16.gmra.mxu0 %v4163_v60  ;;  %v470_v61 = vld [vmem:[#allocation2 + $0x1b8] sm:$0xff] }
 0x1d4   : > { %v1851_v6 = vpop.f32.mrf.mxu1  ;;  %2042 = vmatmul.mubr.bf16.gmra.mxu1 %v4166_v63 }
 0x1d5   : > { %2127 = vst [vmem:[#allocation2 + $0x150] sm:$0xff] %v2063_v3  ;;  %v1852_v7 = vadd.f32 %v1851_v6, %v1562_v4  ;;  %v1564_v8 = vpop.f32.mrf.mxu0  ;;  %v471_v4 = vld [vmem:[#allocation2 + $0x28] sm:$0xff] }
 0x1d6   : > { %v1853_v9 = vpop.f32.mrf.mxu1 }
 0x1d7   : > { %v2064_v10 = vadd.f32 %v1852_v7, %v462_v5  ;;  %v1565_v11 = vpop.f32.mrf.mxu0 }
 0x1d8   : > { %v1854_v13 = vpop.f32.mrf.mxu1 }
 0x1d9   : > { %2128 = vst [vmem:[#allocation2 + $0x108] sm:$0xff] %v2064_v10  ;;  %v1855_v14 = vadd.f32 %v1854_v13, %v1565_v11  ;;  %v1567_v15 = vpop.f32.mrf.mxu0  ;;  %v472_v11 = vld [vmem:[#allocation2 + $0x1e8] sm:$0xff] }
 0x1da   : > { %v1856_v16 = vpop.f32.mrf.mxu1 }
 0x1db   : > { %v2065_v17 = vadd.f32 %v1855_v14, %v463_v12  ;;  %v1570_v18 = vpop.f32.mrf.mxu0 }
 0x1dc   : > { %v1859_v20 = vpop.f32.mrf.mxu1 }
 0x1dd   : > { %2129 = vst [vmem:[#allocation2 + $0x60] sm:$0xff] %v2065_v17  ;;  %v1860_v21 = vadd.f32 %v1859_v20, %v1570_v18  ;;  %v1572_v22 = vpop.f32.mrf.mxu0  ;;  %v473_v18 = vld [vmem:[#allocation2 + $0xf8] sm:$0xff] }
 0x1de   : > { %v1861_v23 = vpop.f32.mrf.mxu1 }
 0x1df   : > { %v2066_v24 = vadd.f32 %v1860_v21, %v464_v19  ;;  %v1573_v25 = vpop.f32.mrf.mxu0 }
 0x1e0   : > { %v1862_v27 = vpop.f32.mrf.mxu1 }
 0x1e1   : > { %2130 = vst [vmem:[#allocation2 + $0xe0] sm:$0xff] %v2066_v24  ;;  %v1863_v28 = vadd.f32 %v1862_v27, %v1573_v25  ;;  %v1575_v29 = vpop.f32.mrf.mxu0  ;;  %v474_v25 = vld [vmem:[#allocation2 + $0x160] sm:$0xff] }
 0x1e2   : > { %v1864_v30 = vpop.f32.mrf.mxu1 }
 0x1e3   : > { %v2067_v31 = vadd.f32 %v1863_v28, %v465_v26  ;;  %v1578_v32 = vpop.f32.mrf.mxu0 }
 0x1e4   : > { %v1867_v34 = vpop.f32.mrf.mxu1 }
 0x1e5   : > { %2131 = vst [vmem:[#allocation2 + $0x188] sm:$0xff] %v2067_v31  ;;  %v1868_v35 = vadd.f32 %v1867_v34, %v1578_v32  ;;  %v1580_v36 = vpop.f32.mrf.mxu0  ;;  %v475_v32 = vld [vmem:[#allocation2 + $0x30] sm:$0xff] }
 0x1e6   : > { %v1869_v37 = vpop.f32.mrf.mxu1 }
 0x1e7   : > { %v2068_v38 = vadd.f32 %v1868_v35, %v466_v33  ;;  %v1581_v39 = vpop.f32.mrf.mxu0 }
 0x1e8   : > { %v1870_v41 = vpop.f32.mrf.mxu1 }
 0x1e9   : > { %2132 = vst [vmem:[#allocation2 + $0x138] sm:$0xff] %v2068_v38  ;;  %v1871_v42 = vadd.f32 %v1870_v41, %v1581_v39  ;;  %v1583_v43 = vpop.f32.mrf.mxu0  ;;  %v476_v39 = vld [vmem:[#allocation2 + $0x1e0] sm:$0xff] }
 0x1ea   : > { %v1872_v44 = vpop.f32.mrf.mxu1 }
 0x1eb   : > { %v2069_v45 = vadd.f32 %v1871_v42, %v467_v40  ;;  %v1586_v46 = vpop.f32.mrf.mxu0 }
 0x1ec   : > { %v1875_v48 = vpop.f32.mrf.mxu1 }
 0x1ed   : > { %2133 = vst [vmem:[#allocation2 + $0x140] sm:$0xff] %v2069_v45  ;;  %v1876_v49 = vadd.f32 %v1875_v48, %v1586_v46  ;;  %v1588_v50 = vpop.f32.mrf.mxu0  ;;  %v477_v46 = vld [vmem:[#allocation2] sm:$0xff] }
 0x1ee   : > { %v1877_v51 = vpop.f32.mrf.mxu1 }
 0x1ef   : > { %v2070_v52 = vadd.f32 %v1876_v49, %v468_v47  ;;  %v1589_v53 = vpop.f32.mrf.mxu0 }
 0x1f0   : > { %v1878_v55 = vpop.f32.mrf.mxu1 }
 0x1f1   : > { %2134 = vst [vmem:[#allocation2 + $0x80] sm:$0xff] %v2070_v52  ;;  %v1879_v56 = vadd.f32 %v1878_v55, %v1589_v53  ;;  %v1591_v57 = vpop.f32.mrf.mxu0  ;;  %v478_v53 = vld [vmem:[#allocation2 + $0xf0] sm:$0xff] }
 0x1f2   : > { %v1880_v58 = vpop.f32.mrf.mxu1 }
 0x1f3   : > { %v2071_v59 = vadd.f32 %v1879_v56, %v469_v54  ;;  %v1594_v60 = vpop.f32.mrf.mxu0 }
 0x1f4   : > { %v1883_v62 = vpop.f32.mrf.mxu1 }
 0x1f5   : > { %2135 = vst [vmem:[#allocation2 + $0x1a8] sm:$0xff] %v2071_v59  ;;  %v1884_v63 = vadd.f32 %v1883_v62, %v1594_v60  ;;  %v1596_v0 = vpop.f32.mrf.mxu0  ;;  %v479_v60 = vld [vmem:[#allocation2 + $0x8] sm:$0xff] }
 0x1f6   : > { %v1885_v1 = vpop.f32.mrf.mxu1 }
 0x1f7   : > { %v2072_v2 = vadd.f32 %v1884_v63, %v470_v61  ;;  %v1597_v3 = vpop.f32.mrf.mxu0 }
 0x1f8   : > { %v1886_v5 = vpop.f32.mrf.mxu1 }
 0x1f9   : > { %2136 = vst [vmem:[#allocation2 + $0x1b8] sm:$0xff] %v2072_v2  ;;  %v1887_v6 = vadd.f32 %v1886_v5, %v1597_v3  ;;  %v1599_v7 = vpop.f32.mrf.mxu0  ;;  %v480_v3 = vld [vmem:[#allocation2 + $0x148] sm:$0xff] }
 0x1fa   : > { %v1888_v8 = vpop.f32.mrf.mxu1 }
 0x1fb   : > { %v2073_v9 = vadd.f32 %v1887_v6, %v471_v4  ;;  %v1602_v10 = vpop.f32.mrf.mxu0 }
 0x1fc   : > { %v1891_v12 = vpop.f32.mrf.mxu1 }
 0x1fd   : > { %2137 = vst [vmem:[#allocation2 + $0x28] sm:$0xff] %v2073_v9  ;;  %v1892_v13 = vadd.f32 %v1891_v12, %v1602_v10  ;;  %v1604_v14 = vpop.f32.mrf.mxu0  ;;  %v481_v10 = vld [vmem:[#allocation2 + $0x1d0] sm:$0xff] }
 0x1fe   : > { %v1893_v15 = vpop.f32.mrf.mxu1 }
 0x1ff   : > { %v2074_v16 = vadd.f32 %v1892_v13, %v472_v11  ;;  %v1605_v17 = vpop.f32.mrf.mxu0 }
 0x200   : > { %v1894_v19 = vpop.f32.mrf.mxu1 }
 0x201   : > { %2138 = vst [vmem:[#allocation2 + $0x1e8] sm:$0xff] %v2074_v16  ;;  %v1895_v20 = vadd.f32 %v1894_v19, %v1605_v17  ;;  %v1607_v21 = vpop.f32.mrf.mxu0  ;;  %v482_v17 = vld [vmem:[#allocation2 + $0x100] sm:$0xff] }
 0x202   : > { %v1896_v22 = vpop.f32.mrf.mxu1 }
 0x203   : > { %v2075_v23 = vadd.f32 %v1895_v20, %v473_v18  ;;  %v1610_v24 = vpop.f32.mrf.mxu0 }
 0x204   : > { %v1899_v26 = vpop.f32.mrf.mxu1 }
 0x205   : > { %2139 = vst [vmem:[#allocation2 + $0xf8] sm:$0xff] %v2075_v23  ;;  %v1900_v27 = vadd.f32 %v1899_v26, %v1610_v24  ;;  %v1612_v28 = vpop.f32.mrf.mxu0  ;;  %v483_v24 = vld [vmem:[#allocation2 + $0xc8] sm:$0xff] }
 0x206   : > { %v1901_v29 = vpop.f32.mrf.mxu1 }
 0x207   : > { %v2076_v30 = vadd.f32 %v1900_v27, %v474_v25  ;;  %v1613_v31 = vpop.f32.mrf.mxu0 }
 0x208   : > { %v1902_v33 = vpop.f32.mrf.mxu1 }
 0x209   : > { %2140 = vst [vmem:[#allocation2 + $0x160] sm:$0xff] %v2076_v30  ;;  %v1903_v34 = vadd.f32 %v1902_v33, %v1613_v31  ;;  %v1615_v35 = vpop.f32.mrf.mxu0  ;;  %v484_v31 = vld [vmem:[#allocation2 + $0x40] sm:$0xff] }
 0x20a   : > { %v1904_v36 = vpop.f32.mrf.mxu1 }
 0x20b   : > { %v2077_v37 = vadd.f32 %v1903_v34, %v475_v32  ;;  %v1618_v38 = vpop.f32.mrf.mxu0 }
 0x20c   : > { %v1907_v40 = vpop.f32.mrf.mxu1 }
 0x20d   : > { %2141 = vst [vmem:[#allocation2 + $0x30] sm:$0xff] %v2077_v37  ;;  %v1908_v41 = vadd.f32 %v1907_v40, %v1618_v38  ;;  %v1620_v42 = vpop.f32.mrf.mxu0  ;;  %v485_v38 = vld [vmem:[#allocation2 + $0x1f8] sm:$0xff] }
 0x20e   : > { %v1909_v43 = vpop.f32.mrf.mxu1 }
 0x20f   : > { %v2078_v44 = vadd.f32 %v1908_v41, %v476_v39  ;;  %v1621_v45 = vpop.f32.mrf.mxu0 }
 0x210   : > { %v1910_v47 = vpop.f32.mrf.mxu1 }
 0x211   : > { %2142 = vst [vmem:[#allocation2 + $0x1e0] sm:$0xff] %v2078_v44  ;;  %v1911_v48 = vadd.f32 %v1910_v47, %v1621_v45  ;;  %v1623_v49 = vpop.f32.mrf.mxu0  ;;  %v486_v45 = vld [vmem:[#allocation2 + $0x20] sm:$0xff] }
 0x212   : > { %v1912_v50 = vpop.f32.mrf.mxu1 }
 0x213   : > { %v2079_v51 = vadd.f32 %v1911_v48, %v477_v46  ;;  %v1626_v52 = vpop.f32.mrf.mxu0 }
 0x214   : > { %v1915_v54 = vpop.f32.mrf.mxu1 }
 0x215   : > { %2143 = vst [vmem:[#allocation2] sm:$0xff] %v2079_v51  ;;  %v1916_v55 = vadd.f32 %v1915_v54, %v1626_v52  ;;  %v1628_v56 = vpop.f32.mrf.mxu0  ;;  %v487_v52 = vld [vmem:[#allocation2 + $0x128] sm:$0xff] }
 0x216   : > { %v1917_v57 = vpop.f32.mrf.mxu1 }
 0x217   : > { %v2080_v58 = vadd.f32 %v1916_v55, %v478_v53  ;;  %v1629_v59 = vpop.f32.mrf.mxu0 }
 0x218   : > { %v1918_v61 = vpop.f32.mrf.mxu1 }
 0x219   : > { %2144 = vst [vmem:[#allocation2 + $0xf0] sm:$0xff] %v2080_v58  ;;  %v1919_v62 = vadd.f32 %v1918_v61, %v1629_v59  ;;  %v1631_v63 = vpop.f32.mrf.mxu0  ;;  %v488_v59 = vld [vmem:[#allocation2 + $0x1a0] sm:$0xff] }
 0x21a   : > { %v1920_v0 = vpop.f32.mrf.mxu1 }
 0x21b   : > { %v2081_v1 = vadd.f32 %v1919_v62, %v479_v60  ;;  %v1634_v2 = vpop.f32.mrf.mxu0 }
 0x21c   : > { %v1923_v4 = vpop.f32.mrf.mxu1 }
 0x21d   : > { %2145 = vst [vmem:[#allocation2 + $0x8] sm:$0xff] %v2081_v1  ;;  %v1924_v5 = vadd.f32 %v1923_v4, %v1634_v2  ;;  %v1636_v6 = vpop.f32.mrf.mxu0  ;;  %v489_v2 = vld [vmem:[#allocation2 + $0x1f0] sm:$0xff] }
 0x21e   : > { %v1925_v7 = vpop.f32.mrf.mxu1 }
 0x21f   : > { %v2082_v8 = vadd.f32 %v1924_v5, %v480_v3  ;;  %v1637_v9 = vpop.f32.mrf.mxu0 }
 0x220   : > { %v1926_v11 = vpop.f32.mrf.mxu1 }
 0x221   : > { %2146 = vst [vmem:[#allocation2 + $0x148] sm:$0xff] %v2082_v8  ;;  %v1927_v12 = vadd.f32 %v1926_v11, %v1637_v9  ;;  %v1639_v13 = vpop.f32.mrf.mxu0  ;;  %v490_v9 = vld [vmem:[#allocation2 + $0xe8] sm:$0xff] }
 0x222   : > { %v1928_v14 = vpop.f32.mrf.mxu1 }
 0x223   : > { %v2083_v15 = vadd.f32 %v1927_v12, %v481_v10  ;;  %v1642_v16 = vpop.f32.mrf.mxu0 }
 0x224   : > { %v1931_v18 = vpop.f32.mrf.mxu1 }
 0x225   : > { %2147 = vst [vmem:[#allocation2 + $0x1d0] sm:$0xff] %v2083_v15  ;;  %v1932_v19 = vadd.f32 %v1931_v18, %v1642_v16  ;;  %v1644_v20 = vpop.f32.mrf.mxu0  ;;  %v491_v16 = vld [vmem:[#allocation2 + $0x78] sm:$0xff] }
 0x226   : > { %v1933_v21 = vpop.f32.mrf.mxu1 }
 0x227   : > { %v2084_v22 = vadd.f32 %v1932_v19, %v482_v17  ;;  %v1645_v23 = vpop.f32.mrf.mxu0 }
 0x228   : > { %v1934_v25 = vpop.f32.mrf.mxu1 }
 0x229   : > { %2148 = vst [vmem:[#allocation2 + $0x100] sm:$0xff] %v2084_v22  ;;  %v1935_v26 = vadd.f32 %v1934_v25, %v1645_v23  ;;  %v1647_v27 = vpop.f32.mrf.mxu0  ;;  %v492_v23 = vld [vmem:[#allocation2 + $0x70] sm:$0xff] }
 0x22a   : > { %v1936_v28 = vpop.f32.mrf.mxu1 }
 0x22b   : > { %v2085_v29 = vadd.f32 %v1935_v26, %v483_v24  ;;  %v1650_v30 = vpop.f32.mrf.mxu0 }
 0x22c   : > { %v1939_v32 = vpop.f32.mrf.mxu1 }
 0x22d   : > { %2149 = vst [vmem:[#allocation2 + $0xc8] sm:$0xff] %v2085_v29  ;;  %v1940_v33 = vadd.f32 %v1939_v32, %v1650_v30  ;;  %v1652_v34 = vpop.f32.mrf.mxu0  ;;  %v493_v30 = vld [vmem:[#allocation2 + $0x90] sm:$0xff] }
 0x22e   : > { %v1941_v35 = vpop.f32.mrf.mxu1 }
 0x22f   : > { %v2086_v36 = vadd.f32 %v1940_v33, %v484_v31  ;;  %v1653_v37 = vpop.f32.mrf.mxu0 }
 0x230   : > { %v1942_v39 = vpop.f32.mrf.mxu1 }
 0x231   : > { %2150 = vst [vmem:[#allocation2 + $0x40] sm:$0xff] %v2086_v36  ;;  %v1943_v40 = vadd.f32 %v1942_v39, %v1653_v37  ;;  %v1655_v41 = vpop.f32.mrf.mxu0  ;;  %v494_v37 = vld [vmem:[#allocation2 + $0x1d8] sm:$0xff] }
 0x232   : > { %v1944_v42 = vpop.f32.mrf.mxu1 }
 0x233   : > { %v2087_v43 = vadd.f32 %v1943_v40, %v485_v38  ;;  %v1658_v44 = vpop.f32.mrf.mxu0 }
 0x234   : > { %v1947_v46 = vpop.f32.mrf.mxu1 }
 0x235   : > { %2151 = vst [vmem:[#allocation2 + $0x1f8] sm:$0xff] %v2087_v43  ;;  %v1948_v47 = vadd.f32 %v1947_v46, %v1658_v44  ;;  %v1660_v48 = vpop.f32.mrf.mxu0  ;;  %v495_v44 = vld [vmem:[#allocation2 + $0xd0] sm:$0xff] }
 0x236   : > { %v1949_v49 = vpop.f32.mrf.mxu1 }
 0x237   : > { %v2088_v50 = vadd.f32 %v1948_v47, %v486_v45  ;;  %v1661_v51 = vpop.f32.mrf.mxu0 }
 0x238   : > { %v1950_v53 = vpop.f32.mrf.mxu1 }
 0x239   : > { %2152 = vst [vmem:[#allocation2 + $0x20] sm:$0xff] %v2088_v50  ;;  %v1951_v54 = vadd.f32 %v1950_v53, %v1661_v51  ;;  %v1663_v55 = vpop.f32.mrf.mxu0  ;;  %v496_v51 = vld [vmem:[#allocation2 + $0xb8] sm:$0xff] }
 0x23a   : > { %v1952_v56 = vpop.f32.mrf.mxu1 }
 0x23b   : > { %v2089_v57 = vadd.f32 %v1951_v54, %v487_v52  ;;  %v1666_v58 = vpop.f32.mrf.mxu0 }
 0x23c   : > { %v1955_v60 = vpop.f32.mrf.mxu1 }
 0x23d   : > { %2153 = vst [vmem:[#allocation2 + $0x128] sm:$0xff] %v2089_v57  ;;  %v1956_v61 = vadd.f32 %v1955_v60, %v1666_v58  ;;  %v1668_v62 = vpop.f32.mrf.mxu0  ;;  %v497_v58 = vld [vmem:[#allocation2 + $0x88] sm:$0xff] }
 0x23e   : > { %v1957_v63 = vpop.f32.mrf.mxu1 }
 0x23f   : > { %v2090_v0 = vadd.f32 %v1956_v61, %v488_v59  ;;  %v1669_v1 = vpop.f32.mrf.mxu0 }
 0x240   : > { %v1958_v3 = vpop.f32.mrf.mxu1 }
 0x241   : > { %2154 = vst [vmem:[#allocation2 + $0x1a0] sm:$0xff] %v2090_v0  ;;  %v1959_v4 = vadd.f32 %v1958_v3, %v1669_v1  ;;  %v1671_v5 = vpop.f32.mrf.mxu0  ;;  %v498_v1 = vld [vmem:[#allocation2 + $0xa8] sm:$0xff] }
 0x242   : > { %v1960_v6 = vpop.f32.mrf.mxu1 }
 0x243   : > { %v2091_v7 = vadd.f32 %v1959_v4, %v489_v2  ;;  %v1674_v8 = vpop.f32.mrf.mxu0 }
 0x244   : > { %v1963_v10 = vpop.f32.mrf.mxu1 }
 0x245   : > { %2155 = vst [vmem:[#allocation2 + $0x1f0] sm:$0xff] %v2091_v7  ;;  %v1964_v11 = vadd.f32 %v1963_v10, %v1674_v8  ;;  %v1676_v12 = vpop.f32.mrf.mxu0  ;;  %v499_v8 = vld [vmem:[#allocation2 + $0x1c8] sm:$0xff] }
 0x246   : > { %v1965_v13 = vpop.f32.mrf.mxu1 }
 0x247   : > { %v2092_v14 = vadd.f32 %v1964_v11, %v490_v9  ;;  %v1677_v15 = vpop.f32.mrf.mxu0 }
 0x248   : > { %v1966_v17 = vpop.f32.mrf.mxu1 }
 0x249   : > { %2156 = vst [vmem:[#allocation2 + $0xe8] sm:$0xff] %v2092_v14  ;;  %v1967_v18 = vadd.f32 %v1966_v17, %v1677_v15  ;;  %v1679_v19 = vpop.f32.mrf.mxu0  ;;  %v500_v15 = vld [vmem:[#allocation2 + $0x170] sm:$0xff] }
 0x24a   : > { %v1968_v20 = vpop.f32.mrf.mxu1 }
 0x24b   : > { %v2093_v21 = vadd.f32 %v1967_v18, %v491_v16  ;;  %v1682_v22 = vpop.f32.mrf.mxu0 }
 0x24c   : > { %v1971_v24 = vpop.f32.mrf.mxu1 }
 0x24d   : > { %2157 = vst [vmem:[#allocation2 + $0x78] sm:$0xff] %v2093_v21  ;;  %v1972_v25 = vadd.f32 %v1971_v24, %v1682_v22  ;;  %v1684_v26 = vpop.f32.mrf.mxu0  ;;  %v501_v22 = vld [vmem:[#allocation2 + $0x178] sm:$0xff] }
 0x24e   : > { %v1973_v27 = vpop.f32.mrf.mxu1 }
 0x24f   : > { %v2094_v28 = vadd.f32 %v1972_v25, %v492_v23  ;;  %v1685_v29 = vpop.f32.mrf.mxu0 }
 0x250   : > { %v1974_v31 = vpop.f32.mrf.mxu1 }
 0x251   : > { %2158 = vst [vmem:[#allocation2 + $0x70] sm:$0xff] %v2094_v28  ;;  %v1975_v32 = vadd.f32 %v1974_v31, %v1685_v29  ;;  %v1687_v33 = vpop.f32.mrf.mxu0  ;;  %v502_v29 = vld [vmem:[#allocation2 + $0x68] sm:$0xff] }
 0x252   : > { %v1976_v34 = vpop.f32.mrf.mxu1 }
 0x253   : > { %v2095_v35 = vadd.f32 %v1975_v32, %v493_v30  ;;  %v1690_v36 = vpop.f32.mrf.mxu0 }
 0x254   : > { %v1979_v38 = vpop.f32.mrf.mxu1 }
 0x255   : > { %2159 = vst [vmem:[#allocation2 + $0x90] sm:$0xff] %v2095_v35  ;;  %v1980_v39 = vadd.f32 %v1979_v38, %v1690_v36  ;;  %v1692_v40 = vpop.f32.mrf.mxu0  ;;  %v503_v36 = vld [vmem:[#allocation2 + $0x190] sm:$0xff] }
 0x256   : > { %v1981_v41 = vpop.f32.mrf.mxu1 }
 0x257   : > { %v2096_v42 = vadd.f32 %v1980_v39, %v494_v37  ;;  %v1693_v43 = vpop.f32.mrf.mxu0 }
 0x258   : > { %v1982_v45 = vpop.f32.mrf.mxu1 }
 0x259   : > { %2160 = vst [vmem:[#allocation2 + $0x1d8] sm:$0xff] %v2096_v42  ;;  %v1983_v46 = vadd.f32 %v1982_v45, %v1693_v43  ;;  %v1695_v47 = vpop.f32.mrf.mxu0  ;;  %v504_v43 = vld [vmem:[#allocation2 + $0x198] sm:$0xff] }
 0x25a   : > { %v1984_v48 = vpop.f32.mrf.mxu1 }
 0x25b   : > { %v2097_v49 = vadd.f32 %v1983_v46, %v495_v44  ;;  %v1698_v50 = vpop.f32.mrf.mxu0 }
 0x25c   : > { %v1987_v52 = vpop.f32.mrf.mxu1 }
 0x25d   : > { %2161 = vst [vmem:[#allocation2 + $0xd0] sm:$0xff] %v2097_v49  ;;  %v1988_v53 = vadd.f32 %v1987_v52, %v1698_v50  ;;  %v1700_v54 = vpop.f32.mrf.mxu0  ;;  %v505_v50 = vld [vmem:[#allocation2 + $0x38] sm:$0xff] }
 0x25e   : > { %v1989_v55 = vpop.f32.mrf.mxu1 }
 0x25f   : > { %v2098_v56 = vadd.f32 %v1988_v53, %v496_v51  ;;  %v1701_v57 = vpop.f32.mrf.mxu0 }
 0x260   : > { %v1990_v59 = vpop.f32.mrf.mxu1 }
 0x261   : > { %2162 = vst [vmem:[#allocation2 + $0xb8] sm:$0xff] %v2098_v56  ;;  %v1991_v60 = vadd.f32 %v1990_v59, %v1701_v57  ;;  %v1703_v61 = vpop.f32.mrf.mxu0  ;;  %v506_v57 = vld [vmem:[#allocation2 + $0xc0] sm:$0xff] }
 0x262   : > { %v1992_v62 = vpop.f32.mrf.mxu1 }
 0x263   : > { %v2099_v63 = vadd.f32 %v1991_v60, %v497_v58  ;;  %v1706_v0 = vpop.f32.mrf.mxu0 }
 0x264   : > { %v1995_v2 = vpop.f32.mrf.mxu1 }
 0x265   : > { %2163 = vst [vmem:[#allocation2 + $0x88] sm:$0xff] %v2099_v63  ;;  %v1996_v3 = vadd.f32 %v1995_v2, %v1706_v0  ;;  %v1708_v4 = vpop.f32.mrf.mxu0  ;;  %v507_v0 = vld [vmem:[#allocation2 + $0x1c0] sm:$0xff] }
 0x266   : > { %v1997_v5 = vpop.f32.mrf.mxu1 }
 0x267   : > { %v2100_v6 = vadd.f32 %v1996_v3, %v498_v1  ;;  %v1709_v7 = vpop.f32.mrf.mxu0 }
 0x268   : > { %v1998_v9 = vpop.f32.mrf.mxu1 }
 0x269   : > { %2164 = vst [vmem:[#allocation2 + $0xa8] sm:$0xff] %v2100_v6  ;;  %v1999_v10 = vadd.f32 %v1998_v9, %v1709_v7  ;;  %v1711_v11 = vpop.f32.mrf.mxu0  ;;  %v508_v7 = vld [vmem:[#allocation2 + $0x158] sm:$0xff] }
 0x26a   : > { %v2000_v12 = vpop.f32.mrf.mxu1 }
 0x26b   : > { %v2101_v13 = vadd.f32 %v1999_v10, %v499_v8  ;;  %v1714_v14 = vpop.f32.mrf.mxu0 }
 0x26c   : > { %v2003_v16 = vpop.f32.mrf.mxu1 }
 0x26d   : > { %2165 = vst [vmem:[#allocation2 + $0x1c8] sm:$0xff] %v2101_v13  ;;  %v2004_v17 = vadd.f32 %v2003_v16, %v1714_v14  ;;  %v1716_v18 = vpop.f32.mrf.mxu0  ;;  %v509_v14 = vld [vmem:[#allocation2 + $0x10] sm:$0xff] }
 0x26e   : > { %v2005_v19 = vpop.f32.mrf.mxu1 }
 0x26f   : > { %v2102_v20 = vadd.f32 %v2004_v17, %v500_v15  ;;  %v1717_v21 = vpop.f32.mrf.mxu0 }
 0x270   : > { %v2006_v23 = vpop.f32.mrf.mxu1 }
 0x271   : > { %2166 = vst [vmem:[#allocation2 + $0x170] sm:$0xff] %v2102_v20  ;;  %v2007_v24 = vadd.f32 %v2006_v23, %v1717_v21  ;;  %v1719_v25 = vpop.f32.mrf.mxu0  ;;  %v510_v21 = vld [vmem:[#allocation2 + $0x58] sm:$0xff] }
 0x272   : > { %v2008_v26 = vpop.f32.mrf.mxu1 }
 0x273   : > { %v2103_v27 = vadd.f32 %v2007_v24, %v501_v22  ;;  %v1722_v28 = vpop.f32.mrf.mxu0 }
 0x274   : > { %v2011_v30 = vpop.f32.mrf.mxu1 }
 0x275   : > { %2167 = vst [vmem:[#allocation2 + $0x178] sm:$0xff] %v2103_v27  ;;  %v2012_v31 = vadd.f32 %v2011_v30, %v1722_v28  ;;  %v1724_v32 = vpop.f32.mrf.mxu0  ;;  %v511_v28 = vld [vmem:[#allocation2 + $0xa0] sm:$0xff] }
 0x276   : > { %v2013_v33 = vpop.f32.mrf.mxu1 }
 0x277   : > { %v2104_v34 = vadd.f32 %v2012_v31, %v502_v29  ;;  %v1725_v35 = vpop.f32.mrf.mxu0 }
 0x278   : > { %v2014_v37 = vpop.f32.mrf.mxu1 }
 0x279   : > { %2168 = vst [vmem:[#allocation2 + $0x68] sm:$0xff] %v2104_v34  ;;  %v2015_v38 = vadd.f32 %v2014_v37, %v1725_v35  ;;  %v1727_v39 = vpop.f32.mrf.mxu0 }
 0x27a   : > { %v2016_v40 = vpop.f32.mrf.mxu1 }
 0x27b   : > { %v2105_v41 = vadd.f32 %v2015_v38, %v503_v36  ;;  %v1730_v42 = vpop.f32.mrf.mxu0 }
 0x27c   : > { %v2019_v44 = vpop.f32.mrf.mxu1 }
 0x27d   : > { %2169 = vst [vmem:[#allocation2 + $0x190] sm:$0xff] %v2105_v41  ;;  %v2020_v45 = vadd.f32 %v2019_v44, %v1730_v42  ;;  %v1732_v46 = vpop.f32.mrf.mxu0 }
 0x27e   : > { %v2021_v47 = vpop.f32.mrf.mxu1 }
 0x27f   : > { %v2106_v48 = vadd.f32 %v2020_v45, %v504_v43  ;;  %v1733_v49 = vpop.f32.mrf.mxu0 }
 0x280   : > { %v2022_v51 = vpop.f32.mrf.mxu1 }
 0x281   : > { %2170 = vst [vmem:[#allocation2 + $0x198] sm:$0xff] %v2106_v48  ;;  %v2023_v52 = vadd.f32 %v2022_v51, %v1733_v49  ;;  %v1735_v53 = vpop.f32.mrf.mxu0 }
 0x282   : > { %v2024_v54 = vpop.f32.mrf.mxu1 }
 0x283   : > { %v2107_v55 = vadd.f32 %v2023_v52, %v505_v50  ;;  %v1738_v56 = vpop.f32.mrf.mxu0 }
 0x284   : > { %v2027_v58 = vpop.f32.mrf.mxu1 }
 0x285   : > { %2171 = vst [vmem:[#allocation2 + $0x38] sm:$0xff] %v2107_v55  ;;  %v2028_v59 = vadd.f32 %v2027_v58, %v1738_v56  ;;  %v1740_v60 = vpop.f32.mrf.mxu0 }
 0x286   : > { %v2029_v61 = vpop.f32.mrf.mxu1 }
 0x287   : > { %v2108_v62 = vadd.f32 %v2028_v59, %v506_v57  ;;  %v1741_v63 = vpop.f32.mrf.mxu0 }
 0x288   : > { %v2030_v1 = vpop.f32.mrf.mxu1 }
 0x289   : > { %2172 = vst [vmem:[#allocation2 + $0xc0] sm:$0xff] %v2108_v62  ;;  %v2031_v2 = vadd.f32 %v2030_v1, %v1741_v63  ;;  %v1743_v3 = vpop.f32.mrf.mxu0 }
 0x28a   : > { %v2032_v4 = vpop.f32.mrf.mxu1 }
 0x28b   : > { %v2109_v5 = vadd.f32 %v2031_v2, %v507_v0  ;;  %v1746_v6 = vpop.f32.mrf.mxu0 }
 0x28c   : > { %v2035_v8 = vpop.f32.mrf.mxu1 }
 0x28d   : > { %2173 = vst [vmem:[#allocation2 + $0x1c0] sm:$0xff] %v2109_v5  ;;  %v2036_v9 = vadd.f32 %v2035_v8, %v1746_v6  ;;  %v1748_v10 = vpop.f32.mrf.mxu0 }
 0x28e   : > { %v2037_v11 = vpop.f32.mrf.mxu1 }
 0x28f   : > { %v2110_v12 = vadd.f32 %v2036_v9, %v508_v7  ;;  %v1749_v13 = vpop.f32.mrf.mxu0 }
 0x290   : > { %v2038_v15 = vpop.f32.mrf.mxu1 }
 0x291   : > { %2174 = vst [vmem:[#allocation2 + $0x158] sm:$0xff] %v2110_v12  ;;  %v2039_v16 = vadd.f32 %v2038_v15, %v1749_v13  ;;  %v1751_v17 = vpop.f32.mrf.mxu0 }
 0x292   : > { %v2040_v18 = vpop.f32.mrf.mxu1 }
 0x293   : > { %v2111_v19 = vadd.f32 %v2039_v16, %v509_v14  ;;  %v1754_v20 = vpop.f32.mrf.mxu0 }
 0x294   : > { %v2043_v22 = vpop.f32.mrf.mxu1 }
 0x295   : > { %2175 = vst [vmem:[#allocation2 + $0x10] sm:$0xff] %v2111_v19  ;;  %v2044_v23 = vadd.f32 %v2043_v22, %v1754_v20  ;;  %v1756_v24 = vpop.f32.mrf.mxu0 }
 0x296   : > { %v2045_v25 = vpop.f32.mrf.mxu1 }
 0x297   : > { %v2112_v26 = vadd.f32 %v2044_v23, %v510_v21  ;;  %v1757_v27 = vpop.f32.mrf.mxu0 }
 0x298   : > { %v2046_v29 = vpop.f32.mrf.mxu1 }
 0x299   : > { %2176 = vst [vmem:[#allocation2 + $0x58] sm:$0xff] %v2112_v26  ;;  %v2047_v30 = vadd.f32 %v2046_v29, %v1757_v27  ;;  %v1759_v31 = vpop.f32.mrf.mxu0 }
 0x29a   : > { %v2048_v32 = vpop.f32.mrf.mxu1 }
 0x29b   : > { %v2113_v33 = vadd.f32 %v2047_v30, %v511_v28 }
 0x29d   : > { %2177 = vst [vmem:[#allocation2 + $0xa0] sm:$0xff] %v2113_v33 }
 0x29e PF: > { %p3384_p3 = scmp.ne.s32.totalorder %s4303_s30, 1 }
 0x2a0   : > { %2181 = sbr.rel (%p3384_p3) target bundleno = 968 (0x3c8), region = 56 }
 0x2a5   : > { %v4169_v34 = vld [vmem:[%s4953_s5 + $0x38] sm:$0xff]   ;;  %v4170_v35 = vld [vmem:[%s4953_s5 + $0x30] sm:$0xff]   ;;  %v4171_v36 = vld [vmem:[%s4953_s5 + $0x28] sm:$0xff]  }
 0x2a6   : > { %3756 = vmatprep.subr.bf16.mxu0 %v4169_v34  ;;  %3836 = vmatprep.subr.bf16.mxu1 %v4169_v34  ;;  %v4172_v37 = vld [vmem:[%s4953_s5 + $0x20] sm:$0xff]   ;;  %v2182_v38 = vld [vmem:[#allocation2 + $0xb0] sm:$0xff]  ;;  %v2214_v43 = vld [vmem:[#allocation2 + $0x148] sm:$0xff] }
 0x2a7   : > { %3757 = vmatpush3.bf16.msra.mxu0 %v4169_v34  ;;  %3844 = vmatpush3.bf16.msra.mxu1 %v4169_v34  ;;  %v2183_v39 = vld [vmem:[#allocation2 + $0x1b0] sm:$0xff]  ;;  %v4815_v40 = vld [vmem:[#allocation8] ss:$0 sm:$0xff]  ;;  %v4173_v49 = vld [vmem:[%s4953_s5 + $0x18] sm:$0xff]  }
 0x2a8   : > { %3758 = vmatprep.subr.bf16.mxu0 %v4170_v35  ;;  %3837 = vmatprep.subr.bf16.mxu1 %v4170_v35  ;;  %v2253_v41 = vadd.f32 %v4815_v40, %v2182_v38  ;;  %v2254_v42 = vadd.f32 %v4815_v40, %v2183_v39  ;;  %v2215_v44 = vld [vmem:[#allocation2 + $0x1d0] sm:$0xff]  ;;  %v2285_v45 = vadd.f32 %v4815_v40, %v2214_v43  ;;  %v2184_v55 = vld [vmem:[#allocation2 + $0xd8] sm:$0xff]  ;;  %v2216_v57 = vld [vmem:[#allocation2 + $0x100] sm:$0xff] }
 0x2a9   : > { %v2286_v46 = vadd.f32 %v4815_v40, %v2215_v44  ;;  %v4174_v54 = vld [vmem:[%s4953_s5 + $0x10] sm:$0xff]   ;;  %v2185_v56 = vld [vmem:[#allocation2 + $0x18] sm:$0xff]  ;;  %v2217_v58 = vld [vmem:[#allocation2 + $0xc8] sm:$0xff]  ;;  %v2255_v62 = vadd.f32 %v4815_v40, %v2184_v55  ;;  %v2287_v2 = vadd.f32 %v4815_v40, %v2216_v57 }
 0x2aa   : > { %v2317_v47 = vmax.f32 %v2253_v41, 0.0  ;;  %v2318_v48 = vmax.f32 %v2254_v42, 0.0  ;;  %v2349_v50 = vmax.f32 %v2285_v45, 0.0  ;;  %v2186_v59 = vld [vmem:[#allocation2 + $0x50] sm:$0xff]  ;;  %v2187_v60 = vld [vmem:[#allocation2 + $0x168] sm:$0xff]  ;;  %v2256_v63 = vadd.f32 %v4815_v40, %v2185_v56  ;;  %v2218_v0 = vld [vmem:[#allocation2 + $0x40] sm:$0xff] }
 0x2ab   : > { %3759 = vmatpush3.bf16.msra.mxu0 %v4170_v35  ;;  %3845 = vmatpush3.bf16.msra.mxu1 %v4170_v35  ;;  %v2350_v51 = vmax.f32 %v2286_v46, 0.0  ;;  %v4175_v61 = vld [vmem:[%s4953_s5 + $0x8] sm:$0xff]   ;;  %v2219_v1 = vld [vmem:[#allocation2 + $0x1f8] sm:$0xff]  ;;  %v2288_v3 = vadd.f32 %v4815_v40, %v2217_v58  ;;  %v2257_v4 = vadd.f32 %v4815_v40, %v2186_v59  ;;  %v2258_v5 = vadd.f32 %v4815_v40, %v2187_v60  ;;  %v4176_v8 = vld [vmem:[%s4953_s5] sm:$0xff]  }
 0x2ac   : > { %3760 = vmatprep.subr.bf16.mxu0 %v4171_v36  ;;  %3838 = vmatprep.subr.bf16.mxu1 %v4171_v36  ;;  %v2381_v52 = vpack.c.bf16 %v2318_v48, %v2317_v47  ;;  %v2289_v6 = vadd.f32 %v4815_v40, %v2218_v0  ;;  %v2290_v7 = vadd.f32 %v4815_v40, %v2219_v1  ;;  %v2319_v9 = vmax.f32 %v2255_v62, 0.0  ;;  %v2188_v15 = vld [vmem:[#allocation2 + $0x130] sm:$0xff]  ;;  %v2189_v16 = vld [vmem:[#allocation2 + $0x48] sm:$0xff]  ;;  %v2220_v17 = vld [vmem:[#allocation2 + $0x20] sm:$0xff] }
 0x2ad   : > { %v2397_v53 = vpack.c.bf16 %v2350_v51, %v2349_v50  ;;  %v2320_v10 = vmax.f32 %v2256_v63, 0.0  ;;  %v2351_v11 = vmax.f32 %v2287_v2, 0.0  ;;  %v2352_v12 = vmax.f32 %v2288_v3, 0.0  ;;  %v2221_v20 = vld [vmem:[#allocation2 + $0x128] sm:$0xff]  ;;  %v2190_v21 = vld [vmem:[#allocation2 + $0x180] sm:$0xff]  ;;  %v2191_v22 = vld [vmem:[#allocation2 + $0x110] sm:$0xff] }
 0x2ae   : > { %3772 = vmatprep.mubr.bf16.mxu0 %v2381_v52  ;;  %v2321_v13 = vmax.f32 %v2257_v4, 0.0  ;;  %v2322_v14 = vmax.f32 %v2258_v5, 0.0  ;;  %v2353_v18 = vmax.f32 %v2289_v6, 0.0  ;;  %v2354_v19 = vmax.f32 %v2290_v7, 0.0  ;;  %v2222_v24 = vld [vmem:[#allocation2 + $0x1a0] sm:$0xff]  ;;  %v2223_v25 = vld [vmem:[#allocation2 + $0x1f0] sm:$0xff] }
 0x2af   : > { %3761 = vmatpush3.bf16.msra.mxu0 %v4171_v36  ;;  %3846 = vmatpush3.bf16.msra.mxu1 %v4171_v36  ;;  %v2382_v23 = vpack.c.bf16 %v2320_v10, %v2319_v9  ;;  %v2398_v26 = vpack.c.bf16 %v2352_v12, %v2351_v11  ;;  %v2259_v27 = vadd.f32 %v4815_v40, %v2188_v15  ;;  %v2192_v39 = vld [vmem:[#allocation2 + $0x118] sm:$0xff]  ;;  %v2224_v46 = vld [vmem:[#allocation2 + $0xe8] sm:$0xff]  ;;  %v2194_v50 = vld [vmem:[#allocation2 + $0x120] sm:$0xff] }
 0x2b0   : > { %3762 = vmatprep.subr.bf16.mxu0 %v4172_v37  ;;  %3839 = vmatprep.subr.bf16.mxu1 %v4172_v37  ;;  %v2260_v28 = vadd.f32 %v4815_v40, %v2189_v16  ;;  %v2291_v29 = vadd.f32 %v4815_v40, %v2220_v17  ;;  %v2383_v30 = vpack.c.bf16 %v2322_v14, %v2321_v13  ;;  %v2193_v41 = vld [vmem:[#allocation2 + $0x98] sm:$0xff]  ;;  %v2195_v51 = vld [vmem:[#allocation2 + $0x150] sm:$0xff]  ;;  %v2196_v6 = vld [vmem:[#allocation2 + $0x108] sm:$0xff] }
 0x2b1   : > { %3804 = vmatprep.mubr.bf16.mxu1 %v2397_v53  ;;  %v2292_v31 = vadd.f32 %v4815_v40, %v2221_v20  ;;  %v2261_v32 = vadd.f32 %v4815_v40, %v2190_v21  ;;  %v2262_v33 = vadd.f32 %v4815_v40, %v2191_v22  ;;  %v2399_v34 = vpack.c.bf16 %v2354_v19, %v2353_v18  ;;  %v2225_v47 = vld [vmem:[#allocation2 + $0x78] sm:$0xff]  ;;  %v2226_v52 = vld [vmem:[#allocation2 + $0x70] sm:$0xff]  ;;  %v2197_v7 = vld [vmem:[#allocation2 + $0x60] sm:$0xff] }
 0x2b2   : > { %v2293_v35 = vadd.f32 %v4815_v40, %v2222_v24  ;;  %v2294_v36 = vadd.f32 %v4815_v40, %v2223_v25  ;;  %v2324_v38 = vmax.f32 %v2260_v28, 0.0  ;;  %v2355_v42 = vmax.f32 %v2291_v29, 0.0  ;;  %v2227_v53 = vld [vmem:[#allocation2 + $0x90] sm:$0xff]  ;;  %v2198_v14 = vld [vmem:[#allocation2 + $0xe0] sm:$0xff]  ;;  %v2199_v15 = vld [vmem:[#allocation2 + $0x188] sm:$0xff] }
 0x2b3   : > { %3763 = vmatpush3.bf16.msra.mxu0 %v4172_v37  ;;  %3847 = vmatpush3.bf16.msra.mxu1 %v4172_v37  ;;  %v2323_v37 = vmax.f32 %v2259_v27, 0.0  ;;  %v2356_v43 = vmax.f32 %v2292_v31, 0.0  ;;  %v2325_v44 = vmax.f32 %v2261_v32, 0.0  ;;  %v2326_v45 = vmax.f32 %v2262_v33, 0.0  ;;  %v2229_v9 = vld [vmem:[#allocation2 + $0xd0] sm:$0xff]  ;;  %v2230_v16 = vld [vmem:[#allocation2 + $0xb8] sm:$0xff] }
 0x2b4   : > { %3764 = vmatprep.subr.bf16.mxu0 %v4173_v49  ;;  %3840 = vmatprep.subr.bf16.mxu1 %v4173_v49  ;;  %v2357_v48 = vmax.f32 %v2293_v35, 0.0  ;;  %v2264_v55 = vadd.f32 %v4815_v40, %v2193_v41  ;;  %v2295_v56 = vadd.f32 %v4815_v40, %v2224_v46  ;;  %v2296_v57 = vadd.f32 %v4815_v40, %v2225_v47  ;;  %v2231_v17 = vld [vmem:[#allocation2 + $0x88] sm:$0xff]  ;;  %v2200_v32 = vld [vmem:[#allocation2 + $0x138] sm:$0xff]  ;;  %v2201_v33 = vld [vmem:[#allocation2 + $0x140] sm:$0xff] }
 0x2b5   : > { %v2384_v58 = vpack.c.bf16 %v2324_v38, %v2323_v37  ;;  %v2400_v59 = vpack.c.bf16 %v2356_v43, %v2355_v42  ;;  %v2385_v60 = vpack.c.bf16 %v2326_v45, %v2325_v44  ;;  %v2266_v63 = vadd.f32 %v4815_v40, %v2195_v51  ;;  %v2232_v38 = vld [vmem:[#allocation2 + $0xa8] sm:$0xff]  ;;  %v2202_v43 = vld [vmem:[#allocation2 + $0x80] sm:$0xff]  ;;  %v2234_v45 = vld [vmem:[#allocation2 + $0x170] sm:$0xff] }
 0x2b6   : > { %v2297_v0 = vadd.f32 %v4815_v40, %v2226_v52  ;;  %v2298_v1 = vadd.f32 %v4815_v40, %v2227_v53  ;;  %v2328_v3 = vmax.f32 %v2264_v55, 0.0  ;;  %v2359_v4 = vmax.f32 %v2295_v56, 0.0  ;;  %v2203_v44 = vld [vmem:[#allocation2 + $0x1a8] sm:$0xff]  ;;  %v2235_v46 = vld [vmem:[#allocation2 + $0x178] sm:$0xff] }
 0x2b7   : > { %3765 = vmatpush3.bf16.msra.mxu0 %v4173_v49  ;;  %3848 = vmatpush3.bf16.msra.mxu1 %v4173_v49  ;;  %v2358_v49 = vmax.f32 %v2294_v36, 0.0  ;;  %v2360_v5 = vmax.f32 %v2296_v57, 0.0  ;;  %v2330_v11 = vmax.f32 %v2266_v63, 0.0  ;;  %v2267_v20 = vadd.f32 %v4815_v40, %v2196_v6  ;;  %v2204_v63 = vld [vmem:[#allocation2 + $0x1b8] sm:$0xff] }
 0x2b8   : > { %3766 = vmatprep.subr.bf16.mxu0 %v4174_v54  ;;  %3841 = vmatprep.subr.bf16.mxu1 %v4174_v54  ;;  %v2361_v12 = vmax.f32 %v2297_v0, 0.0  ;;  %v2362_v13 = vmax.f32 %v2298_v1, 0.0  ;;  %v2268_v21 = vadd.f32 %v4815_v40, %v2197_v7  ;;  %v2269_v24 = vadd.f32 %v4815_v40, %v2198_v14  ;;  %v2205_v0 = vld [vmem:[#allocation2 + $0x28] sm:$0xff] }
 0x2b9   : > { %v2401_v62 = vpack.c.bf16 %v2358_v49, %v2357_v48  ;;  %v2402_v19 = vpack.c.bf16 %v2360_v5, %v2359_v4  ;;  %v2270_v25 = vadd.f32 %v4815_v40, %v2199_v15  ;;  %v2301_v28 = vadd.f32 %v4815_v40, %v2230_v16  ;;  %v2236_v1 = vld [vmem:[#allocation2 + $0x68] sm:$0xff] }
 0x2ba   : > { %v2403_v27 = vpack.c.bf16 %v2362_v13, %v2361_v12  ;;  %v2302_v29 = vadd.f32 %v4815_v40, %v2231_v17  ;;  %v2332_v31 = vmax.f32 %v2268_v21, 0.0  ;;  %v2333_v36 = vmax.f32 %v2269_v24, 0.0  ;;  %v2206_v7 = vld [vmem:[#allocation2 + $0x1e8] sm:$0xff] }
 0x2bb   : > { %3767 = vmatpush3.bf16.msra.mxu0 %v4174_v54  ;;  %3849 = vmatpush3.bf16.msra.mxu1 %v4174_v54  ;;  %v2263_v54 = vadd.f32 %v4815_v40, %v2192_v39  ;;  %v2334_v37 = vmax.f32 %v2270_v25, 0.0  ;;  %v2233_v39 = vld [vmem:[#allocation2 + $0x1c8] sm:$0xff]  ;;  %v2365_v41 = vmax.f32 %v2301_v28, 0.0  ;;  %v2271_v47 = vadd.f32 %v4815_v40, %v2200_v32  ;;  %v2208_v25 = vld [vmem:[#allocation2 + $0x160] sm:$0xff] }
 0x2bc   : > { %3768 = vmatprep.subr.bf16.mxu0 %v4175_v61  ;;  %3842 = vmatprep.subr.bf16.mxu1 %v4175_v61  ;;  %v2366_v42 = vmax.f32 %v2302_v29, 0.0  ;;  %v2272_v48 = vadd.f32 %v4815_v40, %v2201_v33  ;;  %v2303_v49 = vadd.f32 %v4815_v40, %v2232_v38  ;;  %v2274_v56 = vadd.f32 %v4815_v40, %v2203_v44  ;;  %v2241_v32 = vld [vmem:[#allocation2 + $0x1c0] sm:$0xff]  ;;  %v2243_v38 = vld [vmem:[#allocation2 + $0x10] sm:$0xff] }
 0x2bd   : > { %v2327_v2 = vmax.f32 %v2263_v54, 0.0  ;;  %v2389_v53 = vpack.c.bf16 %v2334_v37, %v2333_v36  ;;  %v2273_v54 = vadd.f32 %v4815_v40, %v2202_v43  ;;  %v2305_v57 = vadd.f32 %v4815_v40, %v2234_v45  ;;  %v2211_v36 = vld [vmem:[#allocation2] sm:$0xff]  ;;  %v2242_v37 = vld [vmem:[#allocation2 + $0x158] sm:$0xff] }
 0x2be   : > { %v2405_v55 = vpack.c.bf16 %v2366_v42, %v2365_v41  ;;  %v2338_v4 = vmax.f32 %v2274_v56, 0.0  ;;  %v2275_v13 = vadd.f32 %v4815_v40, %v2204_v63  ;;  %v2276_v14 = vadd.f32 %v4815_v40, %v2205_v0  ;;  %v2212_v56 = vld [vmem:[#allocation2 + $0xf0] sm:$0xff]  ;;  %v2245_v63 = vld [vmem:[#allocation2 + $0xa0] sm:$0xff] }
 0x2bf   : > { %3769 = vmatpush3.bf16.msra.mxu0 %v4175_v61  ;;  %3850 = vmatpush3.bf16.msra.mxu1 %v4175_v61  ;;  %v2265_v61 = vadd.f32 %v4815_v40, %v2194_v50  ;;  %v2386_v18 = vpack.c.bf16 %v2328_v3, %v2327_v2  ;;  %v2304_v50 = vadd.f32 %v4815_v40, %v2233_v39  ;;  %v2237_v2 = vld [vmem:[#allocation2 + $0x190] sm:$0xff]  ;;  %v2337_v3 = vmax.f32 %v2273_v54, 0.0 }
 0x2c0   : > { %3770 = vmatprep.subr.bf16.mxu0 %v4176_v8  ;;  %3843 = vmatprep.subr.bf16.mxu1 %v4176_v8  ;;  %v2369_v5 = vmax.f32 %v2305_v57, 0.0  ;;  %v2307_v15 = vadd.f32 %v4815_v40, %v2236_v1  ;;  %v2308_v16 = vadd.f32 %v4815_v40, %v2237_v2  ;;  %v2277_v17 = vadd.f32 %v4815_v40, %v2206_v7  ;;  %v2213_v57 = vld [vmem:[#allocation2 + $0x8] sm:$0xff] }
 0x2c1   : > { %v2329_v10 = vmax.f32 %v2265_v61, 0.0  ;;  %v2367_v61 = vmax.f32 %v2303_v49, 0.0  ;;  %v2340_v24 = vmax.f32 %v2276_v14, 0.0  ;;  %v2279_v39 = vadd.f32 %v4815_v40, %v2208_v25 }
 0x2c2   : > { %v2372_v28 = vmax.f32 %v2308_v16, 0.0  ;;  %v2341_v29 = vmax.f32 %v2277_v17, 0.0  ;;  %v2312_v43 = vadd.f32 %v4815_v40, %v2241_v32  ;;  %v2282_v49 = vadd.f32 %v4815_v40, %v2211_v36 }
 0x2c3   : > { %3771 = vmatpush3.bf16.msra.mxu0 %v4176_v8  ;;  %3851 = vmatpush3.bf16.msra.mxu1 %v4176_v8  ;;  %v2228_v8 = vld [vmem:[#allocation2 + $0x1d8] sm:$0xff]  ;;  %v2283_v2 = vadd.f32 %v4815_v40, %v2212_v56 }
 0x2c4   : > { %v2299_v22 = vadd.f32 %v4815_v40, %v2228_v8  ;;  %v2207_v8 = vld [vmem:[#allocation2 + $0xf8] sm:$0xff] }
 0x2c6   : > { %3773 = vmatmul.mubr.bf16.vlgmr.msra.gmra.mxu0 %v2382_v23  ;;  %3805 = vmatmul.mubr.bf16.vlgmr.msra.gmra.mxu1 %v2398_v26  ;;  %v2300_v23 = vadd.f32 %v4815_v40, %v2229_v9  ;;  %v2387_v26 = vpack.c.bf16 %v2330_v11, %v2329_v10  ;;  %v2238_v9 = vld [vmem:[#allocation2 + $0x198] sm:$0xff] }
 0x2c7   : > { %3776 = vmatprep.mubr.bf16.mxu0 %v2383_v30  ;;  %3808 = vmatprep.mubr.bf16.mxu1 %v2399_v34  ;;  %v2331_v30 = vmax.f32 %v2267_v20, 0.0  ;;  %v2363_v34 = vmax.f32 %v2299_v22, 0.0  ;;  %v2239_v10 = vld [vmem:[#allocation2 + $0x38] sm:$0xff]  ;;  %v2309_v21 = vadd.f32 %v4815_v40, %v2238_v9 }
 0x2c8   : > { %v2364_v35 = vmax.f32 %v2300_v23, 0.0  ;;  %v2310_v22 = vadd.f32 %v4815_v40, %v2239_v10  ;;  %v2339_v23 = vmax.f32 %v2275_v13, 0.0 }
 0x2c9   : > { %v2388_v51 = vpack.c.bf16 %v2332_v31, %v2331_v30  ;;  %v2240_v31 = vld [vmem:[#allocation2 + $0xc0] sm:$0xff]  ;;  %v2373_v33 = vmax.f32 %v2309_v21, 0.0 }
 0x2ca   : > { %v2404_v52 = vpack.c.bf16 %v2364_v35, %v2363_v34  ;;  %v2374_v34 = vmax.f32 %v2310_v22, 0.0  ;;  %v2210_v35 = vld [vmem:[#allocation2 + $0x1e0] sm:$0xff]  ;;  %v2311_v42 = vadd.f32 %v4815_v40, %v2240_v31  ;;  %v2392_v44 = vpack.c.bf16 %v2340_v24, %v2339_v23 }
 0x2cc   : > { %v2375_v54 = vmax.f32 %v2311_v42, 0.0 }
 0x2ce   : > { %3777 = vmatmul.mubr.bf16.gmra.mxu0 %v2384_v58  ;;  %3809 = vmatmul.mubr.bf16.gmra.mxu1 %v2400_v59  ;;  %v2306_v58 = vadd.f32 %v4815_v40, %v2235_v46  ;;  %v2335_v59 = vmax.f32 %v2271_v47, 0.0  ;;  %v2281_v47 = vadd.f32 %v4815_v40, %v2210_v35 }
 0x2cf   : > { %3780 = vmatprep.mubr.bf16.mxu0 %v2385_v60  ;;  %3812 = vmatprep.mubr.bf16.mxu1 %v2401_v62  ;;  %v2336_v60 = vmax.f32 %v2272_v48, 0.0  ;;  %v2368_v62 = vmax.f32 %v2304_v50, 0.0  ;;  %v2409_v48 = vpack.c.bf16 %v2374_v34, %v2373_v33  ;;  %v2313_v50 = vadd.f32 %v4815_v40, %v2242_v37 }
 0x2d0   : > { %v2370_v6 = vmax.f32 %v2306_v58, 0.0  ;;  %v2345_v58 = vmax.f32 %v2281_v47, 0.0 }
 0x2d1   : > { %v2390_v11 = vpack.c.bf16 %v2336_v60, %v2335_v59  ;;  %v2406_v12 = vpack.c.bf16 %v2368_v62, %v2367_v61  ;;  %v2346_v59 = vmax.f32 %v2282_v49, 0.0  ;;  %v2377_v60 = vmax.f32 %v2313_v50, 0.0  ;;  %v2244_v62 = vld [vmem:[#allocation2 + $0x58] sm:$0xff] }
 0x2d2   : > { %v2407_v20 = vpack.c.bf16 %v2370_v6, %v2369_v5  ;;  %v2316_v5 = vadd.f32 %v4815_v40, %v2245_v63 }
 0x2d3   : > { %v2395_v6 = vpack.c.bf16 %v2346_v59, %v2345_v58 }
 0x2d6   : > { %3781 = vmatmul.mubr.bf16.gmra.mxu0 %v2386_v18  ;;  %3813 = vmatmul.mubr.bf16.gmra.mxu1 %v2402_v19  ;;  %v2278_v18 = vadd.f32 %v4815_v40, %v2207_v8  ;;  %v2391_v19 = vpack.c.bf16 %v2338_v4, %v2337_v3  ;;  %v2284_v3 = vadd.f32 %v4815_v40, %v2213_v57  ;;  %v2347_v8 = vmax.f32 %v2283_v2, 0.0 }
 0x2d7   : > { %3784 = vmatprep.mubr.bf16.mxu0 %v2387_v26  ;;  %3816 = vmatprep.mubr.bf16.mxu1 %v2403_v27  ;;  %v2209_v26 = vld [vmem:[#allocation2 + $0x30] sm:$0xff]  ;;  %v2371_v27 = vmax.f32 %v2307_v15, 0.0  ;;  %v2315_v4 = vadd.f32 %v4815_v40, %v2244_v62 }
 0x2d8   : > { %v2342_v30 = vmax.f32 %v2278_v18, 0.0  ;;  %v2280_v41 = vadd.f32 %v4815_v40, %v2209_v26  ;;  %v2348_v9 = vmax.f32 %v2284_v3, 0.0 }
 0x2d9   : > { %v2408_v45 = vpack.c.bf16 %v2372_v28, %v2371_v27  ;;  %v2379_v10 = vmax.f32 %v2315_v4, 0.0 }
 0x2da   : > { %v2393_v46 = vpack.c.bf16 %v2342_v30, %v2341_v29 }
 0x2de   : > { %3785 = vmatmul.mubr.bf16.gmra.mxu0 %v2388_v51  ;;  %3817 = vmatmul.mubr.bf16.gmra.mxu1 %v2404_v52  ;;  %v2314_v51 = vadd.f32 %v4815_v40, %v2243_v38  ;;  %v2343_v52 = vmax.f32 %v2279_v39, 0.0 }
 0x2df   : > { %3788 = vmatprep.mubr.bf16.mxu0 %v2389_v53  ;;  %3820 = vmatprep.mubr.bf16.mxu1 %v2405_v55  ;;  %v2344_v53 = vmax.f32 %v2280_v41, 0.0  ;;  %v2376_v55 = vmax.f32 %v2312_v43, 0.0 }
 0x2e0   : > { %v2378_v61 = vmax.f32 %v2314_v51, 0.0 }
 0x2e1   : > { %v2394_v0 = vpack.c.bf16 %v2344_v53, %v2343_v52  ;;  %v2410_v1 = vpack.c.bf16 %v2376_v55, %v2375_v54 }
 0x2e2   : > { %v2411_v7 = vpack.c.bf16 %v2378_v61, %v2377_v60 }
 0x2e6   : > { %3789 = vmatmul.mubr.bf16.gmra.mxu0 %v2390_v11  ;;  %3821 = vmatmul.mubr.bf16.gmra.mxu1 %v2406_v12  ;;  %v2380_v11 = vmax.f32 %v2316_v5, 0.0  ;;  %v2396_v12 = vpack.c.bf16 %v2348_v9, %v2347_v8 }
 0x2e7   : > { %3792 = vmatprep.mubr.bf16.mxu0 %v2391_v19  ;;  %3824 = vmatprep.mubr.bf16.mxu1 %v2407_v20 }
 0x2e8   : > { %v2412_v13 = vpack.c.bf16 %v2380_v11, %v2379_v10 }
 0x2ee   : > { %3793 = vmatmul.mubr.bf16.gmra.mxu0 %v2392_v44  ;;  %3825 = vmatmul.mubr.bf16.gmra.mxu1 %v2408_v45 }
 0x2ef   : > { %3796 = vmatprep.mubr.bf16.mxu0 %v2393_v46  ;;  %3828 = vmatprep.mubr.bf16.mxu1 %v2409_v48 }
 0x2f6   : > { %3797 = vmatmul.mubr.bf16.gmra.mxu0 %v2394_v0  ;;  %3829 = vmatmul.mubr.bf16.gmra.mxu1 %v2410_v1 }
 0x2f7   : > { %3800 = vmatprep.mubr.bf16.mxu0 %v2395_v6  ;;  %3832 = vmatprep.mubr.bf16.mxu1 %v2411_v7 }
 0x2fe   : > { %3801 = vmatmul.mubr.bf16.gmra.mxu0 %v2396_v12  ;;  %3833 = vmatmul.mubr.bf16.gmra.mxu1 %v2412_v13 }
 0x386   : > { %v3774_v14 = vpop.f32.mrf.mxu0  ;;  %v3806_v15 = vpop.f32.mrf.mxu1 }
 0x388   : > { %v2511_v40 = vpop.f32.mrf.mxu0  ;;  %v2639_v16 = vpop.f32.mrf.mxu1 }
 0x38a   : > { %v3775_v17 = vpop.f32.mrf.mxu0  ;;  %v3807_v18 = vpop.f32.mrf.mxu1 }
 0x38b   : > { %v3533_v19 = vpack.c.bf16 %v3775_v17, %v3774_v14  ;;  %v3613_v20 = vpack.c.bf16 %v3807_v18, %v3806_v15 }
 0x38c   : > { %v2514_v21 = vpop.f32.mrf.mxu0  ;;  %v2642_v22 = vpop.f32.mrf.mxu1 }
 0x38d   : > { %3685 = vst [vmem:[%s4534_s18 + $0x8] sm:$0xff] %v3533_v19   ;;  %3701 = vst [vmem:[%s4534_s18 + $0x88] sm:$0xff] %v3613_v20   ;;  %v3528_v23 = vpack.c.bf16 %v2514_v21, %v2511_v40  ;;  %v3608_v24 = vpack.c.bf16 %v2642_v22, %v2639_v16 }
 0x38e   : > { %v3778_v25 = vpop.f32.mrf.mxu0  ;;  %v3810_v26 = vpop.f32.mrf.mxu1 }
 0x38f   : > { %3529 = vst [vmem:[%s4534_s18] sm:$0xff] %v3528_v23   ;;  %3700 = vst [vmem:[%s4534_s18 + $0x80] sm:$0xff] %v3608_v24  }
 0x390   : > { %v2527_v27 = vpop.f32.mrf.mxu0  ;;  %v2655_v28 = vpop.f32.mrf.mxu1 }
 0x392   : > { %v3779_v29 = vpop.f32.mrf.mxu0  ;;  %v3811_v30 = vpop.f32.mrf.mxu1 }
 0x393   : > { %v3543_v31 = vpack.c.bf16 %v3779_v29, %v3778_v25  ;;  %v3623_v32 = vpack.c.bf16 %v3811_v30, %v3810_v26 }
 0x394   : > { %v2530_v33 = vpop.f32.mrf.mxu0  ;;  %v2658_v34 = vpop.f32.mrf.mxu1 }
 0x395   : > { %3687 = vst [vmem:[%s4534_s18 + $0x18] sm:$0xff] %v3543_v31   ;;  %3703 = vst [vmem:[%s4534_s18 + $0x98] sm:$0xff] %v3623_v32   ;;  %v3538_v35 = vpack.c.bf16 %v2530_v33, %v2527_v27  ;;  %v3618_v36 = vpack.c.bf16 %v2658_v34, %v2655_v28 }
 0x396   : > { %v3782_v37 = vpop.f32.mrf.mxu0  ;;  %v3814_v38 = vpop.f32.mrf.mxu1 }
 0x397   : > { %3686 = vst [vmem:[%s4534_s18 + $0x10] sm:$0xff] %v3538_v35   ;;  %3702 = vst [vmem:[%s4534_s18 + $0x90] sm:$0xff] %v3618_v36  }
 0x398   : > { %v2543_v39 = vpop.f32.mrf.mxu0  ;;  %v2671_v41 = vpop.f32.mrf.mxu1 }
 0x39a   : > { %v3783_v42 = vpop.f32.mrf.mxu0  ;;  %v3815_v43 = vpop.f32.mrf.mxu1 }
 0x39b   : > { %v3553_v44 = vpack.c.bf16 %v3783_v42, %v3782_v37  ;;  %v3633_v45 = vpack.c.bf16 %v3815_v43, %v3814_v38 }
 0x39c   : > { %v2546_v46 = vpop.f32.mrf.mxu0  ;;  %v2674_v47 = vpop.f32.mrf.mxu1 }
 0x39d   : > { %3689 = vst [vmem:[%s4534_s18 + $0x28] sm:$0xff] %v3553_v44   ;;  %3705 = vst [vmem:[%s4534_s18 + $0xa8] sm:$0xff] %v3633_v45   ;;  %v3548_v48 = vpack.c.bf16 %v2546_v46, %v2543_v39  ;;  %v3628_v49 = vpack.c.bf16 %v2674_v47, %v2671_v41 }
 0x39e   : > { %v3786_v50 = vpop.f32.mrf.mxu0  ;;  %v3818_v51 = vpop.f32.mrf.mxu1 }
 0x39f   : > { %3688 = vst [vmem:[%s4534_s18 + $0x20] sm:$0xff] %v3548_v48   ;;  %3704 = vst [vmem:[%s4534_s18 + $0xa0] sm:$0xff] %v3628_v49  }
 0x3a0   : > { %v2559_v52 = vpop.f32.mrf.mxu0  ;;  %v2687_v53 = vpop.f32.mrf.mxu1 }
 0x3a2   : > { %v3787_v54 = vpop.f32.mrf.mxu0  ;;  %v3819_v55 = vpop.f32.mrf.mxu1 }
 0x3a3   : > { %v3563_v56 = vpack.c.bf16 %v3787_v54, %v3786_v50  ;;  %v3643_v57 = vpack.c.bf16 %v3819_v55, %v3818_v51 }
 0x3a4   : > { %v2562_v58 = vpop.f32.mrf.mxu0  ;;  %v2690_v59 = vpop.f32.mrf.mxu1 }
 0x3a5   : > { %3691 = vst [vmem:[%s4534_s18 + $0x38] sm:$0xff] %v3563_v56   ;;  %3707 = vst [vmem:[%s4534_s18 + $0xb8] sm:$0xff] %v3643_v57   ;;  %v3558_v60 = vpack.c.bf16 %v2562_v58, %v2559_v52  ;;  %v3638_v61 = vpack.c.bf16 %v2690_v59, %v2687_v53 }
 0x3a6   : > { %v3790_v62 = vpop.f32.mrf.mxu0  ;;  %v3822_v63 = vpop.f32.mrf.mxu1 }
 0x3a7   : > { %3690 = vst [vmem:[%s4534_s18 + $0x30] sm:$0xff] %v3558_v60   ;;  %3706 = vst [vmem:[%s4534_s18 + $0xb0] sm:$0xff] %v3638_v61  }
 0x3a8   : > { %v2575_v0 = vpop.f32.mrf.mxu0  ;;  %v2703_v1 = vpop.f32.mrf.mxu1 }
 0x3aa   : > { %v3791_v2 = vpop.f32.mrf.mxu0  ;;  %v3823_v3 = vpop.f32.mrf.mxu1 }
 0x3ab   : > { %v3573_v4 = vpack.c.bf16 %v3791_v2, %v3790_v62  ;;  %v3653_v5 = vpack.c.bf16 %v3823_v3, %v3822_v63 }
 0x3ac   : > { %v2578_v6 = vpop.f32.mrf.mxu0  ;;  %v2706_v7 = vpop.f32.mrf.mxu1 }
 0x3ad   : > { %3693 = vst [vmem:[%s4534_s18 + $0x48] sm:$0xff] %v3573_v4   ;;  %3709 = vst [vmem:[%s4534_s18 + $0xc8] sm:$0xff] %v3653_v5   ;;  %v3568_v8 = vpack.c.bf16 %v2578_v6, %v2575_v0  ;;  %v3648_v9 = vpack.c.bf16 %v2706_v7, %v2703_v1 }
 0x3ae   : > { %v3794_v10 = vpop.f32.mrf.mxu0  ;;  %v3826_v11 = vpop.f32.mrf.mxu1 }
 0x3af   : > { %3692 = vst [vmem:[%s4534_s18 + $0x40] sm:$0xff] %v3568_v8   ;;  %3708 = vst [vmem:[%s4534_s18 + $0xc0] sm:$0xff] %v3648_v9  }
 0x3b0   : > { %v2591_v12 = vpop.f32.mrf.mxu0  ;;  %v2719_v13 = vpop.f32.mrf.mxu1 }
 0x3b2   : > { %v3795_v14 = vpop.f32.mrf.mxu0  ;;  %v3827_v15 = vpop.f32.mrf.mxu1 }
 0x3b3   : > { %v3583_v40 = vpack.c.bf16 %v3795_v14, %v3794_v10  ;;  %v3663_v16 = vpack.c.bf16 %v3827_v15, %v3826_v11 }
 0x3b4   : > { %v2594_v17 = vpop.f32.mrf.mxu0  ;;  %v2722_v18 = vpop.f32.mrf.mxu1 }
 0x3b5   : > { %3695 = vst [vmem:[%s4534_s18 + $0x58] sm:$0xff] %v3583_v40   ;;  %3711 = vst [vmem:[%s4534_s18 + $0xd8] sm:$0xff] %v3663_v16   ;;  %v3578_v19 = vpack.c.bf16 %v2594_v17, %v2591_v12  ;;  %v3658_v20 = vpack.c.bf16 %v2722_v18, %v2719_v13 }
 0x3b6   : > { %v3798_v21 = vpop.f32.mrf.mxu0  ;;  %v3830_v22 = vpop.f32.mrf.mxu1 }
 0x3b7   : > { %3694 = vst [vmem:[%s4534_s18 + $0x50] sm:$0xff] %v3578_v19   ;;  %3710 = vst [vmem:[%s4534_s18 + $0xd0] sm:$0xff] %v3658_v20  }
 0x3b8   : > { %v2607_v23 = vpop.f32.mrf.mxu0  ;;  %v2735_v24 = vpop.f32.mrf.mxu1 }
 0x3ba   : > { %v3799_v25 = vpop.f32.mrf.mxu0  ;;  %v3831_v26 = vpop.f32.mrf.mxu1 }
 0x3bb   : > { %v3593_v27 = vpack.c.bf16 %v3799_v25, %v3798_v21  ;;  %v3673_v28 = vpack.c.bf16 %v3831_v26, %v3830_v22 }
 0x3bc   : > { %v2610_v29 = vpop.f32.mrf.mxu0  ;;  %v2738_v30 = vpop.f32.mrf.mxu1 }
 0x3bd   : > { %3697 = vst [vmem:[%s4534_s18 + $0x68] sm:$0xff] %v3593_v27   ;;  %3713 = vst [vmem:[%s4534_s18 + $0xe8] sm:$0xff] %v3673_v28   ;;  %v3588_v31 = vpack.c.bf16 %v2610_v29, %v2607_v23  ;;  %v3668_v32 = vpack.c.bf16 %v2738_v30, %v2735_v24 }
 0x3be   : > { %v3802_v33 = vpop.f32.mrf.mxu0  ;;  %v3834_v34 = vpop.f32.mrf.mxu1 }
 0x3bf   : > { %3696 = vst [vmem:[%s4534_s18 + $0x60] sm:$0xff] %v3588_v31   ;;  %3712 = vst [vmem:[%s4534_s18 + $0xe0] sm:$0xff] %v3668_v32  }
 0x3c0   : > { %v2623_v35 = vpop.f32.mrf.mxu0  ;;  %v2751_v36 = vpop.f32.mrf.mxu1 }
 0x3c2   : > { %v3803_v37 = vpop.f32.mrf.mxu0  ;;  %v3835_v38 = vpop.f32.mrf.mxu1 }
 0x3c3   : > { %v3603_v39 = vpack.c.bf16 %v3803_v37, %v3802_v33  ;;  %v3683_v41 = vpack.c.bf16 %v3835_v38, %v3834_v34 }
 0x3c4   : > { %v2626_v42 = vpop.f32.mrf.mxu0  ;;  %v2754_v43 = vpop.f32.mrf.mxu1 }
 0x3c5   : > { %3699 = vst [vmem:[%s4534_s18 + $0x78] sm:$0xff] %v3603_v39   ;;  %3715 = vst [vmem:[%s4534_s18 + $0xf8] sm:$0xff] %v3683_v41   ;;  %v3598_v44 = vpack.c.bf16 %v2626_v42, %v2623_v35  ;;  %v3678_v45 = vpack.c.bf16 %v2754_v43, %v2751_v36 }
 0x3c7   : > { %3698 = vst [vmem:[%s4534_s18 + $0x70] sm:$0xff] %v3598_v44   ;;  %3714 = vst [vmem:[%s4534_s18 + $0xf0] sm:$0xff] %v3678_v45  }
 0x3c8 PF: > { %s26_s1 = sadd.s32 1, %s4319_s1   ;;  %s4980_s30 = sld [smem:[#allocation15_spill]] }
 0x3c9   : > { %p23_p4 = scmp.ge.s32.totalorder %s26_s1, 6   ;;  %s4981_s7 = sld [smem:[#allocation16_spill]] }
 0x3ca   : > { %s4982_s10 = sld [smem:[#allocation17_spill]]  ;;  %s4983_s27 = smov %s4295_s28 }
 0x3cb   : > { %s4984_s28 = smov %s4299_s29  ;;  %s4985_s29 = smov %s4470_s19 }
 0x3cc   : > { %s4986_s0 = smov %s4315_s8  ;;  %25 = sbr.rel (!%p23_p4) target bundleno = 13 (0xd), region = 97 }
 0x3d0   : > { %s4987_s8 = smov %s4982_s10 }
 0x3d1   :  { %3108 = vsyncpa [#allocation7], 1 }
 0x3d2   :  { %3110 = vsyncpa [#allocation7 + $0x1], 1 }
 0x3d3   :  { %3111 = vsyncpa [#allocation9], 1 }

</bundles_post_ra>
